<compile_context>
chip_gen: v7x
topology: tpu7x:2x2x1
jax: 0.10.0
libtpu: 0.0.40
codegen_flags: <defaults>
</compile_context>

<pallas_src>
import math

import jax
import jax.numpy as jnp
from jax import lax
from jax.experimental import pallas as pl
from jax.experimental.pallas import tpu as pltpu

# ---------------- config (small shapes consistent with the module) -----------
C, H, W = 4, 16, 16          # img_size (== tgt_sz of _ResizeForward)
PATCH = 4                    # patch_size
DIM = 32                     # dim
DEPTH = 2                    # depth
HEADS = 4                    # heads
MLP_DIM = 64                 # mlp_dim
NUM_CLASSES = 10             # num_classes
BATCH = 2

N_PATCHES = (H // PATCH) ** 2        # 16
SEQ = N_PATCHES + 1                  # 17 (cls token + patches)
S_PAD = 24                           # per-image rows padded to a multiple of 8
SB = BATCH * S_PAD                   # 48: both images stacked along sublanes
HEAD_DIM = DIM // HEADS              # 8
PATCH_DIM = C * PATCH * PATCH        # 64
HEAD_PAD = 128                       # classifier output padded to a full lane width
LN_EPS = 1e-5
NEG_BIG = -1e30                      # additive softmax mask value

# ---- packed bias/LN vector slab layout: one (VEC_ROWS, VEC_LANES) f32 operand
VEC_LANES = 2 * HEADS * DIM          # 256
ROWS_PER_LAYER = 8
R_BCOMB, R_BO, R_LN1W, R_LN1B, R_B1, R_B2, R_LN2W, R_LN2B = range(ROWS_PER_LAYER)
RH_LNW = DEPTH * ROWS_PER_LAYER      # 16
RH_LNB = RH_LNW + 1
RH_B = RH_LNW + 2
VEC_ROWS = 24                        # 19 used rows, padded to a multiple of 8


# ---------------- in-kernel math helpers -------------------------------------
def _gelu(x):
    # tanh-approx GELU: transcendental lands on the EUP instead of ~10 VPU ops.
    # TODO(synk): PyTorch F.gelu uses exact erf; tanh approximation differs at ~1e-3.
    c = 0.7978845608028654  # sqrt(2/pi)
    return 0.5 * x * (1.0 + jnp.tanh(c * (x + 0.044715 * x * x * x)))


def _layer_norm(x, w, b):
    mu = jnp.mean(x, axis=-1, keepdims=True)
    var = jnp.mean((x - mu) ** 2, axis=-1, keepdims=True)
    return (x - mu) * lax.rsqrt(var + LN_EPS) * w + b


# ---------------- single fused kernel: embed + DEPTH layers + head ------------
def fused_kernel(patches_ref, base_ref, mask_ref, wpe_ref, wcomb_ref,
                 w1_ref, w2_ref, headw_ref, vec_ref, out_ref):
    f32, bf16 = jnp.float32, jnp.bfloat16
    vec = vec_ref[...]                 # (VEC_ROWS, VEC_LANES) f32 bias/LN slab
    mask = mask_ref[...]               # (SB, SB) block-diag / key-pad bias

    # Patch embedding for both images in one (SB,64)x(64,32) push. base carries
    # cls+pos / pos+conv_bias / zeros so real rows are exactly the sequence.
    x = jnp.dot(patches_ref[...].astype(bf16), wpe_ref[...],
                preferred_element_type=f32) + base_ref[...]      # (SB, DIM) f32

    for l in range(DEPTH):             # static unroll; weights stay in VMEM
        r0 = l * ROWS_PER_LAYER
        b_comb = vec[r0 + R_BCOMB:r0 + R_BCOMB + 1, :]            # (1, 256)
        bo = vec[r0 + R_BO:r0 + R_BO + 1, :DIM]
        ln1w = vec[r0 + R_LN1W:r0 + R_LN1W + 1, :DIM]
        ln1b = vec[r0 + R_LN1B:r0 + R_LN1B + 1, :DIM]
        b1 = vec[r0 + R_B1:r0 + R_B1 + 1, :MLP_DIM]
        b2 = vec[r0 + R_B2:r0 + R_B2 + 1, :DIM]
        ln2w = vec[r0 + R_LN2W:r0 + R_LN2W + 1, :DIM]
        ln2b = vec[r0 + R_LN2B:r0 + R_LN2B + 1, :DIM]

        # One lane-dense (32, 256) MXU push yields, for every head h,
        #   Y_h  = x (Wq_h Wk_h^T)/sqrt(d) + bq_h Wk_h^T      (score operand)
        #   VO_h = x (Wv_h Wo_h)          + bv_h Wo_h          (value*out-proj)
        big = jnp.dot(x.astype(bf16), wcomb_ref[l],
                      preferred_element_type=f32) + b_comb        # (SB, 256)

        # --- multi-head self-attention, heads accumulated directly ---
        acc = jnp.zeros((SB, DIM), f32)
        for h in range(HEADS):         # 32-lane aligned slices, K=32 / K=48 dots
            yh = big[:, h * DIM:(h + 1) * DIM]
            vh = big[:, (HEADS + h) * DIM:(HEADS + h + 1) * DIM]
            s = lax.dot_general(yh, x, (((1,), (1,)), ((), ())),
                                preferred_element_type=f32) + mask
            m = jnp.max(s, axis=-1, keepdims=True)
            e = jnp.exp(s - m)
            p = e * pl.reciprocal(jnp.sum(e, axis=-1, keepdims=True), approx=True)
            acc = acc + jnp.dot(p, vh, preferred_element_type=f32)
        attn = acc + bo                                            # out_proj bias

        # --- post-norm residual blocks (TransformerEncoderLayer default) ---
        y = _layer_norm(x + attn, ln1w, ln1b)
        hdn = _gelu(jnp.dot(y.astype(bf16), w1_ref[l],
                            preferred_element_type=f32) + b1)
        ff = jnp.dot(hdn.astype(bf16), w2_ref[l],
                     preferred_element_type=f32) + b2
        x = _layer_norm(y + ff, ln2w, ln2b)

    # --- classifier head on the cls row of each image (lane-dense store) ---
    cls = jnp.concatenate([x[b * S_PAD:b * S_PAD + 1, :] for b in range(BATCH)],
                          axis=0)                                  # (B, DIM)
    yc = _layer_norm(cls, vec[RH_LNW:RH_LNW + 1, :DIM], vec[RH_LNB:RH_LNB + 1, :DIM])
    out_ref[...] = (jnp.dot(yc.astype(bf16), headw_ref[...],
                            preferred_element_type=f32)
                    + vec[RH_B:RH_B + 1, :HEAD_PAD])


def fused_forward(patches, kp):
    operands = (patches, kp["base"], kp["mask"], kp["w_pe"], kp["wcomb"],
                kp["w1"], kp["w2"], kp["head_w"], kp["vecs"])

    def full_spec(a):
        nd = a.ndim
        return pl.BlockSpec(a.shape, lambda i, nd=nd: (0,) * nd)

    return pl.pallas_call(
        fused_kernel,
        out_shape=jax.ShapeDtypeStruct((BATCH, HEAD_PAD), jnp.float32),
        grid=(1,),                      # whole batch in one step (single TC)
        in_specs=[full_spec(a) for a in operands],
        out_specs=pl.BlockSpec((BATCH, HEAD_PAD), lambda i: (0, 0)),
        compiler_params=pltpu.CompilerParams(dimension_semantics=("arbitrary",)),
    )(*operands)


# ---------------- parameter init (torch-layout, deterministic) ----------------
def init_params(key):
    ks = iter(jax.random.split(key, 64))
    nk = lambda: next(ks)
    std = 0.02
    f32 = jnp.float32

    p = {
        "conv_w": jax.random.normal(nk(), (DIM, C, PATCH, PATCH), f32) * std,
        "conv_b": jax.random.normal(nk(), (DIM,), f32) * std,
        "cls": jnp.zeros((1, 1, DIM), f32),                   # torch.zeros init
        "pos": jax.random.normal(nk(), (1, SEQ, DIM), f32),   # torch.randn init
    }

    in_w, in_b, out_w, out_b = [], [], [], []
    l1w, l1b, l2w, l2b = [], [], [], []
    for _ in range(DEPTH):
        in_w.append(jax.random.normal(nk(), (3 * DIM, DIM), f32) * std)   # torch (3D, D)
        in_b.append(jax.random.normal(nk(), (3 * DIM,), f32) * std)
        out_w.append(jax.random.normal(nk(), (DIM, DIM), f32) * std)      # torch (D, D)
        out_b.append(jax.random.normal(nk(), (DIM,), f32) * std)
        l1w.append(jax.random.normal(nk(), (MLP_DIM, DIM), f32) * std)    # torch (M, D)
        l1b.append(jax.random.normal(nk(), (MLP_DIM,), f32) * std)
        l2w.append(jax.random.normal(nk(), (DIM, MLP_DIM), f32) * std)    # torch (D, M)
        l2b.append(jax.random.normal(nk(), (DIM,), f32) * std)

    p.update(
        attn_in_w=jnp.stack(in_w), attn_in_b=jnp.stack(in_b),
        attn_out_w=jnp.stack(out_w), attn_out_b=jnp.stack(out_b),
        lin1_w=jnp.stack(l1w), lin1_b=jnp.stack(l1b),
        lin2_w=jnp.stack(l2w), lin2_b=jnp.stack(l2b),
        ln1_w=jnp.ones((DEPTH, DIM), f32), ln1_b=jnp.zeros((DEPTH, DIM), f32),
        ln2_w=jnp.ones((DEPTH, DIM), f32), ln2_b=jnp.zeros((DEPTH, DIM), f32),
        head_ln_w=jnp.ones((DIM,), f32), head_ln_b=jnp.zeros((DIM,), f32),
        head_w=jax.random.normal(nk(), (NUM_CLASSES, DIM), f32) * std,     # torch (cls, D)
        head_b=jax.random.normal(nk(), (NUM_CLASSES,), f32) * std,
    )
    return p


# ---------------- one-time packing of kernel operands -------------------------
def pack_params(p):
    """Precompute every kernel operand that depends only on the parameters."""
    f32, bf16 = jnp.float32, jnp.bfloat16
    scale = 1.0 / math.sqrt(HEAD_DIM)

    # Patch embedding: strided conv as matmul + fused (cls/pos/conv-bias) base.
    w_pe = p["conv_w"].reshape(DIM, PATCH_DIM).T                     # (64, 32)
    base_img = jnp.concatenate([
        p["cls"][0] + p["pos"][0, :1],                               # cls + pos[0]
        p["pos"][0, 1:SEQ] + p["conv_b"][None, :],                   # pos + conv bias
        jnp.zeros((S_PAD - SEQ, DIM), f32)], axis=0)                 # padded rows
    base = jnp.tile(base_img, (BATCH, 1))                            # (SB, DIM)

    # Additive attention bias: block-diagonal over images + padded-key masking.
    idx = jnp.arange(SB)
    same_img = (idx[:, None] // S_PAD) == (idx[None, :] // S_PAD)
    key_ok = (idx[None, :] % S_PAD) < SEQ
    mask = jnp.where(same_img & key_ok, 0.0, NEG_BIG).astype(f32)    # (SB, SB)

    def vrow(v):
        v = jnp.asarray(v, f32).reshape(-1)
        return jnp.pad(v, (0, VEC_LANES - v.shape[0]))

    wcomb, w1s, w2s, vec_rows = [], [], [], []
    for l in range(DEPTH):
        # q = x @ Wq + bq (torch in_proj layout), same for k, v; out = cat @ Wo + bo.
        Wq = p["attn_in_w"][l, :DIM].T
        Wk = p["attn_in_w"][l, DIM:2 * DIM].T
        Wv = p["attn_in_w"][l, 2 * DIM:].T
        bq = p["attn_in_b"][l, :DIM]
        # bk only adds a per-row constant to the scores -> softmax-invariant -> dropped.
        bv = p["attn_in_b"][l, 2 * DIM:]
        Wo = p["attn_out_w"][l].T

        m_blk, a_row, vo_blk, bvo_row = [], [], [], []
        for h in range(HEADS):
            sl = slice(h * HEAD_DIM, (h + 1) * HEAD_DIM)
            Wq_h, Wk_h, Wv_h, Wo_h = Wq[:, sl], Wk[:, sl], Wv[:, sl], Wo[sl, :]
            m_blk.append((Wq_h @ Wk_h.T) * scale)                    # (D, D)
            a_row.append((bq[sl][None, :] @ Wk_h.T) * scale)         # (1, D) key bias
            vo_blk.append(Wv_h @ Wo_h)                               # (D, D)
            bvo_row.append(bv[sl][None, :] @ Wo_h)                   # (1, D)
        wcomb.append(jnp.concatenate(m_blk + vo_blk, axis=1))        # (D, 256)
        b_comb = jnp.concatenate(a_row + bvo_row, axis=1)[0]         # (256,)

        w1s.append(p["lin1_w"][l].T)                                 # (D, M)
        w2s.append(p["lin2_w"][l].T)                                 # (M, D)

        rows = [None] * ROWS_PER_LAYER
        rows[R_BCOMB] = b_comb
        rows[R_BO] = p["attn_out_b"][l]
        rows[R_LN1W] = p["ln1_w"][l]
        rows[R_LN1B] = p["ln1_b"][l]
        rows[R_B1] = p["lin1_b"][l]
        rows[R_B2] = p["lin2_b"][l]
        rows[R_LN2W] = p["ln2_w"][l]
        rows[R_LN2B] = p["ln2_b"][l]
        vec_rows += [vrow(r) for r in rows]

    vec_rows += [vrow(p["head_ln_w"]), vrow(p["head_ln_b"]),
                 vrow(jnp.pad(p["head_b"], (0, HEAD_PAD - NUM_CLASSES)))]
    vecs = jnp.stack(vec_rows)                                       # (19, 256)
    vecs = jnp.pad(vecs, ((0, VEC_ROWS - vecs.shape[0]), (0, 0)))    # (24, 256)

    head_w = jnp.zeros((DIM, HEAD_PAD), f32).at[:, :NUM_CLASSES].set(p["head_w"].T)

    return {
        "base": base, "mask": mask, "vecs": vecs,
        "w_pe": w_pe.astype(bf16),
        "wcomb": jnp.stack(wcomb).astype(bf16),      # (DEPTH, 32, 256)
        "w1": jnp.stack(w1s).astype(bf16),           # (DEPTH, 32, 64)
        "w2": jnp.stack(w2s).astype(bf16),           # (DEPTH, 64, 32)
        "head_w": head_w.astype(bf16),               # (32, 128)
    }


# ---------------- forward ------------------------------------------------------
def mini_vit_forward(x, kp):
    assert x.shape == (BATCH, C, H, W), x.shape
    # im2col for the strided conv: (B,C,H,W) -> (B, N, C*p*p), patch grid row-major,
    # matching Conv2d(C, dim, p, p) -> flatten(2) -> transpose(1, 2).
    # TODO(synk): this im2col + pad still runs as tiny XLA glue outside the Pallas
    # kernel; folding it in would need an in-kernel 6-D transpose.
    xp = x.reshape(BATCH, C, H // PATCH, PATCH, W // PATCH, PATCH)
    xp = xp.transpose(0, 2, 4, 1, 3, 5).reshape(BATCH, N_PATCHES, PATCH_DIM)
    # Row 0 of each image block is the cls slot, rows SEQ..S_PAD-1 are zero pad.
    patches = jnp.pad(xp, ((0, 0), (1, S_PAD - SEQ), (0, 0))).reshape(SB, PATCH_DIM)
    logits = fused_forward(patches, kp)                              # (B, HEAD_PAD)
    return logits[:, :NUM_CLASSES]


def resize_forward(x, kp):
    # Mirrors _ResizeForward: resize (bilinear, align_corners=False) iff spatial != tgt_sz.
    if x.shape[-1] != W:
        # TODO(synk): bilinear resize runs as XLA glue (jax.image.resize, antialias=False),
        # not a Pallas kernel; it is a no-op for the 16x16 inputs used here.
        x = jax.image.resize(x, (x.shape[0], x.shape[1], H, W),
                             method="bilinear", antialias=False)
    return mini_vit_forward(x, kp)


if __name__ == "__main__":
    key = jax.random.PRNGKey(0)
    kx, kparam = jax.random.split(key)
    x = jax.random.normal(kx, (BATCH, C, H, W), jnp.float32)
    params = init_params(kparam)
    packed = pack_params(params)        # built once, outside the per-call hot path

    fwd = jax.jit(resize_forward)
    logits = jax.block_until_ready(fwd(x, packed))
    assert logits.shape == (BATCH, NUM_CLASSES), logits.shape
    assert bool(jnp.all(jnp.isfinite(logits)))
    print("KERNEL_OK")
</pallas_src>

<mosaic_0001>
module attributes {stable_mosaic.version = 11 : i64} {
  func.func @fused_kernel(%arg0: i32, %arg1: memref<48x64xf32, #tpu.memory_space<vmem>>, %arg2: memref<48x32xf32, #tpu.memory_space<vmem>>, %arg3: memref<48x48xf32, #tpu.memory_space<vmem>>, %arg4: memref<64x32xbf16, #tpu.memory_space<vmem>>, %arg5: memref<2x32x256xbf16, #tpu.memory_space<vmem>>, %arg6: memref<2x32x64xbf16, #tpu.memory_space<vmem>>, %arg7: memref<2x64x32xbf16, #tpu.memory_space<vmem>>, %arg8: memref<32x128xbf16, #tpu.memory_space<vmem>>, %arg9: memref<24x256xf32, #tpu.memory_space<vmem>>, %arg10: memref<2x128xf32, #tpu.memory_space<vmem>>) attributes {dimension_semantics = [#tpu.dimension_semantics<arbitrary>], iteration_bounds = array<i64: 1>, scalar_prefetch = 0 : i64, scratch_operands = 0 : i64, tpu.core_type = #tpu.core_type<tc>, window_params = [{pipeline_mode = #tpu.pipeline_mode<synchronous>, transform_indices = @transform_0, window_bounds = array<i64: 48, 64>}, {pipeline_mode = #tpu.pipeline_mode<synchronous>, transform_indices = @transform_1, window_bounds = array<i64: 48, 32>}, {pipeline_mode = #tpu.pipeline_mode<synchronous>, transform_indices = @transform_2, window_bounds = array<i64: 48, 48>}, {pipeline_mode = #tpu.pipeline_mode<synchronous>, transform_indices = @transform_3, window_bounds = array<i64: 64, 32>}, {pipeline_mode = #tpu.pipeline_mode<synchronous>, transform_indices = @transform_4, window_bounds = array<i64: 2, 32, 256>}, {pipeline_mode = #tpu.pipeline_mode<synchronous>, transform_indices = @transform_5, window_bounds = array<i64: 2, 32, 64>}, {pipeline_mode = #tpu.pipeline_mode<synchronous>, transform_indices = @transform_6, window_bounds = array<i64: 2, 64, 32>}, {pipeline_mode = #tpu.pipeline_mode<synchronous>, transform_indices = @transform_7, window_bounds = array<i64: 32, 128>}, {pipeline_mode = #tpu.pipeline_mode<synchronous>, transform_indices = @transform_8, window_bounds = array<i64: 24, 256>}, {pipeline_mode = #tpu.pipeline_mode<synchronous>, transform_indices = @transform_9, window_bounds = array<i64: 2, 128>}]} {
    %c0 = arith.constant 0 : index
    %c0_0 = arith.constant 0 : index
    %0 = vector.load %arg9[%c0, %c0_0] : memref<24x256xf32, #tpu.memory_space<vmem>>, vector<24x256xf32>
    %c0_1 = arith.constant 0 : index
    %c0_2 = arith.constant 0 : index
    %1 = vector.load %arg3[%c0_1, %c0_2] : memref<48x48xf32, #tpu.memory_space<vmem>>, vector<48x48xf32>
    %c0_3 = arith.constant 0 : index
    %c0_4 = arith.constant 0 : index
    %2 = vector.load %arg1[%c0_3, %c0_4] : memref<48x64xf32, #tpu.memory_space<vmem>>, vector<48x64xf32>
    %3 = arith.truncf %2 : vector<48x64xf32> to vector<48x64xbf16>
    %c0_5 = arith.constant 0 : index
    %c0_6 = arith.constant 0 : index
    %4 = vector.load %arg4[%c0_5, %c0_6] : memref<64x32xbf16, #tpu.memory_space<vmem>>, vector<64x32xbf16>
    %cst = arith.constant dense<0.000000e+00> : vector<48x32xf32>
    %5 = tpu.matmul %3, %4, %cst {dimension_numbers = #tpu.dot_dimension_numbers<[1], [0], [0], [1], [0, 0, 1, 1], [], []>} : vector<48x64xbf16>, vector<64x32xbf16>, vector<48x32xf32> -> vector<48x32xf32>
    %c0_7 = arith.constant 0 : index
    %c0_8 = arith.constant 0 : index
    %6 = vector.load %arg2[%c0_7, %c0_8] : memref<48x32xf32, #tpu.memory_space<vmem>>, vector<48x32xf32>
    %7 = arith.addf %5, %6 : vector<48x32xf32>
    %8 = vector.extract_strided_slice %0 {offsets = [0, 0], sizes = [1, 256], strides = [1, 1]} : vector<24x256xf32> to vector<1x256xf32>
    %9 = vector.extract_strided_slice %0 {offsets = [1, 0], sizes = [1, 32], strides = [1, 1]} : vector<24x256xf32> to vector<1x32xf32>
    %10 = vector.extract_strided_slice %0 {offsets = [2, 0], sizes = [1, 32], strides = [1, 1]} : vector<24x256xf32> to vector<1x32xf32>
    %11 = vector.extract_strided_slice %0 {offsets = [3, 0], sizes = [1, 32], strides = [1, 1]} : vector<24x256xf32> to vector<1x32xf32>
    %12 = vector.extract_strided_slice %0 {offsets = [4, 0], sizes = [1, 64], strides = [1, 1]} : vector<24x256xf32> to vector<1x64xf32>
    %13 = vector.extract_strided_slice %0 {offsets = [5, 0], sizes = [1, 32], strides = [1, 1]} : vector<24x256xf32> to vector<1x32xf32>
    %14 = vector.extract_strided_slice %0 {offsets = [6, 0], sizes = [1, 32], strides = [1, 1]} : vector<24x256xf32> to vector<1x32xf32>
    %15 = vector.extract_strided_slice %0 {offsets = [7, 0], sizes = [1, 32], strides = [1, 1]} : vector<24x256xf32> to vector<1x32xf32>
    %16 = arith.truncf %7 : vector<48x32xf32> to vector<48x32xbf16>
    %c0_9 = arith.constant 0 : index
    %c0_10 = arith.constant 0 : index
    %c0_11 = arith.constant 0 : index
    %17 = vector.load %arg5[%c0_9, %c0_10, %c0_11] : memref<2x32x256xbf16, #tpu.memory_space<vmem>>, vector<1x32x256xbf16>
    %18 = vector.shape_cast %17 : vector<1x32x256xbf16> to vector<32x256xbf16>
    %cst_12 = arith.constant dense<0.000000e+00> : vector<48x256xf32>
    %19 = tpu.matmul %16, %18, %cst_12 {dimension_numbers = #tpu.dot_dimension_numbers<[1], [0], [0], [1], [0, 0, 1, 1], [], []>} : vector<48x32xbf16>, vector<32x256xbf16>, vector<48x256xf32> -> vector<48x256xf32>
    %20 = vector.broadcast %8 : vector<1x256xf32> to vector<48x256xf32>
    %21 = arith.addf %19, %20 : vector<48x256xf32>
    %cst_13 = arith.constant 0.000000e+00 : f32
    %22 = vector.broadcast %cst_13 : f32 to vector<48x32xf32>
    %23 = vector.extract_strided_slice %21 {offsets = [0, 0], sizes = [48, 32], strides = [1, 1]} : vector<48x256xf32> to vector<48x32xf32>
    %24 = vector.extract_strided_slice %21 {offsets = [0, 128], sizes = [48, 32], strides = [1, 1]} : vector<48x256xf32> to vector<48x32xf32>
    %cst_14 = arith.constant dense<0.000000e+00> : vector<48x48xf32>
    %25 = tpu.matmul %23, %7, %cst_14 {dimension_numbers = #tpu.dot_dimension_numbers<[1], [1], [0], [0], [0, 0, 1, 0], [], []>} : vector<48x32xf32>, vector<48x32xf32>, vector<48x48xf32> -> vector<48x48xf32>
    %26 = arith.addf %25, %1 : vector<48x48xf32>
    %cst_15 = arith.constant dense<0xFF800000> : vector<48xf32>
    %27 = vector.multi_reduction <maximumf>, %26, %cst_15 [1] : vector<48x48xf32> to vector<48xf32>
    %28 = vector.shape_cast %27 : vector<48xf32> to vector<48x1xf32>
    %29 = vector.broadcast %28 : vector<48x1xf32> to vector<48x48xf32>
    %30 = arith.subf %26, %29 : vector<48x48xf32>
    %31 = math.exp %30 : vector<48x48xf32>
    %cst_16 = arith.constant dense<0.000000e+00> : vector<48xf32>
    %32 = vector.multi_reduction <add>, %31, %cst_16 [1] : vector<48x48xf32> to vector<48xf32>
    %33 = vector.shape_cast %32 : vector<48xf32> to vector<48x1xf32>
    %34 = tpu.reciprocal %33 {approx = true} : vector<48x1xf32> -> vector<48x1xf32>
    %35 = vector.broadcast %34 : vector<48x1xf32> to vector<48x48xf32>
    %36 = arith.mulf %31, %35 : vector<48x48xf32>
    %cst_17 = arith.constant dense<0.000000e+00> : vector<48x32xf32>
    %37 = tpu.matmul %36, %24, %cst_17 {dimension_numbers = #tpu.dot_dimension_numbers<[1], [0], [0], [1], [0, 0, 1, 1], [], []>} : vector<48x48xf32>, vector<48x32xf32>, vector<48x32xf32> -> vector<48x32xf32>
    %38 = arith.addf %22, %37 : vector<48x32xf32>
    %39 = vector.extract_strided_slice %21 {offsets = [0, 32], sizes = [48, 32], strides = [1, 1]} : vector<48x256xf32> to vector<48x32xf32>
    %40 = vector.extract_strided_slice %21 {offsets = [0, 160], sizes = [48, 32], strides = [1, 1]} : vector<48x256xf32> to vector<48x32xf32>
    %cst_18 = arith.constant dense<0.000000e+00> : vector<48x48xf32>
    %41 = tpu.matmul %39, %7, %cst_18 {dimension_numbers = #tpu.dot_dimension_numbers<[1], [1], [0], [0], [0, 0, 1, 0], [], []>} : vector<48x32xf32>, vector<48x32xf32>, vector<48x48xf32> -> vector<48x48xf32>
    %42 = arith.addf %41, %1 : vector<48x48xf32>
    %cst_19 = arith.constant dense<0xFF800000> : vector<48xf32>
    %43 = vector.multi_reduction <maximumf>, %42, %cst_19 [1] : vector<48x48xf32> to vector<48xf32>
    %44 = vector.shape_cast %43 : vector<48xf32> to vector<48x1xf32>
    %45 = vector.broadcast %44 : vector<48x1xf32> to vector<48x48xf32>
    %46 = arith.subf %42, %45 : vector<48x48xf32>
    %47 = math.exp %46 : vector<48x48xf32>
    %cst_20 = arith.constant dense<0.000000e+00> : vector<48xf32>
    %48 = vector.multi_reduction <add>, %47, %cst_20 [1] : vector<48x48xf32> to vector<48xf32>
    %49 = vector.shape_cast %48 : vector<48xf32> to vector<48x1xf32>
    %50 = tpu.reciprocal %49 {approx = true} : vector<48x1xf32> -> vector<48x1xf32>
    %51 = vector.broadcast %50 : vector<48x1xf32> to vector<48x48xf32>
    %52 = arith.mulf %47, %51 : vector<48x48xf32>
    %cst_21 = arith.constant dense<0.000000e+00> : vector<48x32xf32>
    %53 = tpu.matmul %52, %40, %cst_21 {dimension_numbers = #tpu.dot_dimension_numbers<[1], [0], [0], [1], [0, 0, 1, 1], [], []>} : vector<48x48xf32>, vector<48x32xf32>, vector<48x32xf32> -> vector<48x32xf32>
    %54 = arith.addf %38, %53 : vector<48x32xf32>
    %55 = vector.extract_strided_slice %21 {offsets = [0, 64], sizes = [48, 32], strides = [1, 1]} : vector<48x256xf32> to vector<48x32xf32>
    %56 = vector.extract_strided_slice %21 {offsets = [0, 192], sizes = [48, 32], strides = [1, 1]} : vector<48x256xf32> to vector<48x32xf32>
    %cst_22 = arith.constant dense<0.000000e+00> : vector<48x48xf32>
    %57 = tpu.matmul %55, %7, %cst_22 {dimension_numbers = #tpu.dot_dimension_numbers<[1], [1], [0], [0], [0, 0, 1, 0], [], []>} : vector<48x32xf32>, vector<48x32xf32>, vector<48x48xf32> -> vector<48x48xf32>
    %58 = arith.addf %57, %1 : vector<48x48xf32>
    %cst_23 = arith.constant dense<0xFF800000> : vector<48xf32>
    %59 = vector.multi_reduction <maximumf>, %58, %cst_23 [1] : vector<48x48xf32> to vector<48xf32>
    %60 = vector.shape_cast %59 : vector<48xf32> to vector<48x1xf32>
    %61 = vector.broadcast %60 : vector<48x1xf32> to vector<48x48xf32>
    %62 = arith.subf %58, %61 : vector<48x48xf32>
    %63 = math.exp %62 : vector<48x48xf32>
    %cst_24 = arith.constant dense<0.000000e+00> : vector<48xf32>
    %64 = vector.multi_reduction <add>, %63, %cst_24 [1] : vector<48x48xf32> to vector<48xf32>
    %65 = vector.shape_cast %64 : vector<48xf32> to vector<48x1xf32>
    %66 = tpu.reciprocal %65 {approx = true} : vector<48x1xf32> -> vector<48x1xf32>
    %67 = vector.broadcast %66 : vector<48x1xf32> to vector<48x48xf32>
    %68 = arith.mulf %63, %67 : vector<48x48xf32>
    %cst_25 = arith.constant dense<0.000000e+00> : vector<48x32xf32>
    %69 = tpu.matmul %68, %56, %cst_25 {dimension_numbers = #tpu.dot_dimension_numbers<[1], [0], [0], [1], [0, 0, 1, 1], [], []>} : vector<48x48xf32>, vector<48x32xf32>, vector<48x32xf32> -> vector<48x32xf32>
    %70 = arith.addf %54, %69 : vector<48x32xf32>
    %71 = vector.extract_strided_slice %21 {offsets = [0, 96], sizes = [48, 32], strides = [1, 1]} : vector<48x256xf32> to vector<48x32xf32>
    %72 = vector.extract_strided_slice %21 {offsets = [0, 224], sizes = [48, 32], strides = [1, 1]} : vector<48x256xf32> to vector<48x32xf32>
    %cst_26 = arith.constant dense<0.000000e+00> : vector<48x48xf32>
    %73 = tpu.matmul %71, %7, %cst_26 {dimension_numbers = #tpu.dot_dimension_numbers<[1], [1], [0], [0], [0, 0, 1, 0], [], []>} : vector<48x32xf32>, vector<48x32xf32>, vector<48x48xf32> -> vector<48x48xf32>
    %74 = arith.addf %73, %1 : vector<48x48xf32>
    %cst_27 = arith.constant dense<0xFF800000> : vector<48xf32>
    %75 = vector.multi_reduction <maximumf>, %74, %cst_27 [1] : vector<48x48xf32> to vector<48xf32>
    %76 = vector.shape_cast %75 : vector<48xf32> to vector<48x1xf32>
    %77 = vector.broadcast %76 : vector<48x1xf32> to vector<48x48xf32>
    %78 = arith.subf %74, %77 : vector<48x48xf32>
    %79 = math.exp %78 : vector<48x48xf32>
    %cst_28 = arith.constant dense<0.000000e+00> : vector<48xf32>
    %80 = vector.multi_reduction <add>, %79, %cst_28 [1] : vector<48x48xf32> to vector<48xf32>
    %81 = vector.shape_cast %80 : vector<48xf32> to vector<48x1xf32>
    %82 = tpu.reciprocal %81 {approx = true} : vector<48x1xf32> -> vector<48x1xf32>
    %83 = vector.broadcast %82 : vector<48x1xf32> to vector<48x48xf32>
    %84 = arith.mulf %79, %83 : vector<48x48xf32>
    %cst_29 = arith.constant dense<0.000000e+00> : vector<48x32xf32>
    %85 = tpu.matmul %84, %72, %cst_29 {dimension_numbers = #tpu.dot_dimension_numbers<[1], [0], [0], [1], [0, 0, 1, 1], [], []>} : vector<48x48xf32>, vector<48x32xf32>, vector<48x32xf32> -> vector<48x32xf32>
    %86 = arith.addf %70, %85 : vector<48x32xf32>
    %87 = vector.broadcast %9 : vector<1x32xf32> to vector<48x32xf32>
    %88 = arith.addf %86, %87 : vector<48x32xf32>
    %89 = arith.addf %7, %88 : vector<48x32xf32>
    %cst_30 = arith.constant dense<0.000000e+00> : vector<48xf32>
    %90 = vector.multi_reduction <add>, %89, %cst_30 [1] : vector<48x32xf32> to vector<48xf32>
    %91 = vector.shape_cast %90 : vector<48xf32> to vector<48x1xf32>
    %cst_31 = arith.constant 3.200000e+01 : f32
    %92 = vector.broadcast %cst_31 : f32 to vector<48x1xf32>
    %93 = arith.divf %91, %92 : vector<48x1xf32>
    %94 = vector.broadcast %93 : vector<48x1xf32> to vector<48x32xf32>
    %95 = arith.subf %89, %94 : vector<48x32xf32>
    %96 = arith.mulf %95, %95 : vector<48x32xf32>
    %cst_32 = arith.constant dense<0.000000e+00> : vector<48xf32>
    %97 = vector.multi_reduction <add>, %96, %cst_32 [1] : vector<48x32xf32> to vector<48xf32>
    %98 = vector.shape_cast %97 : vector<48xf32> to vector<48x1xf32>
    %cst_33 = arith.constant 3.200000e+01 : f32
    %99 = vector.broadcast %cst_33 : f32 to vector<48x1xf32>
    %100 = arith.divf %98, %99 : vector<48x1xf32>
    %101 = vector.broadcast %93 : vector<48x1xf32> to vector<48x32xf32>
    %102 = arith.subf %89, %101 : vector<48x32xf32>
    %cst_34 = arith.constant 9.99999974E-6 : f32
    %103 = vector.broadcast %cst_34 : f32 to vector<48x1xf32>
    %104 = arith.addf %100, %103 : vector<48x1xf32>
    %105 = math.rsqrt %104 : vector<48x1xf32>
    %106 = vector.broadcast %105 : vector<48x1xf32> to vector<48x32xf32>
    %107 = arith.mulf %102, %106 : vector<48x32xf32>
    %108 = vector.broadcast %10 : vector<1x32xf32> to vector<48x32xf32>
    %109 = arith.mulf %107, %108 : vector<48x32xf32>
    %110 = vector.broadcast %11 : vector<1x32xf32> to vector<48x32xf32>
    %111 = arith.addf %109, %110 : vector<48x32xf32>
    %112 = arith.truncf %111 : vector<48x32xf32> to vector<48x32xbf16>
    %c0_35 = arith.constant 0 : index
    %c0_36 = arith.constant 0 : index
    %c0_37 = arith.constant 0 : index
    %113 = vector.load %arg6[%c0_35, %c0_36, %c0_37] : memref<2x32x64xbf16, #tpu.memory_space<vmem>>, vector<1x32x64xbf16>
    %114 = vector.shape_cast %113 : vector<1x32x64xbf16> to vector<32x64xbf16>
    %cst_38 = arith.constant dense<0.000000e+00> : vector<48x64xf32>
    %115 = tpu.matmul %112, %114, %cst_38 {dimension_numbers = #tpu.dot_dimension_numbers<[1], [0], [0], [1], [0, 0, 1, 1], [], []>} : vector<48x32xbf16>, vector<32x64xbf16>, vector<48x64xf32> -> vector<48x64xf32>
    %116 = vector.broadcast %12 : vector<1x64xf32> to vector<48x64xf32>
    %117 = arith.addf %115, %116 : vector<48x64xf32>
    %cst_39 = arith.constant 5.000000e-01 : f32
    %118 = vector.broadcast %cst_39 : f32 to vector<48x64xf32>
    %119 = arith.mulf %118, %117 : vector<48x64xf32>
    %cst_40 = arith.constant 4.471500e-02 : f32
    %120 = vector.broadcast %cst_40 : f32 to vector<48x64xf32>
    %121 = arith.mulf %120, %117 : vector<48x64xf32>
    %122 = arith.mulf %121, %117 : vector<48x64xf32>
    %123 = arith.mulf %122, %117 : vector<48x64xf32>
    %124 = arith.addf %117, %123 : vector<48x64xf32>
    %cst_41 = arith.constant 0.797884583 : f32
    %125 = vector.broadcast %cst_41 : f32 to vector<48x64xf32>
    %126 = arith.mulf %125, %124 : vector<48x64xf32>
    %127 = math.tanh %126 : vector<48x64xf32>
    %cst_42 = arith.constant 1.000000e+00 : f32
    %128 = vector.broadcast %cst_42 : f32 to vector<48x64xf32>
    %129 = arith.addf %128, %127 : vector<48x64xf32>
    %130 = arith.mulf %119, %129 : vector<48x64xf32>
    %131 = arith.truncf %130 : vector<48x64xf32> to vector<48x64xbf16>
    %c0_43 = arith.constant 0 : index
    %c0_44 = arith.constant 0 : index
    %c0_45 = arith.constant 0 : index
    %132 = vector.load %arg7[%c0_43, %c0_44, %c0_45] : memref<2x64x32xbf16, #tpu.memory_space<vmem>>, vector<1x64x32xbf16>
    %133 = vector.shape_cast %132 : vector<1x64x32xbf16> to vector<64x32xbf16>
    %cst_46 = arith.constant dense<0.000000e+00> : vector<48x32xf32>
    %134 = tpu.matmul %131, %133, %cst_46 {dimension_numbers = #tpu.dot_dimension_numbers<[1], [0], [0], [1], [0, 0, 1, 1], [], []>} : vector<48x64xbf16>, vector<64x32xbf16>, vector<48x32xf32> -> vector<48x32xf32>
    %135 = vector.broadcast %13 : vector<1x32xf32> to vector<48x32xf32>
    %136 = arith.addf %134, %135 : vector<48x32xf32>
    %137 = arith.addf %111, %136 : vector<48x32xf32>
    %cst_47 = arith.constant dense<0.000000e+00> : vector<48xf32>
    %138 = vector.multi_reduction <add>, %137, %cst_47 [1] : vector<48x32xf32> to vector<48xf32>
    %139 = vector.shape_cast %138 : vector<48xf32> to vector<48x1xf32>
    %cst_48 = arith.constant 3.200000e+01 : f32
    %140 = vector.broadcast %cst_48 : f32 to vector<48x1xf32>
    %141 = arith.divf %139, %140 : vector<48x1xf32>
    %142 = vector.broadcast %141 : vector<48x1xf32> to vector<48x32xf32>
    %143 = arith.subf %137, %142 : vector<48x32xf32>
    %144 = arith.mulf %143, %143 : vector<48x32xf32>
    %cst_49 = arith.constant dense<0.000000e+00> : vector<48xf32>
    %145 = vector.multi_reduction <add>, %144, %cst_49 [1] : vector<48x32xf32> to vector<48xf32>
    %146 = vector.shape_cast %145 : vector<48xf32> to vector<48x1xf32>
    %cst_50 = arith.constant 3.200000e+01 : f32
    %147 = vector.broadcast %cst_50 : f32 to vector<48x1xf32>
    %148 = arith.divf %146, %147 : vector<48x1xf32>
    %149 = vector.broadcast %141 : vector<48x1xf32> to vector<48x32xf32>
    %150 = arith.subf %137, %149 : vector<48x32xf32>
    %cst_51 = arith.constant 9.99999974E-6 : f32
    %151 = vector.broadcast %cst_51 : f32 to vector<48x1xf32>
    %152 = arith.addf %148, %151 : vector<48x1xf32>
    %153 = math.rsqrt %152 : vector<48x1xf32>
    %154 = vector.broadcast %153 : vector<48x1xf32> to vector<48x32xf32>
    %155 = arith.mulf %150, %154 : vector<48x32xf32>
    %156 = vector.broadcast %14 : vector<1x32xf32> to vector<48x32xf32>
    %157 = arith.mulf %155, %156 : vector<48x32xf32>
    %158 = vector.broadcast %15 : vector<1x32xf32> to vector<48x32xf32>
    %159 = arith.addf %157, %158 : vector<48x32xf32>
    %160 = vector.extract_strided_slice %0 {offsets = [8, 0], sizes = [1, 256], strides = [1, 1]} : vector<24x256xf32> to vector<1x256xf32>
    %161 = vector.extract_strided_slice %0 {offsets = [9, 0], sizes = [1, 32], strides = [1, 1]} : vector<24x256xf32> to vector<1x32xf32>
    %162 = vector.extract_strided_slice %0 {offsets = [10, 0], sizes = [1, 32], strides = [1, 1]} : vector<24x256xf32> to vector<1x32xf32>
    %163 = vector.extract_strided_slice %0 {offsets = [11, 0], sizes = [1, 32], strides = [1, 1]} : vector<24x256xf32> to vector<1x32xf32>
    %164 = vector.extract_strided_slice %0 {offsets = [12, 0], sizes = [1, 64], strides = [1, 1]} : vector<24x256xf32> to vector<1x64xf32>
    %165 = vector.extract_strided_slice %0 {offsets = [13, 0], sizes = [1, 32], strides = [1, 1]} : vector<24x256xf32> to vector<1x32xf32>
    %166 = vector.extract_strided_slice %0 {offsets = [14, 0], sizes = [1, 32], strides = [1, 1]} : vector<24x256xf32> to vector<1x32xf32>
    %167 = vector.extract_strided_slice %0 {offsets = [15, 0], sizes = [1, 32], strides = [1, 1]} : vector<24x256xf32> to vector<1x32xf32>
    %168 = arith.truncf %159 : vector<48x32xf32> to vector<48x32xbf16>
    %c1 = arith.constant 1 : index
    %c0_52 = arith.constant 0 : index
    %c0_53 = arith.constant 0 : index
    %169 = vector.load %arg5[%c1, %c0_52, %c0_53] : memref<2x32x256xbf16, #tpu.memory_space<vmem>>, vector<1x32x256xbf16>
    %170 = vector.shape_cast %169 : vector<1x32x256xbf16> to vector<32x256xbf16>
    %cst_54 = arith.constant dense<0.000000e+00> : vector<48x256xf32>
    %171 = tpu.matmul %168, %170, %cst_54 {dimension_numbers = #tpu.dot_dimension_numbers<[1], [0], [0], [1], [0, 0, 1, 1], [], []>} : vector<48x32xbf16>, vector<32x256xbf16>, vector<48x256xf32> -> vector<48x256xf32>
    %172 = vector.broadcast %160 : vector<1x256xf32> to vector<48x256xf32>
    %173 = arith.addf %171, %172 : vector<48x256xf32>
    %cst_55 = arith.constant 0.000000e+00 : f32
    %174 = vector.broadcast %cst_55 : f32 to vector<48x32xf32>
    %175 = vector.extract_strided_slice %173 {offsets = [0, 0], sizes = [48, 32], strides = [1, 1]} : vector<48x256xf32> to vector<48x32xf32>
    %176 = vector.extract_strided_slice %173 {offsets = [0, 128], sizes = [48, 32], strides = [1, 1]} : vector<48x256xf32> to vector<48x32xf32>
    %cst_56 = arith.constant dense<0.000000e+00> : vector<48x48xf32>
    %177 = tpu.matmul %175, %159, %cst_56 {dimension_numbers = #tpu.dot_dimension_numbers<[1], [1], [0], [0], [0, 0, 1, 0], [], []>} : vector<48x32xf32>, vector<48x32xf32>, vector<48x48xf32> -> vector<48x48xf32>
    %178 = arith.addf %177, %1 : vector<48x48xf32>
    %cst_57 = arith.constant dense<0xFF800000> : vector<48xf32>
    %179 = vector.multi_reduction <maximumf>, %178, %cst_57 [1] : vector<48x48xf32> to vector<48xf32>
    %180 = vector.shape_cast %179 : vector<48xf32> to vector<48x1xf32>
    %181 = vector.broadcast %180 : vector<48x1xf32> to vector<48x48xf32>
    %182 = arith.subf %178, %181 : vector<48x48xf32>
    %183 = math.exp %182 : vector<48x48xf32>
    %cst_58 = arith.constant dense<0.000000e+00> : vector<48xf32>
    %184 = vector.multi_reduction <add>, %183, %cst_58 [1] : vector<48x48xf32> to vector<48xf32>
    %185 = vector.shape_cast %184 : vector<48xf32> to vector<48x1xf32>
    %186 = tpu.reciprocal %185 {approx = true} : vector<48x1xf32> -> vector<48x1xf32>
    %187 = vector.broadcast %186 : vector<48x1xf32> to vector<48x48xf32>
    %188 = arith.mulf %183, %187 : vector<48x48xf32>
    %cst_59 = arith.constant dense<0.000000e+00> : vector<48x32xf32>
    %189 = tpu.matmul %188, %176, %cst_59 {dimension_numbers = #tpu.dot_dimension_numbers<[1], [0], [0], [1], [0, 0, 1, 1], [], []>} : vector<48x48xf32>, vector<48x32xf32>, vector<48x32xf32> -> vector<48x32xf32>
    %190 = arith.addf %174, %189 : vector<48x32xf32>
    %191 = vector.extract_strided_slice %173 {offsets = [0, 32], sizes = [48, 32], strides = [1, 1]} : vector<48x256xf32> to vector<48x32xf32>
    %192 = vector.extract_strided_slice %173 {offsets = [0, 160], sizes = [48, 32], strides = [1, 1]} : vector<48x256xf32> to vector<48x32xf32>
    %cst_60 = arith.constant dense<0.000000e+00> : vector<48x48xf32>
    %193 = tpu.matmul %191, %159, %cst_60 {dimension_numbers = #tpu.dot_dimension_numbers<[1], [1], [0], [0], [0, 0, 1, 0], [], []>} : vector<48x32xf32>, vector<48x32xf32>, vector<48x48xf32> -> vector<48x48xf32>
    %194 = arith.addf %193, %1 : vector<48x48xf32>
    %cst_61 = arith.constant dense<0xFF800000> : vector<48xf32>
    %195 = vector.multi_reduction <maximumf>, %194, %cst_61 [1] : vector<48x48xf32> to vector<48xf32>
    %196 = vector.shape_cast %195 : vector<48xf32> to vector<48x1xf32>
    %197 = vector.broadcast %196 : vector<48x1xf32> to vector<48x48xf32>
    %198 = arith.subf %194, %197 : vector<48x48xf32>
    %199 = math.exp %198 : vector<48x48xf32>
    %cst_62 = arith.constant dense<0.000000e+00> : vector<48xf32>
    %200 = vector.multi_reduction <add>, %199, %cst_62 [1] : vector<48x48xf32> to vector<48xf32>
    %201 = vector.shape_cast %200 : vector<48xf32> to vector<48x1xf32>
    %202 = tpu.reciprocal %201 {approx = true} : vector<48x1xf32> -> vector<48x1xf32>
    %203 = vector.broadcast %202 : vector<48x1xf32> to vector<48x48xf32>
    %204 = arith.mulf %199, %203 : vector<48x48xf32>
    %cst_63 = arith.constant dense<0.000000e+00> : vector<48x32xf32>
    %205 = tpu.matmul %204, %192, %cst_63 {dimension_numbers = #tpu.dot_dimension_numbers<[1], [0], [0], [1], [0, 0, 1, 1], [], []>} : vector<48x48xf32>, vector<48x32xf32>, vector<48x32xf32> -> vector<48x32xf32>
    %206 = arith.addf %190, %205 : vector<48x32xf32>
    %207 = vector.extract_strided_slice %173 {offsets = [0, 64], sizes = [48, 32], strides = [1, 1]} : vector<48x256xf32> to vector<48x32xf32>
    %208 = vector.extract_strided_slice %173 {offsets = [0, 192], sizes = [48, 32], strides = [1, 1]} : vector<48x256xf32> to vector<48x32xf32>
    %cst_64 = arith.constant dense<0.000000e+00> : vector<48x48xf32>
    %209 = tpu.matmul %207, %159, %cst_64 {dimension_numbers = #tpu.dot_dimension_numbers<[1], [1], [0], [0], [0, 0, 1, 0], [], []>} : vector<48x32xf32>, vector<48x32xf32>, vector<48x48xf32> -> vector<48x48xf32>
    %210 = arith.addf %209, %1 : vector<48x48xf32>
    %cst_65 = arith.constant dense<0xFF800000> : vector<48xf32>
    %211 = vector.multi_reduction <maximumf>, %210, %cst_65 [1] : vector<48x48xf32> to vector<48xf32>
    %212 = vector.shape_cast %211 : vector<48xf32> to vector<48x1xf32>
    %213 = vector.broadcast %212 : vector<48x1xf32> to vector<48x48xf32>
    %214 = arith.subf %210, %213 : vector<48x48xf32>
    %215 = math.exp %214 : vector<48x48xf32>
    %cst_66 = arith.constant dense<0.000000e+00> : vector<48xf32>
    %216 = vector.multi_reduction <add>, %215, %cst_66 [1] : vector<48x48xf32> to vector<48xf32>
    %217 = vector.shape_cast %216 : vector<48xf32> to vector<48x1xf32>
    %218 = tpu.reciprocal %217 {approx = true} : vector<48x1xf32> -> vector<48x1xf32>
    %219 = vector.broadcast %218 : vector<48x1xf32> to vector<48x48xf32>
    %220 = arith.mulf %215, %219 : vector<48x48xf32>
    %cst_67 = arith.constant dense<0.000000e+00> : vector<48x32xf32>
    %221 = tpu.matmul %220, %208, %cst_67 {dimension_numbers = #tpu.dot_dimension_numbers<[1], [0], [0], [1], [0, 0, 1, 1], [], []>} : vector<48x48xf32>, vector<48x32xf32>, vector<48x32xf32> -> vector<48x32xf32>
    %222 = arith.addf %206, %221 : vector<48x32xf32>
    %223 = vector.extract_strided_slice %173 {offsets = [0, 96], sizes = [48, 32], strides = [1, 1]} : vector<48x256xf32> to vector<48x32xf32>
    %224 = vector.extract_strided_slice %173 {offsets = [0, 224], sizes = [48, 32], strides = [1, 1]} : vector<48x256xf32> to vector<48x32xf32>
    %cst_68 = arith.constant dense<0.000000e+00> : vector<48x48xf32>
    %225 = tpu.matmul %223, %159, %cst_68 {dimension_numbers = #tpu.dot_dimension_numbers<[1], [1], [0], [0], [0, 0, 1, 0], [], []>} : vector<48x32xf32>, vector<48x32xf32>, vector<48x48xf32> -> vector<48x48xf32>
    %226 = arith.addf %225, %1 : vector<48x48xf32>
    %cst_69 = arith.constant dense<0xFF800000> : vector<48xf32>
    %227 = vector.multi_reduction <maximumf>, %226, %cst_69 [1] : vector<48x48xf32> to vector<48xf32>
    %228 = vector.shape_cast %227 : vector<48xf32> to vector<48x1xf32>
    %229 = vector.broadcast %228 : vector<48x1xf32> to vector<48x48xf32>
    %230 = arith.subf %226, %229 : vector<48x48xf32>
    %231 = math.exp %230 : vector<48x48xf32>
    %cst_70 = arith.constant dense<0.000000e+00> : vector<48xf32>
    %232 = vector.multi_reduction <add>, %231, %cst_70 [1] : vector<48x48xf32> to vector<48xf32>
    %233 = vector.shape_cast %232 : vector<48xf32> to vector<48x1xf32>
    %234 = tpu.reciprocal %233 {approx = true} : vector<48x1xf32> -> vector<48x1xf32>
    %235 = vector.broadcast %234 : vector<48x1xf32> to vector<48x48xf32>
    %236 = arith.mulf %231, %235 : vector<48x48xf32>
    %cst_71 = arith.constant dense<0.000000e+00> : vector<48x32xf32>
    %237 = tpu.matmul %236, %224, %cst_71 {dimension_numbers = #tpu.dot_dimension_numbers<[1], [0], [0], [1], [0, 0, 1, 1], [], []>} : vector<48x48xf32>, vector<48x32xf32>, vector<48x32xf32> -> vector<48x32xf32>
    %238 = arith.addf %222, %237 : vector<48x32xf32>
    %239 = vector.broadcast %161 : vector<1x32xf32> to vector<48x32xf32>
    %240 = arith.addf %238, %239 : vector<48x32xf32>
    %241 = arith.addf %159, %240 : vector<48x32xf32>
    %cst_72 = arith.constant dense<0.000000e+00> : vector<48xf32>
    %242 = vector.multi_reduction <add>, %241, %cst_72 [1] : vector<48x32xf32> to vector<48xf32>
    %243 = vector.shape_cast %242 : vector<48xf32> to vector<48x1xf32>
    %cst_73 = arith.constant 3.200000e+01 : f32
    %244 = vector.broadcast %cst_73 : f32 to vector<48x1xf32>
    %245 = arith.divf %243, %244 : vector<48x1xf32>
    %246 = vector.broadcast %245 : vector<48x1xf32> to vector<48x32xf32>
    %247 = arith.subf %241, %246 : vector<48x32xf32>
    %248 = arith.mulf %247, %247 : vector<48x32xf32>
    %cst_74 = arith.constant dense<0.000000e+00> : vector<48xf32>
    %249 = vector.multi_reduction <add>, %248, %cst_74 [1] : vector<48x32xf32> to vector<48xf32>
    %250 = vector.shape_cast %249 : vector<48xf32> to vector<48x1xf32>
    %cst_75 = arith.constant 3.200000e+01 : f32
    %251 = vector.broadcast %cst_75 : f32 to vector<48x1xf32>
    %252 = arith.divf %250, %251 : vector<48x1xf32>
    %253 = vector.broadcast %245 : vector<48x1xf32> to vector<48x32xf32>
    %254 = arith.subf %241, %253 : vector<48x32xf32>
    %cst_76 = arith.constant 9.99999974E-6 : f32
    %255 = vector.broadcast %cst_76 : f32 to vector<48x1xf32>
    %256 = arith.addf %252, %255 : vector<48x1xf32>
    %257 = math.rsqrt %256 : vector<48x1xf32>
    %258 = vector.broadcast %257 : vector<48x1xf32> to vector<48x32xf32>
    %259 = arith.mulf %254, %258 : vector<48x32xf32>
    %260 = vector.broadcast %162 : vector<1x32xf32> to vector<48x32xf32>
    %261 = arith.mulf %259, %260 : vector<48x32xf32>
    %262 = vector.broadcast %163 : vector<1x32xf32> to vector<48x32xf32>
    %263 = arith.addf %261, %262 : vector<48x32xf32>
    %264 = arith.truncf %263 : vector<48x32xf32> to vector<48x32xbf16>
    %c1_77 = arith.constant 1 : index
    %c0_78 = arith.constant 0 : index
    %c0_79 = arith.constant 0 : index
    %265 = vector.load %arg6[%c1_77, %c0_78, %c0_79] : memref<2x32x64xbf16, #tpu.memory_space<vmem>>, vector<1x32x64xbf16>
    %266 = vector.shape_cast %265 : vector<1x32x64xbf16> to vector<32x64xbf16>
    %cst_80 = arith.constant dense<0.000000e+00> : vector<48x64xf32>
    %267 = tpu.matmul %264, %266, %cst_80 {dimension_numbers = #tpu.dot_dimension_numbers<[1], [0], [0], [1], [0, 0, 1, 1], [], []>} : vector<48x32xbf16>, vector<32x64xbf16>, vector<48x64xf32> -> vector<48x64xf32>
    %268 = vector.broadcast %164 : vector<1x64xf32> to vector<48x64xf32>
    %269 = arith.addf %267, %268 : vector<48x64xf32>
    %cst_81 = arith.constant 5.000000e-01 : f32
    %270 = vector.broadcast %cst_81 : f32 to vector<48x64xf32>
    %271 = arith.mulf %270, %269 : vector<48x64xf32>
    %cst_82 = arith.constant 4.471500e-02 : f32
    %272 = vector.broadcast %cst_82 : f32 to vector<48x64xf32>
    %273 = arith.mulf %272, %269 : vector<48x64xf32>
    %274 = arith.mulf %273, %269 : vector<48x64xf32>
    %275 = arith.mulf %274, %269 : vector<48x64xf32>
    %276 = arith.addf %269, %275 : vector<48x64xf32>
    %cst_83 = arith.constant 0.797884583 : f32
    %277 = vector.broadcast %cst_83 : f32 to vector<48x64xf32>
    %278 = arith.mulf %277, %276 : vector<48x64xf32>
    %279 = math.tanh %278 : vector<48x64xf32>
    %cst_84 = arith.constant 1.000000e+00 : f32
    %280 = vector.broadcast %cst_84 : f32 to vector<48x64xf32>
    %281 = arith.addf %280, %279 : vector<48x64xf32>
    %282 = arith.mulf %271, %281 : vector<48x64xf32>
    %283 = arith.truncf %282 : vector<48x64xf32> to vector<48x64xbf16>
    %c1_85 = arith.constant 1 : index
    %c0_86 = arith.constant 0 : index
    %c0_87 = arith.constant 0 : index
    %284 = vector.load %arg7[%c1_85, %c0_86, %c0_87] : memref<2x64x32xbf16, #tpu.memory_space<vmem>>, vector<1x64x32xbf16>
    %285 = vector.shape_cast %284 : vector<1x64x32xbf16> to vector<64x32xbf16>
    %cst_88 = arith.constant dense<0.000000e+00> : vector<48x32xf32>
    %286 = tpu.matmul %283, %285, %cst_88 {dimension_numbers = #tpu.dot_dimension_numbers<[1], [0], [0], [1], [0, 0, 1, 1], [], []>} : vector<48x64xbf16>, vector<64x32xbf16>, vector<48x32xf32> -> vector<48x32xf32>
    %287 = vector.broadcast %165 : vector<1x32xf32> to vector<48x32xf32>
    %288 = arith.addf %286, %287 : vector<48x32xf32>
    %289 = arith.addf %263, %288 : vector<48x32xf32>
    %cst_89 = arith.constant dense<0.000000e+00> : vector<48xf32>
    %290 = vector.multi_reduction <add>, %289, %cst_89 [1] : vector<48x32xf32> to vector<48xf32>
    %291 = vector.shape_cast %290 : vector<48xf32> to vector<48x1xf32>
    %cst_90 = arith.constant 3.200000e+01 : f32
    %292 = vector.broadcast %cst_90 : f32 to vector<48x1xf32>
    %293 = arith.divf %291, %292 : vector<48x1xf32>
    %294 = vector.broadcast %293 : vector<48x1xf32> to vector<48x32xf32>
    %295 = arith.subf %289, %294 : vector<48x32xf32>
    %296 = arith.mulf %295, %295 : vector<48x32xf32>
    %cst_91 = arith.constant dense<0.000000e+00> : vector<48xf32>
    %297 = vector.multi_reduction <add>, %296, %cst_91 [1] : vector<48x32xf32> to vector<48xf32>
    %298 = vector.shape_cast %297 : vector<48xf32> to vector<48x1xf32>
    %cst_92 = arith.constant 3.200000e+01 : f32
    %299 = vector.broadcast %cst_92 : f32 to vector<48x1xf32>
    %300 = arith.divf %298, %299 : vector<48x1xf32>
    %301 = vector.broadcast %293 : vector<48x1xf32> to vector<48x32xf32>
    %302 = arith.subf %289, %301 : vector<48x32xf32>
    %cst_93 = arith.constant 9.99999974E-6 : f32
    %303 = vector.broadcast %cst_93 : f32 to vector<48x1xf32>
    %304 = arith.addf %300, %303 : vector<48x1xf32>
    %305 = math.rsqrt %304 : vector<48x1xf32>
    %306 = vector.broadcast %305 : vector<48x1xf32> to vector<48x32xf32>
    %307 = arith.mulf %302, %306 : vector<48x32xf32>
    %308 = vector.broadcast %166 : vector<1x32xf32> to vector<48x32xf32>
    %309 = arith.mulf %307, %308 : vector<48x32xf32>
    %310 = vector.broadcast %167 : vector<1x32xf32> to vector<48x32xf32>
    %311 = arith.addf %309, %310 : vector<48x32xf32>
    %312 = vector.extract_strided_slice %311 {offsets = [0, 0], sizes = [1, 32], strides = [1, 1]} : vector<48x32xf32> to vector<1x32xf32>
    %313 = vector.extract_strided_slice %311 {offsets = [24, 0], sizes = [1, 32], strides = [1, 1]} : vector<48x32xf32> to vector<1x32xf32>
    %314 = tpu.concatenate %312, %313 in 0 : vector<1x32xf32>, vector<1x32xf32> -> vector<2x32xf32>
    %315 = vector.extract_strided_slice %0 {offsets = [16, 0], sizes = [1, 32], strides = [1, 1]} : vector<24x256xf32> to vector<1x32xf32>
    %316 = vector.extract_strided_slice %0 {offsets = [17, 0], sizes = [1, 32], strides = [1, 1]} : vector<24x256xf32> to vector<1x32xf32>
    %cst_94 = arith.constant dense<0.000000e+00> : vector<2xf32>
    %317 = vector.multi_reduction <add>, %314, %cst_94 [1] : vector<2x32xf32> to vector<2xf32>
    %318 = vector.shape_cast %317 : vector<2xf32> to vector<2x1xf32>
    %cst_95 = arith.constant 3.200000e+01 : f32
    %319 = vector.broadcast %cst_95 : f32 to vector<2x1xf32>
    %320 = arith.divf %318, %319 : vector<2x1xf32>
    %321 = vector.broadcast %320 : vector<2x1xf32> to vector<2x32xf32>
    %322 = arith.subf %314, %321 : vector<2x32xf32>
    %323 = arith.mulf %322, %322 : vector<2x32xf32>
    %cst_96 = arith.constant dense<0.000000e+00> : vector<2xf32>
    %324 = vector.multi_reduction <add>, %323, %cst_96 [1] : vector<2x32xf32> to vector<2xf32>
    %325 = vector.shape_cast %324 : vector<2xf32> to vector<2x1xf32>
    %cst_97 = arith.constant 3.200000e+01 : f32
    %326 = vector.broadcast %cst_97 : f32 to vector<2x1xf32>
    %327 = arith.divf %325, %326 : vector<2x1xf32>
    %328 = vector.broadcast %320 : vector<2x1xf32> to vector<2x32xf32>
    %329 = arith.subf %314, %328 : vector<2x32xf32>
    %cst_98 = arith.constant 9.99999974E-6 : f32
    %330 = vector.broadcast %cst_98 : f32 to vector<2x1xf32>
    %331 = arith.addf %327, %330 : vector<2x1xf32>
    %332 = math.rsqrt %331 : vector<2x1xf32>
    %333 = vector.broadcast %332 : vector<2x1xf32> to vector<2x32xf32>
    %334 = arith.mulf %329, %333 : vector<2x32xf32>
    %335 = vector.broadcast %315 : vector<1x32xf32> to vector<2x32xf32>
    %336 = arith.mulf %334, %335 : vector<2x32xf32>
    %337 = vector.broadcast %316 : vector<1x32xf32> to vector<2x32xf32>
    %338 = arith.addf %336, %337 : vector<2x32xf32>
    %339 = arith.truncf %338 : vector<2x32xf32> to vector<2x32xbf16>
    %c0_99 = arith.constant 0 : index
    %c0_100 = arith.constant 0 : index
    %340 = vector.load %arg8[%c0_99, %c0_100] : memref<32x128xbf16, #tpu.memory_space<vmem>>, vector<32x128xbf16>
    %cst_101 = arith.constant dense<0.000000e+00> : vector<2x128xf32>
    %341 = tpu.matmul %339, %340, %cst_101 {dimension_numbers = #tpu.dot_dimension_numbers<[1], [0], [0], [1], [0, 0, 1, 1], [], []>} : vector<2x32xbf16>, vector<32x128xbf16>, vector<2x128xf32> -> vector<2x128xf32>
    %342 = vector.extract_strided_slice %0 {offsets = [18, 0], sizes = [1, 128], strides = [1, 1]} : vector<24x256xf32> to vector<1x128xf32>
    %343 = vector.broadcast %342 : vector<1x128xf32> to vector<2x128xf32>
    %344 = arith.addf %341, %343 : vector<2x128xf32>
    %c0_102 = arith.constant 0 : index
    %c0_103 = arith.constant 0 : index
    %345 = vector.load %arg10[%c0_102, %c0_103] : memref<2x128xf32, #tpu.memory_space<vmem>>, vector<2x128xf32>
    tpu.vector_store %arg10[%c0_102, %c0_103], %344 {strides = array<i32>} : memref<2x128xf32, #tpu.memory_space<vmem>>, vector<2x128xf32>,
    return
  }
  func.func @transform_0(%arg0: i32) -> (i32, i32) {
    %c0_i32 = arith.constant 0 : i32
    %c0_i32_0 = arith.constant 0 : i32
    %c0_i32_1 = arith.constant 0 : i32
    return %c0_i32, %c0_i32_0 : i32, i32
  }
  func.func @transform_1(%arg0: i32) -> (i32, i32) {
    %c0_i32 = arith.constant 0 : i32
    %c0_i32_0 = arith.constant 0 : i32
    %c0_i32_1 = arith.constant 0 : i32
    return %c0_i32, %c0_i32_0 : i32, i32
  }
  func.func @transform_2(%arg0: i32) -> (i32, i32) {
    %c0_i32 = arith.constant 0 : i32
    %c0_i32_0 = arith.constant 0 : i32
    %c0_i32_1 = arith.constant 0 : i32
    return %c0_i32, %c0_i32_0 : i32, i32
  }
  func.func @transform_3(%arg0: i32) -> (i32, i32) {
    %c0_i32 = arith.constant 0 : i32
    %c0_i32_0 = arith.constant 0 : i32
    %c0_i32_1 = arith.constant 0 : i32
    return %c0_i32, %c0_i32_0 : i32, i32
  }
  func.func @transform_4(%arg0: i32) -> (i32, i32, i32) {
    %c0_i32 = arith.constant 0 : i32
    %c0_i32_0 = arith.constant 0 : i32
    %c0_i32_1 = arith.constant 0 : i32
    %c0_i32_2 = arith.constant 0 : i32
    return %c0_i32, %c0_i32_0, %c0_i32_1 : i32, i32, i32
  }
  func.func @transform_5(%arg0: i32) -> (i32, i32, i32) {
    %c0_i32 = arith.constant 0 : i32
    %c0_i32_0 = arith.constant 0 : i32
    %c0_i32_1 = arith.constant 0 : i32
    %c0_i32_2 = arith.constant 0 : i32
    return %c0_i32, %c0_i32_0, %c0_i32_1 : i32, i32, i32
  }
  func.func @transform_6(%arg0: i32) -> (i32, i32, i32) {
    %c0_i32 = arith.constant 0 : i32
    %c0_i32_0 = arith.constant 0 : i32
    %c0_i32_1 = arith.constant 0 : i32
    %c0_i32_2 = arith.constant 0 : i32
    return %c0_i32, %c0_i32_0, %c0_i32_1 : i32, i32, i32
  }
  func.func @transform_7(%arg0: i32) -> (i32, i32) {
    %c0_i32 = arith.constant 0 : i32
    %c0_i32_0 = arith.constant 0 : i32
    %c0_i32_1 = arith.constant 0 : i32
    return %c0_i32, %c0_i32_0 : i32, i32
  }
  func.func @transform_8(%arg0: i32) -> (i32, i32) {
    %c0_i32 = arith.constant 0 : i32
    %c0_i32_0 = arith.constant 0 : i32
    %c0_i32_1 = arith.constant 0 : i32
    return %c0_i32, %c0_i32_0 : i32, i32
  }
  func.func @transform_9(%arg0: i32) -> (i32, i32) {
    %c0_i32 = arith.constant 0 : i32
    %c0_i32_0 = arith.constant 0 : i32
    %c0_i32_1 = arith.constant 0 : i32
    return %c0_i32, %c0_i32_0 : i32, i32
  }
}

</mosaic_0001>

<bundles_post_ra>
// kernel: resize_forward.1
= control target key start
LH: loop header
LB: loop body
LE: loop exit
PB: predicated region body
PF: predicated region fallthrough
CT: control target
= control target key end

     0   :  { %v6966_v1 = vmov 0.0   ;;  %vm5467_vm0 = vmmov 0   ;;  %vm92_vm1 = vcmask 523264   ;;  %s6951_s0 = inlined_call_operand.vmem [shape: f32[48,64], index: 0, kind: input, shape index: {}]   ;;  %s6952_s1 = inlined_call_operand.vmem [shape: f32[48,32], index: 1, kind: input, shape index: {}]   ;;  %s6953_s2 = inlined_call_operand.vmem [shape: f32[48,48], index: 2, kind: input, shape index: {}]   ;;  %s6954_s3 = inlined_call_operand.vmem [shape: bf16[64,32], index: 3, kind: input, shape index: {}]   ;;  %s6955_s4 = inlined_call_operand.vmem [shape: bf16[2,32,256], index: 4, kind: input, shape index: {}]   ;;  %s6956_s5 = inlined_call_operand.vmem [shape: bf16[2,32,64], index: 5, kind: input, shape index: {}]   ;;  %s6957_s6 = inlined_call_operand.vmem [shape: bf16[2,64,32], index: 6, kind: input, shape index: {}]   ;;  %s6958_s7 = inlined_call_operand.vmem [shape: bf16[32,128], index: 7, kind: input, shape index: {}]   ;;  %s6959_s8 = inlined_call_operand.vmem [shape: f32[24,256], index: 8, kind: input, shape index: {}]   ;;  %s6960_s9 = inlined_call_operand.hbm [shape: f32[2,128], index: 9, kind: output, shape index: {}]  }
   0x1   :  { %v5146_v0 = vld [vmem:[%s6954_s3] sm:$0xff]   ;;  %4337 = vmatprep.subr.bf16.mxu0 %v6966_v1  ;;  %v5147_v2 = vld [vmem:[%s6954_s3 + $0x8] sm:$0xff]   ;;  %4345 = vmatprep.mubr.msk.bf16.mxu0 %vm5467_vm0, %v6966_v1  ;;  %v5148_v3 = vld [vmem:[%s6954_s3 + $0x10] sm:$0xff]  }
   0x2   :  { %4338 = vmatpush3.bf16.msra.mxu0 %v5146_v0  ;;  %v5150_v4 = vld [vmem:[%s6955_s4 + $0x4] ss:$8 sps:$4 sm:$0xff]   ;;  %v5152_v5 = vld [vmem:[%s6955_s4] ss:$8 sps:$4 sm:$0xff]   ;;  %v5149_v6 = vld [vmem:[%s6954_s3 + $0x18] sm:$0xff]  }
   0x3   :  { %4339 = vmatprep.subr.bf16.mxu0 %v6966_v1  ;;  %v45_v7 = vld [vmem:[%s6951_s0] sm:$0xff]  ;;  %v46_v8 = vld [vmem:[%s6951_s0 + $0x8] sm:$0xff]  ;;  %204 = vmatprep.subr.bf16.mxu1 %v5150_v4  ;;  %v5153_v9 = vld [vmem:[%s6955_s4 + $0x14] ss:$8 sps:$4 sm:$0xff]  }
   0x4   :  { %v5155_v10 = vld [vmem:[%s6955_s4 + $0x10] ss:$8 sps:$4 sm:$0xff]   ;;  %205 = vmatpush1.bf16.msra.mxu1 %v5152_v5  ;;  %v51_v11 = vpack.c.bf16 %v46_v8, %v45_v7 }
   0x5   :  { %206 = vmatprep.subr.bf16.mxu1 %v5153_v9  ;;  %v47_v12 = vld [vmem:[%s6951_s0 + $0x10] sm:$0xff]  ;;  %v48_v13 = vld [vmem:[%s6951_s0 + $0x18] sm:$0xff] }
   0x6   :  { %4340 = vmatpush3.bf16.msra.mxu0 %v5147_v2 }
   0x7   :  { %4341 = vmatprep.subr.bf16.mxu0 %v6966_v1 }
   0x8   :  { %207 = vmatpush1.bf16.msra.mxu1 %v5155_v10 }
   0xa   :  { %4342 = vmatpush3.bf16.msra.mxu0 %v5148_v3 }
   0xb   :  { %4343 = vmatprep.subr.bf16.mxu0 %v6966_v1 }
   0xe   :  { %4344 = vmatpush3.bf16.msra.mxu0 %v5149_v6 }
  0x11   :  { %4346 = vmatmul.mubr.msk.bf16.vlgmr.msra.gmra.mrb[0].mxu0 %vm92_vm1, %v51_v11 }
  0x12   :  { %4349 = vmatprep.mubr.msk.bf16.mxu0 %vm5467_vm0, %v6966_v1 }
  0x13   :  { %14 = vsyncpa [#allocation3], 0  ;;  %v52_v14 = vpack.c.bf16 %v48_v13, %v47_v12  ;;  %v49_v15 = vld [vmem:[%s6951_s0 + $0x20] sm:$0xff]  ;;  %v50_v16 = vld [vmem:[%s6951_s0 + $0x28] sm:$0xff]  ;;  %v5468_v18 = vmov 0   ;;  %vm194_vm2 = vcmask 261120   ;;  %v166_v47 = vlaneseq }
  0x14   :  { %v53_v17 = vpack.c.bf16 %v50_v16, %v49_v15  ;;  %236 = vmatprep.mubr.bf16.mxu1 %v5468_v18  ;;  %v62_v19 = vld [vmem:[%s6952_s1] sm:$0xff]  ;;  %v63_v21 = vld [vmem:[%s6952_s1 + $0x8] sm:$0xff]  ;;  %vm5591_vm3 = vmpackc.low %vm194_vm2, %vm194_vm2  ;;  %s5469_s3 = smov 96   ;;  %s5470_s29 = smov 64   ;;  %vm398_vm4 = vcmask 392192   ;;  %vm3798_vm5 = vcmask 1040384  }
  0x15   :  { %v64_v29 = vld [vmem:[%s6952_s1 + $0x10] sm:$0xff]  ;;  %v65_v31 = vld [vmem:[%s6952_s1 + $0x18] sm:$0xff]  ;;  %v66_v38 = vld [vmem:[%s6952_s1 + $0x20] sm:$0xff]  ;;  %v5674_v48 = vshrl.u32 %v166_v47, 7  ;;  %s5471_s30 = smov 32   ;;  %vm3800_vm6 = vcmask 254976  }
  0x16   :  { %v67_v40 = vld [vmem:[%s6952_s1 + $0x28] sm:$0xff]  ;;  %v34_v50 = vld [vmem:[%s6959_s8] sm:$0xff] }
  0x17   :  { %v5677_v49 = vsub.s32 0, %v5674_v48  ;;  %v35_v52 = vld [vmem:[%s6959_s8 + $0x8] sm:$0xff] }
  0x19   :  { %4350 = vmatmul.mubr.msk.bf16.gmra.mrb[4].mxu0 %vm92_vm1, %v52_v14  ;;  %v169_v51 = vrot.slane %v34_v50, %v5677_v49  ;;  %v173_v54 = vrot.slane %v35_v52, %v5677_v49 }
  0x1a   :  { %4353 = vmatprep.mubr.msk.bf16.mxu0 %vm5467_vm0, %v6966_v1 }
  0x21   :  { %4354 = vmatmul.mubr.msk.bf16.gmra.mrb[8].mxu0 %vm92_vm1, %v53_v17 }
  0xe4   :  { %v136_v20 = vpop.f32.mrb[0].mxu0 }
  0xe5   :  { %v4347_v22 = vpop.f32.mrb[1].mxu0  ;;  %v5585_v24 = vadd.f32 %v136_v20, %v62_v19 }
  0xe6   :  { %v139_v23 = vpop.f32.mrb[2].mxu0 }
  0xe7   :  { %v5587_v25 = vadd.f32 %v139_v23, %v63_v21  ;;  %v4348_v26 = vpop.f32.mrb[3].mxu0 }
  0xe9   :  { %v5597_v28 = vpack.c.bf16 %v5587_v25, %v5585_v24 }
  0xeb   :  { %3914 = vmatmul.mubr.msk.bf16.vlgmr.msra.gmra.mrb[0].mxu1 %vm194_vm2, %v5597_v28  ;;  %4775 = vmatprep.subr.msk.bf16.mxu1 %vm5591_vm3, %v5597_v28 }
  0xec   :  { %4793 = vmatprep.subr.msk.bf16.mxu0 %vm5591_vm3, %v5597_v28  ;;  %v144_v30 = vpop.f32.mrb[4].mxu0  ;;  %4778 = vmatpush3.bf16.xpose.msk.msra.mxu1 %vm5591_vm3, %v5597_v28 }
  0xed   :  { %4796 = vmatpush3.bf16.xpose.msk.msra.mxu0 %vm5591_vm3, %v5597_v28  ;;  %v4351_v32 = vpop.f32.mrb[5].mxu0  ;;  %246 = vmatprep.mubr.bf16.mxu1 %v5468_v18  ;;  %v5620_v34 = vadd.f32 %v144_v30, %v64_v29 }
  0xee   :  { %v147_v33 = vpop.f32.mrb[6].mxu0 }
  0xef   :  { %v5622_v35 = vadd.f32 %v147_v33, %v65_v31  ;;  %v4352_v36 = vpop.f32.mrb[7].mxu0 }
  0xf1   :  { %v5626_v37 = vpack.c.bf16 %v5622_v35, %v5620_v34 }
  0xf3   :  { %3915 = vmatmul.mubr.msk.bf16.gmra.mrb[4].mxu1 %vm194_vm2, %v5626_v37  ;;  %4781 = vmatprep.subr.msk.bf16.mxu1 %vm5591_vm3, %v5626_v37 }
  0xf4   :  { %4799 = vmatprep.subr.msk.bf16.mxu0 %vm5591_vm3, %v5626_v37  ;;  %v152_v39 = vpop.f32.mrb[8].mxu0  ;;  %4784 = vmatpush3.bf16.xpose.msk.msra.mxu1 %vm5591_vm3, %v5626_v37 }
  0xf5   :  { %v5645_v41 = vadd.f32 %v152_v39, %v66_v38  ;;  %4802 = vmatpush3.bf16.xpose.msk.msra.mxu0 %vm5591_vm3, %v5626_v37  ;;  %v4355_v42 = vpop.f32.mrb[9].mxu0  ;;  %256 = vmatprep.mubr.bf16.mxu1 %v5468_v18 }
  0xf6   :  { %v155_v43 = vpop.f32.mrb[10].mxu0 }
  0xf7   :  { %v5651_v44 = vadd.f32 %v155_v43, %v67_v40  ;;  %v4356_v45 = vpop.f32.mrb[11].mxu0 }
  0xf9   :  { %v5655_v46 = vpack.c.bf16 %v5651_v44, %v5645_v41 }
  0xfb   :  { %3916 = vmatmul.mubr.msk.bf16.gmra.mrb[8].mxu1 %vm194_vm2, %v5655_v46  ;;  %4787 = vmatprep.subr.msk.bf16.mxu1 %vm5591_vm3, %v5655_v46 }
  0xfc   :  { %4805 = vmatprep.subr.msk.bf16.mxu0 %vm5591_vm3, %v5655_v46  ;;  %4790 = vmatpush3.bf16.xpose.msk.msra.mxu1 %vm5591_vm3, %v5655_v46 }
  0xfd   :  { %4808 = vmatpush3.bf16.xpose.msk.msra.mxu0 %vm5591_vm3, %v5655_v46 }
  0xfe   :  { %4835 = vmatprep.subr.msk.bf16.mxu0 %vm5591_vm3, %v5597_v28 }
 0x1be   :  { %v238_v53 = vpop.f32.mrb[0].mxu1 }
 0x1bf   :  { %v239_v55 = vadd.f32 %v238_v53, %v169_v51  ;;  %v240_v56 = vpop.f32.mrb[1].mxu1 }
 0x1c0   :  { %v242_v57 = vpop.f32.mrb[2].mxu1  ;;  %v241_v60 = vadd.f32 %v240_v56, %v173_v54 }
 0x1c1   :  { %v243_v58 = vadd.f32 %v242_v57, %v169_v51  ;;  %v244_v59 = vpop.f32.mrb[3].mxu1  ;;  %465 = vrot.lane.b32.xlu0 %v239_v55, %s5469_s3  ;;  %4369 = vmatprep.mubr.msk.f32.mxu1 %vm194_vm2, %v239_v55 }
 0x1c2   :  { %v245_v61 = vadd.f32 %v244_v59, %v173_v54 }
 0x1c3   :  { %4370 = vmatmul.mubr.msk.f32.vlgmr.msra.gmra.mrb[12].mxu1 %vm194_vm2, %v243_v58 }
 0x1c4   :  { %v5690_v62 = vpack.i.bf16 %v245_v61, %v241_v60  ;;  %v5692_v63 = vpack.c.bf16 %v245_v61, %v241_v60 }
 0x1c5   :  { %467 = vrot.lane.b32.xlu0 %v243_v58, %s5469_s3 }
 0x1c6   :  { %v248_v0 = vpop.f32.mrb[4].mxu1 }
 0x1c7   :  { %v249_v2 = vadd.f32 %v248_v0, %v169_v51  ;;  %v250_v3 = vpop.f32.mrb[5].mxu1  ;;  %v5793_v0 = vld [vmem:[%s6953_s2 + $0x8] sm:$0xff] }
 0x1c8   :  { %v252_v4 = vpop.f32.mrb[6].mxu1  ;;  %v251_v7 = vadd.f32 %v250_v3, %v173_v54 }
 0x1c9   :  { %v253_v5 = vadd.f32 %v252_v4, %v169_v51  ;;  %v254_v6 = vpop.f32.mrb[7].mxu1  ;;  %469 = vrot.lane.b32.xlu1 %v249_v2, %s5469_s3  ;;  %4372 = vmatprep.mubr.msk.f32.mxu1 %vm194_vm2, %v249_v2 }
 0x1ca   :  { %v255_v8 = vadd.f32 %v254_v6, %v173_v54 }
 0x1cb   :  { %4373 = vmatmul.mubr.msk.f32.gmra.mrb[14].mxu1 %vm194_vm2, %v253_v5 }
 0x1cc   :  { %v5698_v9 = vpack.i.bf16 %v255_v8, %v251_v7  ;;  %v5700_v10 = vpack.c.bf16 %v255_v8, %v251_v7 }
 0x1cd   :  { %471 = vrot.lane.b32.xlu1 %v253_v5, %s5469_s3 }
 0x1ce   :  { %v258_v11 = vpop.f32.mrb[8].mxu1 }
 0x1cf   :  { %v259_v12 = vadd.f32 %v258_v11, %v169_v51  ;;  %v260_v13 = vpop.f32.mrb[9].mxu1  ;;  %v5813_v11 = vld [vmem:[%s6953_s2 + $0x18] sm:$0xff] }
 0x1d0   :  { %v262_v14 = vpop.f32.mrb[10].mxu1  ;;  %v261_v17 = vadd.f32 %v260_v13, %v173_v54 }
 0x1d1   :  { %v263_v15 = vadd.f32 %v262_v14, %v169_v51  ;;  %v264_v16 = vpop.f32.mrb[11].mxu1  ;;  %473 = vrot.lane.b32.xlu0 %v259_v12, %s5469_s3  ;;  %4375 = vmatprep.mubr.msk.f32.mxu1 %vm194_vm2, %v259_v12 }
 0x1d2   :  { %v265_v19 = vadd.f32 %v264_v16, %v173_v54 }
 0x1d3   :  { %475 = vrot.lane.b32.xlu1 %v263_v15, %s5469_s3  ;;  %4376 = vmatmul.mubr.msk.f32.gmra.mrb[16].mxu1 %vm194_vm2, %v263_v15 }
 0x1d4   :  { %v5707_v20 = vpack.i.bf16 %v265_v19, %v261_v17  ;;  %v5709_v21 = vpack.c.bf16 %v265_v19, %v261_v17 }
 0x1d5   :  { %900 = vrot.lane.b32.xlu0 %v239_v55, %s5470_s29 }
 0x1d7   :  { %902 = vrot.lane.b32.xlu1 %v243_v58, %s5470_s29 }
 0x1d9   :  { %904 = vrot.lane.b32.xlu0 %v249_v2, %s5470_s29 }
 0x1db   :  { %906 = vrot.lane.b32.xlu1 %v253_v5, %s5470_s29 }
 0x1dd   :  { %908 = vrot.lane.b32.xlu0 %v259_v12, %s5470_s29 }
 0x1df   :  { %910 = vrot.lane.b32.xlu1 %v263_v15, %s5470_s29 }
 0x1e1   :  { %1222 = vrot.lane.b32.xlu0 %v239_v55, %s5471_s30 }
 0x1e3   :  { %1224 = vrot.lane.b32.xlu1 %v243_v58, %s5471_s30 }
 0x1e5   :  { %1226 = vrot.lane.b32.xlu0 %v249_v2, %s5471_s30  ;;  %v5798_v2 = vld [vmem:[%s6953_s2] sm:$0xff] }
 0x1e7   :  { %1228 = vrot.lane.b32.xlu1 %v253_v5, %s5471_s30 }
 0x1e9   :  { %1230 = vrot.lane.b32.xlu0 %v259_v12, %s5471_s30  ;;  %v5818_v12 = vld [vmem:[%s6953_s2 + $0x10] sm:$0xff] }
 0x1eb   :  { %1232 = vrot.lane.b32.xlu1 %v263_v15, %s5471_s30 }
 0x1ed   :  { %5062 = vrot.lane.b32.xlu0 %v5698_v9, %s5469_s3 }
 0x1ef   :  { %5057 = vrot.lane.b32.xlu1 %v5690_v62, %s5469_s3 }
 0x1f1   :  { %5067 = vrot.lane.b32.xlu0 %v5690_v62, %s5470_s29 }
 0x1f3   :  { %5072 = vrot.lane.b32.xlu1 %v5698_v9, %s5470_s29 }
 0x1f7   :  { %5077 = vrot.lane.b32.xlu1 %v5707_v20, %s5469_s3 }
 0x233   :  { %v466_v22 = vpop.permute.xlu0 %465 }
 0x234   :  { %4390 = vmatprep.mubr.msk.f32.mxu0 %vm194_vm2, %v466_v22  ;;  %v5833_v22 = vld [vmem:[%s6953_s2 + $0x28] sm:$0xff] }
 0x237   :  { %v468_v23 = vpop.permute.xlu0 %467 }
 0x238   :  { %4391 = vmatmul.mubr.msk.f32.vlgmr.msra.gmra.mrb[12].mxu0 %vm194_vm2, %v468_v23  ;;  %v5838_v23 = vld [vmem:[%s6953_s2 + $0x20] sm:$0xff] }
 0x239   :  { %4838 = vmatpush3.bf16.xpose.msk.msra.mxu0 %vm5591_vm3, %v5597_v28 }
 0x23a   :  { %4841 = vmatprep.subr.msk.bf16.mxu0 %vm5591_vm3, %v5626_v37 }
 0x23b   :  { %v470_v26 = vpop.permute.xlu1 %469 }
 0x23c   :  { %4393 = vmatprep.mubr.msk.f32.mxu0 %vm194_vm2, %v470_v26 }
 0x23f   :  { %v472_v29 = vpop.permute.xlu1 %471 }
 0x240   :  { %4394 = vmatmul.mubr.msk.f32.gmra.mrb[14].mxu0 %vm194_vm2, %v472_v29 }
 0x241   :  { %4844 = vmatpush3.bf16.xpose.msk.msra.mxu0 %vm5591_vm3, %v5626_v37 }
 0x242   :  { %4847 = vmatprep.subr.msk.bf16.mxu0 %vm5591_vm3, %v5655_v46 }
 0x243   :  { %v474_v30 = vpop.permute.xlu0 %473 }
 0x244   :  { %4396 = vmatprep.mubr.msk.f32.mxu0 %vm194_vm2, %v474_v30 }
 0x245   :  { %v476_v31 = vpop.permute.xlu1 %475 }
 0x246   :  { %4397 = vmatmul.mubr.msk.f32.gmra.mrb[16].mxu0 %vm194_vm2, %v476_v31 }
 0x247   :  { %v901_v32 = vpop.permute.xlu0 %900 }
 0x248   :  { %4453 = vmatprep.mubr.msk.f32.mxu0 %vm194_vm2, %v901_v32 }
 0x249   :  { %4850 = vmatpush3.bf16.xpose.msk.msra.mxu0 %vm5591_vm3, %v5655_v46  ;;  %v903_v33 = vpop.permute.xlu1 %902 }
 0x24a   :  { %4865 = vmatprep.subr.msk.bf16.mxu0 %vm5591_vm3, %v5597_v28 }
 0x24b   :  { %v905_v36 = vpop.permute.xlu0 %904 }
 0x24d   :  { %v907_v38 = vpop.permute.xlu1 %906 }
 0x24f   :  { %v909_v39 = vpop.permute.xlu0 %908 }
 0x250   :  { %4454 = vmatmul.mubr.msk.f32.vlgmr.msra.gmra.mrb[18].mxu0 %vm194_vm2, %v903_v33 }
 0x251   :  { %4456 = vmatprep.mubr.msk.f32.mxu0 %vm194_vm2, %v905_v36  ;;  %4868 = vmatpush3.bf16.xpose.msk.msra.mxu0 %vm5591_vm3, %v5597_v28  ;;  %v911_v40 = vpop.permute.xlu1 %910 }
 0x252   :  { %4871 = vmatprep.subr.msk.bf16.mxu0 %vm5591_vm3, %v5626_v37 }
 0x253   :  { %v1223_v42 = vpop.permute.xlu0 %1222 }
 0x254   :  { %4457 = vmatmul.mubr.msk.f32.gmra.mrb[20].mxu0 %vm194_vm2, %v907_v38 }
 0x255   :  { %4459 = vmatprep.mubr.msk.f32.mxu0 %vm194_vm2, %v909_v39  ;;  %v1225_v43 = vpop.permute.xlu1 %1224 }
 0x257   :  { %v1227_v45 = vpop.permute.xlu0 %1226 }
 0x258   :  { %4460 = vmatmul.mubr.msk.f32.gmra.mrb[22].mxu0 %vm194_vm2, %v911_v40 }
 0x259   :  { %4874 = vmatpush3.bf16.xpose.msk.msra.mxu0 %vm5591_vm3, %v5626_v37  ;;  %4495 = vmatprep.mubr.msk.f32.mxu0 %vm194_vm2, %v1223_v42  ;;  %v1229_v28 = vpop.permute.xlu1 %1228 }
 0x25a   :  { %4877 = vmatprep.subr.msk.bf16.mxu0 %vm5591_vm3, %v5655_v46 }
 0x25b   :  { %v1231_v47 = vpop.permute.xlu0 %1230 }
 0x25d   :  { %v1233_v50 = vpop.permute.xlu1 %1232 }
 0x25f   :  { %v5063_v51 = vpop.permute.xlu0 %5062 }
 0x260   :  { %v5065_v53 = vunpack.i.h.bf16 %v5063_v51  ;;  %v5064_v54 = vunpack.i.l.bf16 %v5063_v51 }
 0x261   :  { %4880 = vmatpush3.bf16.xpose.msk.msra.mxu0 %vm5591_vm3, %v5655_v46  ;;  %v5058_v52 = vpop.permute.xlu1 %5057 }
 0x262   :  { %v5060_v55 = vunpack.i.h.bf16 %v5058_v52  ;;  %v5059_v56 = vunpack.i.l.bf16 %v5058_v52  ;;  %4541 = vmatprep.subr.bf16.mxu0 %v6966_v1  ;;  %v4813_v58 = vpack.c.bf16 %v5065_v53, %v5064_v54 }
 0x264   :  { %v4809_v37 = vpack.c.bf16 %v5060_v55, %v5059_v56 }
 0x265   :  { %v5780_v57 = vpop.permute.xlu1 %5072 }
 0x266   :  { %4810 = vmatprep.subr.bf16.mxu1 %v4809_v37 }
 0x267   :  { %4812 = vmatpush3.bf16.msra.mxu1 %v4809_v37 }
 0x268   :  { %4496 = vmatmul.mubr.msk.f32.vlgmr.msra.gmra.mrb[24].mxu0 %vm194_vm2, %v1225_v43  ;;  %4814 = vmatprep.subr.bf16.mxu1 %v4813_v58 }
 0x269   :  { %4498 = vmatprep.mubr.msk.f32.mxu0 %vm194_vm2, %v1227_v45  ;;  %v5078_v59 = vpop.permute.xlu1 %5077 }
 0x26a   :  { %v5080_v46 = vunpack.i.h.bf16 %v5078_v59  ;;  %v5079_v60 = vunpack.i.l.bf16 %v5078_v59  ;;  %v5880_v59 = vpop.permute.xlu0 %5067 }
 0x26b   :  { %4816 = vmatpush3.bf16.msra.mxu1 %v4813_v58 }
 0x26c   :  { %4499 = vmatmul.mubr.msk.f32.gmra.mrb[26].mxu0 %vm194_vm2, %v1229_v28  ;;  %v4817_v61 = vpack.c.bf16 %v5080_v46, %v5079_v60 }
 0x26d   :  { %4501 = vmatprep.mubr.msk.f32.mxu0 %vm194_vm2, %v1231_v47 }
 0x26e   :  { %4818 = vmatprep.subr.bf16.mxu1 %v4817_v61 }
 0x26f   :  { %4820 = vmatpush3.bf16.msra.mxu1 %v4817_v61 }
 0x270   :  { %4502 = vmatmul.mubr.msk.f32.gmra.mrb[28].mxu0 %vm194_vm2, %v1233_v50  ;;  %4822 = vmatprep.subr.bf16.mxu1 %v5692_v63 }
 0x271   :  { %4549 = vmatprep.mubr.msk.bf16.mxu0 %vm5467_vm0, %v6966_v1 }
 0x296   :  { %v4371_v3 = vpop.f32.mrb[12].mxu1 }
 0x297   :  { %v5801_v4 = vadd.f32 %v4371_v3, %v5793_v0  ;;  %v369_v5 = vpop.f32.mrb[13].mxu1 }
 0x298   :  { %v5804_v6 = vadd.f32 %v369_v5, %v5798_v2 }
 0x299   :  { %v402_v7 = vsel %vm398_vm4, %v5801_v4, -inf }
 0x29a   :  { %403 = vmax.xlane.f32.xlu0 %v402_v7  ;;  %v399_v8 = vsel %vm398_vm4, %v5804_v6, -inf }
 0x29b   :  { %400 = vmax.xlane.f32.xlu1 %v399_v8 }
 0x29e   :  { %v4374_v13 = vpop.f32.mrb[14].mxu1 }
 0x29f   :  { %v5821_v14 = vadd.f32 %v4374_v13, %v5813_v11  ;;  %v379_v15 = vpop.f32.mrb[15].mxu1 }
 0x2a0   :  { %v5824_v16 = vadd.f32 %v379_v15, %v5818_v12 }
 0x2a1   :  { %v408_v17 = vsel %vm398_vm4, %v5821_v14, -inf }
 0x2a2   :  { %409 = vmax.xlane.f32.xlu0 %v408_v17  ;;  %v405_v19 = vsel %vm398_vm4, %v5824_v16, -inf }
 0x2a3   :  { %406 = vmax.xlane.f32.xlu1 %v405_v19 }
 0x2a6   :  { %v4377_v26 = vpop.f32.mrb[16].mxu1 }
 0x2a7   :  { %v5841_v29 = vadd.f32 %v4377_v26, %v5833_v22  ;;  %v389_v30 = vpop.f32.mrb[17].mxu1 }
 0x2a8   :  { %v5844_v31 = vadd.f32 %v389_v30, %v5838_v23 }
 0x2a9   :  { %v414_v32 = vsel %vm398_vm4, %v5841_v29, -inf }
 0x2aa   :  { %415 = vmax.xlane.f32.xlu0 %v414_v32  ;;  %v411_v33 = vsel %vm398_vm4, %v5844_v31, -inf }
 0x2ab   :  { %412 = vmax.xlane.f32.xlu1 %v411_v33 }
 0x30b   :  { %v4392_v36 = vpop.f32.mrb[12].mxu0 }
 0x30c   :  { %v5851_v38 = vadd.f32 %v4392_v36, %v5793_v0  ;;  %v555_v39 = vpop.f32.mrb[13].mxu0 }
 0x30d   :  { %v5854_v40 = vadd.f32 %v555_v39, %v5798_v2 }
 0x30e   :  { %v587_v42 = vsel %vm398_vm4, %v5851_v38, -inf }
 0x30f   :  { %588 = vmax.xlane.f32.xlu1 %v587_v42  ;;  %v584_v43 = vsel %vm398_vm4, %v5854_v40, -inf }
 0x310   :  { %585 = vmax.xlane.f32.xlu0 %v584_v43 }
 0x313   :  { %v4395_v45 = vpop.f32.mrb[14].mxu0 }
 0x314   :  { %v5861_v28 = vadd.f32 %v4395_v45, %v5813_v11  ;;  %v565_v47 = vpop.f32.mrb[15].mxu0 }
 0x315   :  { %v5864_v50 = vadd.f32 %v565_v47, %v5818_v12 }
 0x316   :  { %v593_v51 = vsel %vm398_vm4, %v5861_v28, -inf }
 0x317   :  { %594 = vmax.xlane.f32.xlu0 %v593_v51  ;;  %v590_v55 = vsel %vm398_vm4, %v5864_v50, -inf }
 0x319   :  { %v4398_v52 = vpop.f32.mrb[16].mxu0 }
 0x31a   :  { %v5869_v53 = vadd.f32 %v4398_v52, %v5833_v22  ;;  %v575_v54 = vpop.f32.mrb[17].mxu0 }
 0x31b   :  { %v5874_v56 = vadd.f32 %v575_v54, %v5838_v23  ;;  %591 = vmax.xlane.f32.xlu0 %v590_v55 }
 0x31c   :  { %v599_v58 = vsel %vm398_vm4, %v5869_v53, -inf }
 0x31d   :  { %v596_v37 = vsel %vm398_vm4, %v5874_v56, -inf }
 0x31e   :  { %597 = vmax.xlane.f32.xlu1 %v596_v37 }
 0x31f   :  { %600 = vmax.xlane.f32.xlu0 %v599_v58 }
 0x323   :  { %v4455_v46 = vpop.f32.mrb[18].mxu0 }
 0x324   :  { %v5883_v60 = vadd.f32 %v4455_v46, %v5793_v0  ;;  %v990_v61 = vpop.f32.mrb[19].mxu0 }
 0x325   :  { %v5886_v3 = vadd.f32 %v990_v61, %v5798_v2 }
 0x326   :  { %v1022_v5 = vsel %vm398_vm4, %v5883_v60, -inf }
 0x327   :  { %v4458_v7 = vpop.f32.mrb[20].mxu0  ;;  %1023 = vmax.xlane.f32.xlu0 %v1022_v5  ;;  %v404_v8 = vpop.xlane.xlu0 %403  ;;  %v1019_v13 = vsel %vm398_vm4, %v5886_v3, -inf }
 0x328   :  { %v5893_v15 = vadd.f32 %v4458_v7, %v5813_v11  ;;  %v1000_v17 = vpop.f32.mrb[21].mxu0  ;;  %v418_v19 = vsub.f32 %v5801_v4, %v404_v8  ;;  %1020 = vmax.xlane.f32.xlu1 %v1019_v13  ;;  %v401_v26 = vpop.xlane.xlu1 %400 }
 0x329   :  { %v5897_v30 = vadd.f32 %v1000_v17, %v5818_v12  ;;  %v417_v32 = vsub.f32 %v5804_v6, %v401_v26 }
 0x32a   :  { %v425_v33 = vmul.f32 1.442695, %v418_v19  ;;  %v1028_v36 = vsel %vm398_vm4, %v5893_v15, -inf }
 0x32b   :  { %v423_v39 = vmul.f32 1.442695, %v417_v32  ;;  %v4461_v42 = vpop.f32.mrb[22].mxu0  ;;  %1029 = vmax.xlane.f32.xlu0 %v1028_v36  ;;  %v1025_v43 = vsel %vm398_vm4, %v5897_v30, -inf }
 0x32c   :  { %5176 = vpow2.f32 %v425_v33  ;;  %v5905_v4 = vadd.f32 %v4461_v42, %v5833_v22  ;;  %v1010_v45 = vpop.f32.mrb[23].mxu0  ;;  %1026 = vmax.xlane.f32.xlu1 %v1025_v43 }
 0x32d   :  { %5178 = vpow2.f32 %v423_v39  ;;  %v5908_v47 = vadd.f32 %v1010_v45, %v5838_v23 }
 0x32e   :  { %v1034_v6 = vsel %vm398_vm4, %v5905_v4, -inf }
 0x32f   :  { %1035 = vmax.xlane.f32.xlu0 %v1034_v6  ;;  %v410_v51 = vpop.xlane.xlu0 %409  ;;  %v1031_v52 = vsel %vm398_vm4, %v5908_v47, -inf }
 0x330   :  { %1032 = vmax.xlane.f32.xlu1 %v1031_v52  ;;  %v420_v54 = vsub.f32 %v5821_v14, %v410_v51  ;;  %v407_v55 = vpop.xlane.xlu1 %406 }
 0x331   :  { %v419_v58 = vsub.f32 %v5824_v16, %v407_v55 }
 0x332   :  { %v429_v37 = vmul.f32 1.442695, %v420_v54 }
 0x333   :  { %v427_v13 = vmul.f32 1.442695, %v419_v58 }
 0x334   :  { %5180 = vpow2.f32 %v429_v37 }
 0x335   :  { %5182 = vpow2.f32 %v427_v13 }
 0x336   :  { %v5916_v46 = vpop.eup %5176 }
 0x337   :  { %v5918_v61 = vpop.eup %5178  ;;  %v438_v5 = vsel %vm398_vm4, %v5916_v46, 0.0 }
 0x338   :  { %439 = vadd.xlane.f32.xlu0 %v438_v5  ;;  %v413_v7 = vpop.xlane.xlu1 %412  ;;  %v435_v8 = vsel %vm398_vm4, %v5918_v61, 0.0 }
 0x339   :  { %v421_v14 = vsub.f32 %v5844_v31, %v413_v7  ;;  %436 = vadd.xlane.f32.xlu1 %v435_v8  ;;  %v416_v7 = vpop.xlane.xlu0 %415 }
 0x33a   :  { %v422_v8 = vsub.f32 %v5841_v29, %v416_v7 }
 0x33b   :  { %v431_v17 = vmul.f32 1.442695, %v421_v14  ;;  %v4497_v19 = vpop.f32.mrb[24].mxu0 }
 0x33c   :  { %v5926_v16 = vadd.f32 %v4497_v19, %v5793_v0  ;;  %v1312_v26 = vpop.f32.mrb[25].mxu0 }
 0x33d   :  { %v5929_v32 = vadd.f32 %v1312_v26, %v5798_v2  ;;  %5184 = vpow2.f32 %v431_v17 }
 0x33e   :  { %v1344_v33 = vsel %vm398_vm4, %v5926_v16, -inf  ;;  %v5943_v43 = vpop.eup %5180 }
 0x33f   :  { %v4500_v36 = vpop.f32.mrb[26].mxu0  ;;  %1345 = vmax.xlane.f32.xlu0 %v1344_v33  ;;  %v1341_v31 = vsel %vm398_vm4, %v5929_v32, -inf  ;;  %v444_v52 = vsel %vm398_vm4, %v5943_v43, 0.0 }
 0x340   :  { %v5936_v39 = vadd.f32 %v4500_v36, %v5813_v11  ;;  %v1322_v42 = vpop.f32.mrb[27].mxu0  ;;  %1342 = vmax.xlane.f32.xlu1 %v1341_v31 }
 0x341   :  { %v5939_v0 = vadd.f32 %v1322_v42, %v5818_v12  ;;  %v5952_v12 = vpop.eup %5182 }
 0x342   :  { %v1350_v2 = vsel %vm398_vm4, %v5936_v39, -inf  ;;  %v441_v58 = vsel %vm398_vm4, %v5952_v12, 0.0 }
 0x343   :  { %v4503_v45 = vpop.f32.mrb[28].mxu0  ;;  %1351 = vmax.xlane.f32.xlu0 %v1350_v2  ;;  %v1347_v6 = vsel %vm398_vm4, %v5939_v0, -inf }
 0x344   :  { %v1332_v51 = vpop.f32.mrb[29].mxu0  ;;  %1348 = vmax.xlane.f32.xlu1 %v1347_v6  ;;  %v5959_v37 = vadd.f32 %v4503_v45, %v5833_v22  ;;  %v433_v22 = vmul.f32 1.442695, %v422_v8 }
 0x345   :  { %v5948_v11 = vadd.f32 %v1332_v51, %v5838_v23 }
 0x346   :  { %v1356_v5 = vsel %vm398_vm4, %v5959_v37, -inf  ;;  %5186 = vpow2.f32 %v433_v22 }
 0x347   :  { %445 = vadd.xlane.f32.xlu0 %v444_v52  ;;  %v1353_v54 = vsel %vm398_vm4, %v5948_v11, -inf  ;;  %v5956_v55 = vpop.eup %5184 }
 0x348   :  { %1354 = vmax.xlane.f32.xlu1 %v1353_v54  ;;  %v447_v23 = vsel %vm398_vm4, %v5956_v55, 0.0 }
 0x34b   :  { %442 = vadd.xlane.f32.xlu0 %v441_v58 }
 0x34c   :  { %448 = vadd.xlane.f32.xlu1 %v447_v23 }
 0x34f   :  { %1357 = vmax.xlane.f32.xlu0 %v1356_v5 }
 0x350   :  { %v5970_v13 = vpop.eup %5186 }
 0x351   :  { %v450_v14 = vsel %vm398_vm4, %v5970_v13, 0.0 }
 0x365   :  { %5082 = vrot.lane.b32.xlu0 %v5707_v20, %s5470_s29 }
 0x384   :  { %451 = vadd.xlane.f32.xlu0 %v450_v14 }
 0x39c   :  { %v589_v17 = vpop.xlane.xlu1 %588 }
 0x39d   :  { %v603_v19 = vsub.f32 %v5851_v38, %v589_v17  ;;  %v586_v26 = vpop.xlane.xlu0 %585 }
 0x39e   :  { %v602_v33 = vsub.f32 %v5854_v40, %v586_v26 }
 0x39f   :  { %v610_v36 = vmul.f32 1.442695, %v603_v19 }
 0x3a0   :  { %v608_v31 = vmul.f32 1.442695, %v602_v33 }
 0x3a1   :  { %5188 = vpow2.f32 %v610_v36 }
 0x3a2   :  { %5190 = vpow2.f32 %v608_v31 }
 0x3a4   :  { %v595_v42 = vpop.xlane.xlu0 %594 }
 0x3a5   :  { %v605_v29 = vsub.f32 %v5861_v28, %v595_v42 }
 0x3a7   :  { %v614_v2 = vmul.f32 1.442695, %v605_v29 }
 0x3a8   :  { %v592_v45 = vpop.xlane.xlu0 %591 }
 0x3a9   :  { %5192 = vpow2.f32 %v614_v2  ;;  %v604_v6 = vsub.f32 %v5864_v50, %v592_v45 }
 0x3ab   :  { %v5978_v51 = vpop.eup %5188  ;;  %v612_v52 = vmul.f32 1.442695, %v604_v6  ;;  %v598_v54 = vpop.xlane.xlu1 %597 }
 0x3ac   :  { %v5980_v38 = vpop.eup %5190  ;;  %v606_v40 = vsub.f32 %v5874_v56, %v598_v54  ;;  %v601_v58 = vpop.xlane.xlu0 %600  ;;  %v623_v23 = vsel %vm398_vm4, %v5978_v51, 0.0 }
 0x3ad   :  { %5194 = vpow2.f32 %v612_v52  ;;  %v607_v28 = vsub.f32 %v5869_v53, %v601_v58  ;;  %624 = vadd.xlane.f32.xlu0 %v623_v23  ;;  %v620_v5 = vsel %vm398_vm4, %v5980_v38, 0.0 }
 0x3ae   :  { %v616_v50 = vmul.f32 1.442695, %v606_v40  ;;  %621 = vadd.xlane.f32.xlu1 %v620_v5 }
 0x3af   :  { %v618_v7 = vmul.f32 1.442695, %v607_v28 }
 0x3b0   :  { %5196 = vpow2.f32 %v616_v50 }
 0x3b1   :  { %5198 = vpow2.f32 %v618_v7 }
 0x3b3   :  { %v5988_v8 = vpop.eup %5192 }
 0x3b4   :  { %v1024_v22 = vpop.xlane.xlu0 %1023  ;;  %v629_v56 = vsel %vm398_vm4, %v5988_v8, 0.0 }
 0x3b5   :  { %v1038_v14 = vsub.f32 %v5883_v60, %v1024_v22  ;;  %v1021_v17 = vpop.xlane.xlu1 %1020  ;;  %630 = vadd.xlane.f32.xlu0 %v629_v56 }
 0x3b6   :  { %v1037_v53 = vsub.f32 %v5886_v3, %v1021_v17 }
 0x3b7   :  { %v5994_v19 = vpop.eup %5194  ;;  %v1045_v26 = vmul.f32 1.442695, %v1038_v14 }
 0x3b8   :  { %v1043_v33 = vmul.f32 1.442695, %v1037_v53  ;;  %v1030_v36 = vpop.xlane.xlu0 %1029  ;;  %v626_v31 = vsel %vm398_vm4, %v5994_v19, 0.0 }
 0x3b9   :  { %5200 = vpow2.f32 %v1045_v26  ;;  %v1040_v42 = vsub.f32 %v5893_v15, %v1030_v36  ;;  %v1027_v29 = vpop.xlane.xlu1 %1026  ;;  %627 = vadd.xlane.f32.xlu1 %v626_v31 }
 0x3ba   :  { %v5999_v2 = vpop.eup %5196  ;;  %5202 = vpow2.f32 %v1043_v33 }
 0x3bb   :  { %v6001_v60 = vpop.eup %5198  ;;  %v1049_v45 = vmul.f32 1.442695, %v1040_v42  ;;  %v632_v3 = vsel %vm398_vm4, %v5999_v2, 0.0 }
 0x3bc   :  { %v1036_v6 = vpop.xlane.xlu0 %1035  ;;  %v635_v52 = vsel %vm398_vm4, %v6001_v60, 0.0 }
 0x3bd   :  { %v1042_v54 = vsub.f32 %v5905_v4, %v1036_v6  ;;  %v1033_v40 = vpop.xlane.xlu1 %1032  ;;  %636 = vadd.xlane.f32.xlu0 %v635_v52  ;;  %633 = vadd.xlane.f32.xlu1 %v632_v3  ;;  %5204 = vpow2.f32 %v1049_v45 }
 0x3be   :  { %v1041_v58 = vsub.f32 %v5908_v47, %v1033_v40 }
 0x3bf   :  { %v1053_v15 = vmul.f32 1.442695, %v1042_v54 }
 0x3c0   :  { %v1051_v28 = vmul.f32 1.442695, %v1041_v58 }
 0x3c1   :  { %5206 = vpow2.f32 %v1053_v15 }
 0x3c2   :  { %5208 = vpow2.f32 %v1051_v28 }
 0x3c3   :  { %v6009_v23 = vpop.eup %5200 }
 0x3c4   :  { %v1058_v5 = vsel %vm398_vm4, %v6009_v23, 0.0  ;;  %v6013_v50 = vpop.eup %5202 }
 0x3c5   :  { %1059 = vadd.xlane.f32.xlu0 %v1058_v5  ;;  %v6015_v7 = vpop.xlane.xlu0 %439  ;;  %v1055_v4 = vsel %vm398_vm4, %v6013_v50, 0.0  ;;  %v1039_v5 = vsub.f32 %v5897_v30, %v1027_v29 }
 0x3c6   :  { %v6021_v56 = vpop.xlane.xlu1 %436 }
 0x3c7   :  { %v6019_v22 = vpop.eup %5204 }
 0x3c8   :  { %v1064_v14 = vsel %vm398_vm4, %v6019_v22, 0.0 }
 0x3c9   :  { %1056 = vadd.xlane.f32.xlu0 %v1055_v4 }
 0x3cb   :  { %v6025_v17 = vpop.eup %5206 }
 0x3cc   :  { %v1346_v47 = vpop.xlane.xlu0 %1345  ;;  %v1070_v45 = vsel %vm398_vm4, %v6025_v17, 0.0  ;;  %v6033_v3 = vpop.eup %5208 }
 0x3cd   :  { %v1360_v53 = vsub.f32 %v5926_v16, %v1346_v47  ;;  %1065 = vadd.xlane.f32.xlu0 %v1064_v14  ;;  %v1343_v26 = vpop.xlane.xlu1 %1342  ;;  %v1047_v47 = vmul.f32 1.442695, %v1039_v5 }
 0x3ce   :  { %v1359_v33 = vsub.f32 %v5929_v32, %v1343_v26  ;;  %5087 = vrot.lane.b32.xlu1 %v5690_v62, %s5471_s30  ;;  %v1067_v32 = vsel %vm398_vm4, %v6033_v3, 0.0 }
 0x3cf   :  { %v1367_v36 = vmul.f32 1.442695, %v1360_v53 }
 0x3d0   :  { %v1365_v31 = vmul.f32 1.442695, %v1359_v33  ;;  %v1352_v42 = vpop.xlane.xlu0 %1351 }
 0x3d1   :  { %5210 = vpow2.f32 %v1367_v36  ;;  %1071 = vadd.xlane.f32.xlu0 %v1070_v45  ;;  %v1349_v6 = vpop.xlane.xlu1 %1348  ;;  %v1362_v14 = vsub.f32 %v5936_v39, %v1352_v42 }
 0x3d2   :  { %v1361_v16 = vsub.f32 %v5939_v0, %v1349_v6  ;;  %5212 = vpow2.f32 %v1365_v31 }
 0x3d3   :  { %v1371_v33 = vmul.f32 1.442695, %v1362_v14 }
 0x3d4   :  { %v1369_v52 = vmul.f32 1.442695, %v1361_v16  ;;  %v6038_v54 = vpop.xlane.xlu0 %445 }
 0x3d5   :  { %1068 = vadd.xlane.f32.xlu0 %v1067_v32  ;;  %v1355_v62 = vpop.xlane.xlu1 %1354 }
 0x3d6   :  { %v1363_v40 = vsub.f32 %v5948_v11, %v1355_v62  ;;  %5214 = vpow2.f32 %v1369_v52 }
 0x3d8   :  { %v1373_v15 = vmul.f32 1.442695, %v1363_v40  ;;  %v443_v28 = vpop.xlane.xlu0 %442 }
 0x3d9   :  { %v449_v40 = vpop.xlane.xlu1 %448 }
 0x3da   :  { %5216 = vpow2.f32 %v1373_v15 }
 0x3db   :  { %v6041_v58 = vpop.eup %5210  ;;  %5218 = vpow2.f32 %v1047_v47 }
 0x3dc   :  { %v1380_v0 = vsel %vm398_vm4, %v6041_v58, 0.0  ;;  %v6046_v4 = vpop.eup %5212  ;;  %v1358_v26 = vpop.xlane.xlu0 %1357  ;;  %5220 = vpow2.f32 %v1371_v33 }
 0x3dd   :  { %1381 = vadd.xlane.f32.xlu0 %v1380_v0  ;;  %v1377_v11 = vsel %vm398_vm4, %v6046_v4, 0.0  ;;  %v1364_v30 = vsub.f32 %v5959_v37, %v1358_v26 }
 0x3df   :  { %v1375_v31 = vmul.f32 1.442695, %v1364_v30  ;;  %v5070_v30 = vunpack.i.h.bf16 %v5880_v59 }
 0x3e0   :  { %v6051_v53 = vpop.eup %5214  ;;  %v6076_v32 = vpop.permute.xlu0 %5082 }
 0x3e1   :  { %1378 = vadd.xlane.f32.xlu0 %v1377_v11  ;;  %v1383_v29 = vsel %vm398_vm4, %v6051_v53, 0.0  ;;  %5222 = vpow2.f32 %v1375_v31 }
 0x3e4   :  { %v6056_v36 = vpop.eup %5216 }
 0x3e5   :  { %1384 = vadd.xlane.f32.xlu0 %v1383_v29  ;;  %v1389_v39 = vsel %vm398_vm4, %v6056_v36, 0.0  ;;  %v6060_v42 = vpop.eup %5218 }
 0x3e6   :  { %v1061_v45 = vsel %vm398_vm4, %v6060_v42, 0.0  ;;  %v6064_v6 = vpop.eup %5220 }
 0x3e7   :  { %v1386_v37 = vsel %vm398_vm4, %v6064_v6, 0.0 }
 0x3e9   :  { %1390 = vadd.xlane.f32.xlu0 %v1389_v39 }
 0x3eb   :  { %v6068_v16 = vpop.eup %5222 }
 0x3ec   :  { %v1392_v52 = vsel %vm398_vm4, %v6068_v16, 0.0 }
 0x3f2   :  { %1062 = vadd.xlane.f32.xlu1 %v1061_v45 }
 0x3f6   :  { %1387 = vadd.xlane.f32.xlu1 %v1386_v37  ;;  %v5075_v37 = vunpack.i.h.bf16 %v5780_v57 }
 0x3fa   :  { %1393 = vadd.xlane.f32.xlu1 %v1392_v52  ;;  %v5074_v52 = vunpack.i.l.bf16 %v5780_v57 }
 0x3ff   :  { %5092 = vrot.lane.b32.xlu0 %v5698_v9, %s5471_s30 }
 0x40b   :  { %5097 = vrot.lane.b32.xlu1 %v5707_v20, %s5471_s30 }
 0x411   :  { %v452_v62 = vpop.xlane.xlu0 %451 }
 0x43a   :  { %v625_v15 = vpop.xlane.xlu0 %624 }
 0x43b   :  { %5224 = vrcp.f32 %v625_v15  ;;  %v622_v5 = vpop.xlane.xlu1 %621 }
 0x43c   :  { %5226 = vrcp.f32 %v622_v5  ;;  %v5085_v5 = vunpack.i.h.bf16 %v6076_v32 }
 0x442   :  { %v631_v0 = vpop.xlane.xlu0 %630 }
 0x443   :  { %5228 = vrcp.f32 %v631_v0  ;;  %v4855_v0 = vpack.c.bf16 %v5075_v37, %v5074_v52 }
 0x445   :  { %v5225_v47 = vpop.eup %5224 }
 0x446   :  { %v5227_v14 = vpop.eup %5226  ;;  %v628_v11 = vpop.xlane.xlu1 %627  ;;  %v645_v9 = vmul.f32 %v5225_v47, %v5978_v51 }
 0x447   :  { %5230 = vrcp.f32 %v628_v11  ;;  %v644_v26 = vmul.f32 %v5227_v14, %v5980_v38  ;;  %v5069_v38 = vunpack.i.l.bf16 %v5880_v59 }
 0x448   :  { %5232 = vrcp.f32 %v6021_v56 }
 0x449   :  { %4411 = vmatprep.mubr.msk.f32.mxu1 %vm398_vm4, %v644_v26  ;;  %v4851_v31 = vpack.c.bf16 %v5070_v30, %v5069_v38 }
 0x44a   :  { %v637_v20 = vpop.xlane.xlu0 %636  ;;  %4412 = vmatmul.mubr.msk.f32.vlgmr.msra.gmra.mrb[18].mxu1 %vm398_vm4, %v645_v9  ;;  %v634_v33 = vpop.xlane.xlu1 %633 }
 0x44b   :  { %5234 = vrcp.f32 %v637_v20  ;;  %4824 = vmatpush3.bf16.msra.mxu1 %v5692_v63 }
 0x44c   :  { %5236 = vrcp.f32 %v634_v33  ;;  %4826 = vmatprep.subr.bf16.mxu1 %v5700_v10 }
 0x44d   :  { %5238 = vrcp.f32 %v6015_v7  ;;  %v5229_v51 = vpop.eup %5228 }
 0x44e   :  { %5240 = vrcp.f32 %v443_v28  ;;  %v647_v39 = vmul.f32 %v5229_v51, %v5988_v8  ;;  %v5088_v57 = vpop.permute.xlu1 %5087 }
 0x44f   :  { %4828 = vmatpush3.bf16.msra.mxu1 %v5700_v10  ;;  %5242 = vrcp.f32 %v6038_v54  ;;  %v5090_v26 = vunpack.i.h.bf16 %v5088_v57  ;;  %v5089_v9 = vunpack.i.l.bf16 %v5088_v57 }
 0x450   :  { %4830 = vmatprep.subr.bf16.mxu1 %v5709_v21  ;;  %5244 = vrcp.f32 %v449_v40 }
 0x451   :  { %v5231_v56 = vpop.eup %5230  ;;  %5246 = vrcp.f32 %v452_v62 }
 0x452   :  { %v1060_v29 = vpop.xlane.xlu0 %1059  ;;  %v646_v63 = vmul.f32 %v5231_v56, %v5994_v19  ;;  %v5233_v59 = vpop.eup %5232 }
 0x453   :  { %4832 = vmatpush3.bf16.msra.mxu1 %v5709_v21  ;;  %v459_v21 = vmul.f32 %v5233_v59, %v5918_v61  ;;  %v5084_v61 = vunpack.i.l.bf16 %v6076_v32 }
 0x454   :  { %4852 = vmatprep.subr.bf16.mxu1 %v4851_v31  ;;  %4414 = vmatprep.mubr.msk.f32.mxu1 %vm398_vm4, %v646_v63 }
 0x455   :  { %v5235_v10 = vpop.eup %5234  ;;  %4415 = vmatmul.mubr.msk.f32.gmra.mrb[20].mxu1 %vm398_vm4, %v647_v39  ;;  %v4859_v32 = vpack.c.bf16 %v5085_v5, %v5084_v61 }
 0x456   :  { %v5237_v7 = vpop.eup %5236  ;;  %v1057_v28 = vpop.xlane.xlu0 %1056  ;;  %v649_v45 = vmul.f32 %v5235_v10, %v6001_v60 }
 0x457   :  { %v648_v19 = vmul.f32 %v5237_v7, %v5999_v2  ;;  %5248 = vrcp.f32 %v1057_v28  ;;  %v5239_v54 = vpop.eup %5238 }
 0x458   :  { %v5241_v8 = vpop.eup %5240  ;;  %5250 = vrcp.f32 %v1060_v29  ;;  %v460_v60 = vmul.f32 %v5239_v54, %v5916_v46 }
 0x459   :  { %4417 = vmatprep.mubr.msk.f32.mxu1 %vm398_vm4, %v648_v19  ;;  %v5243_v2 = vpop.eup %5242  ;;  %v461_v62 = vmul.f32 %v5241_v8, %v5952_v12 }
 0x45a   :  { %v1066_v40 = vpop.xlane.xlu0 %1065  ;;  %4418 = vmatmul.mubr.msk.f32.gmra.mrb[22].mxu1 %vm398_vm4, %v649_v45  ;;  %v5245_v15 = vpop.eup %5244  ;;  %v462_v14 = vmul.f32 %v5243_v2, %v5943_v43  ;;  %v4881_v43 = vpack.c.bf16 %v5090_v26, %v5089_v9 }
 0x45b   :  { %4432 = vmatprep.mubr.msk.f32.mxu1 %vm398_vm4, %v459_v21  ;;  %v5247_v46 = vpop.eup %5246  ;;  %v463_v11 = vmul.f32 %v5245_v15, %v5956_v55  ;;  %5252 = vrcp.f32 %v1066_v40 }
 0x45c   :  { %v464_v20 = vmul.f32 %v5247_v46, %v5970_v13 }
 0x45e   :  { %4433 = vmatmul.mubr.msk.f32.vlgmr.msra.gmra.mrb[18].mxu1 %vm398_vm4, %v460_v60  ;;  %v1072_v47 = vpop.xlane.xlu0 %1071 }
 0x45f   :  { %4854 = vmatpush3.bf16.msra.mxu1 %v4851_v31  ;;  %4435 = vmatprep.mubr.msk.f32.mxu1 %vm398_vm4, %v461_v62 }
 0x460   :  { %4856 = vmatprep.subr.bf16.mxu1 %v4855_v0 }
 0x461   :  { %v5249_v12 = vpop.eup %5248 }
 0x462   :  { %4436 = vmatmul.mubr.msk.f32.gmra.mrb[20].mxu1 %vm398_vm4, %v462_v14  ;;  %v5251_v33 = vpop.eup %5250  ;;  %v1079_v30 = vmul.f32 %v5249_v12, %v6013_v50  ;;  %v1069_v38 = vpop.xlane.xlu0 %1068 }
 0x463   :  { %4858 = vmatpush3.bf16.msra.mxu1 %v4855_v0  ;;  %4438 = vmatprep.mubr.msk.f32.mxu1 %vm398_vm4, %v463_v11  ;;  %v1080_v55 = vmul.f32 %v5251_v33, %v6009_v23  ;;  %5254 = vrcp.f32 %v1069_v38 }
 0x464   :  { %4860 = vmatprep.subr.bf16.mxu1 %v4859_v32 }
 0x465   :  { %v5253_v7 = vpop.eup %5252 }
 0x466   :  { %4439 = vmatmul.mubr.msk.f32.gmra.mrb[22].mxu1 %vm398_vm4, %v464_v20  ;;  %v1082_v37 = vmul.f32 %v5253_v7, %v6019_v22 }
 0x467   :  { %4862 = vmatpush3.bf16.msra.mxu1 %v4859_v32  ;;  %4474 = vmatprep.mubr.msk.f32.mxu1 %vm398_vm4, %v1079_v30 }
 0x468   :  { %4882 = vmatprep.subr.bf16.mxu1 %v4881_v43 }
 0x46a   :  { %v1382_v51 = vpop.xlane.xlu0 %1381  ;;  %4475 = vmatmul.mubr.msk.f32.vlgmr.msra.gmra.mrb[18].mxu1 %vm398_vm4, %v1080_v55 }
 0x46b   :  { %4884 = vmatpush3.bf16.msra.mxu1 %v4881_v43 }
 0x46d   :  { %v5255_v28 = vpop.eup %5254 }
 0x46e   :  { %v1379_v56 = vpop.xlane.xlu0 %1378  ;;  %v1083_v40 = vmul.f32 %v5255_v28, %v6033_v3 }
 0x472   :  { %v1385_v29 = vpop.xlane.xlu0 %1384 }
 0x476   :  { %v1391_v13 = vpop.xlane.xlu0 %1390 }
 0x47a   :  { %v5093_v31 = vpop.permute.xlu0 %5092 }
 0x47b   :  { %v5095_v63 = vunpack.i.h.bf16 %v5093_v31  ;;  %v5094_v50 = vunpack.i.l.bf16 %v5093_v31 }
 0x47d   :  { %v4885_v39 = vpack.c.bf16 %v5095_v63, %v5094_v50 }
 0x47f   :  { %4886 = vmatprep.subr.bf16.mxu1 %v4885_v39  ;;  %v1063_v59 = vpop.xlane.xlu1 %1062 }
 0x480   :  { %5256 = vrcp.f32 %v1063_v59  ;;  %4888 = vmatpush3.bf16.msra.mxu1 %v4885_v39 }
 0x481   :  { %5258 = vrcp.f32 %v1072_v47 }
 0x482   :  { %5260 = vrcp.f32 %v1379_v56 }
 0x483   :  { %v1388_v23 = vpop.xlane.xlu1 %1387  ;;  %5262 = vrcp.f32 %v1382_v51 }
 0x484   :  { %5264 = vrcp.f32 %v1385_v29 }
 0x485   :  { %5266 = vrcp.f32 %v1388_v23 }
 0x486   :  { %5268 = vrcp.f32 %v1391_v13 }
 0x487   :  { %v1394_v10 = vpop.xlane.xlu1 %1393 }
 0x488   :  { %5270 = vrcp.f32 %v1394_v10 }
 0x48a   :  { %v5257_v45 = vpop.eup %5256 }
 0x48b   :  { %v5098_v19 = vpop.permute.xlu1 %5097  ;;  %v1081_v54 = vmul.f32 %v5257_v45, %v6060_v42  ;;  %v5259_v52 = vpop.eup %5258 }
 0x48c   :  { %v5100_v21 = vunpack.i.h.bf16 %v5098_v19  ;;  %v5099_v8 = vunpack.i.l.bf16 %v5098_v19  ;;  %v5261_v60 = vpop.eup %5260  ;;  %v1084_v42 = vmul.f32 %v5259_v52, %v6025_v17 }
 0x48d   :  { %4477 = vmatprep.mubr.msk.f32.mxu1 %vm398_vm4, %v1081_v54  ;;  %v5263_v62 = vpop.eup %5262  ;;  %v1401_v15 = vmul.f32 %v5261_v60, %v6046_v4 }
 0x48e   :  { %4478 = vmatmul.mubr.msk.f32.gmra.mrb[20].mxu1 %vm398_vm4, %v1082_v37  ;;  %v4889_v2 = vpack.c.bf16 %v5100_v21, %v5099_v8  ;;  %v5265_v22 = vpop.eup %5264  ;;  %v1402_v3 = vmul.f32 %v5263_v62, %v6041_v58  ;;  %v6144_v58 = vsub.s32 1, %v5674_v48 }
 0x48f   :  { %4480 = vmatprep.mubr.msk.f32.mxu1 %vm398_vm4, %v1083_v40  ;;  %v5267_v5 = vpop.eup %5266  ;;  %v1403_v61 = vmul.f32 %v5265_v22, %v6051_v53  ;;  %v6149_v53 = vld [vmem:[%s6959_s8] sm:$0xff] }
 0x490   :  { %4890 = vmatprep.subr.bf16.mxu1 %v4889_v2  ;;  %v5269_v0 = vpop.eup %5268  ;;  %v1404_v17 = vmul.f32 %v5267_v5, %v6064_v6 }
 0x491   :  { %4892 = vmatpush3.bf16.msra.mxu1 %v4889_v2  ;;  %v1405_v57 = vmul.f32 %v5269_v0, %v6056_v36  ;;  %v1547_v36 = vrot.slane %v6149_v53, %v6144_v58 }
 0x492   :  { %4481 = vmatmul.mubr.msk.f32.gmra.mrb[22].mxu1 %vm398_vm4, %v1084_v42  ;;  %4525 = vmatprep.subr.bf16.mxu1 %v6966_v1  ;;  %v5271_v4 = vpop.eup %5270 }
 0x493   :  { %4516 = vmatprep.mubr.msk.f32.mxu1 %vm398_vm4, %v1401_v15  ;;  %v1406_v47 = vmul.f32 %v5271_v4, %v6068_v16 }
 0x496   :  { %4517 = vmatmul.mubr.msk.f32.vlgmr.msra.gmra.mrb[18].mxu1 %vm398_vm4, %v1402_v3 }
 0x497   :  { %4519 = vmatprep.mubr.msk.f32.mxu1 %vm398_vm4, %v1403_v61 }
 0x49a   :  { %4520 = vmatmul.mubr.msk.f32.gmra.mrb[20].mxu1 %vm398_vm4, %v1404_v17 }
 0x49b   :  { %4522 = vmatprep.mubr.msk.f32.mxu1 %vm398_vm4, %v1405_v57  ;;  %v5156_v57 = vld [vmem:[%s6956_s5] sm:$0xff]  }
 0x49c   :  { %4526 = vmatpush3.bf16.msra.mxu1 %v5156_v57 }
 0x49d   :  { %4527 = vmatprep.subr.bf16.mxu1 %v6966_v1 }
 0x49e   :  { %4523 = vmatmul.mubr.msk.f32.gmra.mrb[22].mxu1 %vm398_vm4, %v1406_v47  ;;  %v5157_v47 = vld [vmem:[%s6956_s5 + $0x8] sm:$0xff]  }
 0x49f   :  { %4529 = vmatprep.mubr.msk.bf16.mxu1 %vm5467_vm0, %v6966_v1 }
 0x4a0   :  { %4528 = vmatpush3.bf16.msra.mxu1 %v5157_v47 }
 0x569   :  { %v4518_v6 = vpop.f32.mrb[18].mxu1 }
 0x56a   :  { %v1549_v14 = vadd.f32 %v4518_v6, %v1547_v36  ;;  %v1509_v46 = vpop.f32.mrb[19].mxu1 }
 0x56b   :  { %v1548_v16 = vadd.f32 %v1547_v36, %v1509_v46 }
 0x56c   :  { %v1555_v11 = vadd.f32 %v1549_v14, %v5587_v25 }
 0x56d   :  { %v4521_v12 = vpop.f32.mrb[20].mxu1  ;;  %v1554_v26 = vadd.f32 %v1548_v16, %v5585_v24 }
 0x56e   :  { %v1551_v9 = vadd.f32 %v4521_v12, %v1547_v36  ;;  %v1519_v32 = vpop.f32.mrb[21].mxu1  ;;  %v1563_v20 = vsel %vm194_vm2, %v1555_v11, 0.0 }
 0x56f   :  { %v1550_v33 = vadd.f32 %v1547_v36, %v1519_v32  ;;  %1564 = vadd.xlane.f32.xlu1 %v1563_v20  ;;  %v1560_v30 = vsel %vm194_vm2, %v1554_v26, 0.0  ;;  %v6195_v20 = vsub.s32 2, %v5674_v48 }
 0x570   :  { %1561 = vadd.xlane.f32.xlu0 %v1560_v30  ;;  %v1557_v38 = vadd.f32 %v1551_v9, %v5622_v35  ;;  %v6965_v30 = vsub.s32 3, %v5674_v48 }
 0x571   :  { %v4524_v43 = vpop.f32.mrb[22].mxu1  ;;  %v1556_v25 = vadd.f32 %v1550_v33, %v5620_v34 }
 0x572   :  { %v1529_v55 = vpop.f32.mrb[23].mxu1  ;;  %v1569_v51 = vsel %vm194_vm2, %v1557_v38, 0.0  ;;  %v1553_v24 = vadd.f32 %v4524_v43, %v1547_v36 }
 0x573   :  { %v1552_v56 = vadd.f32 %v1547_v36, %v1529_v55  ;;  %v1566_v29 = vsel %vm194_vm2, %v1556_v25, 0.0  ;;  %v1642_v55 = vrot.slane %v6149_v53, %v6195_v20 }
 0x574   :  { %1570 = vadd.xlane.f32.xlu0 %v1569_v51  ;;  %v1559_v63 = vadd.f32 %v1553_v24, %v5651_v44  ;;  %v1652_v24 = vrot.slane %v6149_v53, %v6965_v30 }
 0x575   :  { %v1558_v13 = vadd.f32 %v1552_v56, %v5645_v41 }
 0x576   :  { %v1575_v35 = vsel %vm194_vm2, %v1559_v63, 0.0 }
 0x577   :  { %v1572_v31 = vsel %vm194_vm2, %v1558_v13, 0.0 }
 0x578   :  { %1567 = vadd.xlane.f32.xlu0 %v1566_v29 }
 0x57c   :  { %1573 = vadd.xlane.f32.xlu0 %v1572_v31 }
 0x580   :  { %1576 = vadd.xlane.f32.xlu0 %v1575_v35 }
 0x5fc   :  { %v1565_v50 = vpop.xlane.xlu1 %1564 }
 0x5fd   :  { %v1580_v39 = vmul.f32 0.03125, %v1565_v50  ;;  %v1562_v59 = vpop.xlane.xlu0 %1561 }
 0x5fe   :  { %v1579_v23 = vmul.f32 0.03125, %v1562_v59 }
 0x5ff   :  { %v1586_v34 = vsub.f32 %v1555_v11, %v1580_v39 }
 0x600   :  { %v1585_v10 = vsub.f32 %v1554_v26, %v1579_v23 }
 0x601   :  { %v1571_v7 = vpop.xlane.xlu0 %1570  ;;  %v1592_v28 = vmul.f32 %v1586_v34, %v1586_v34 }
 0x602   :  { %v1582_v45 = vmul.f32 0.03125, %v1571_v7  ;;  %v1591_v19 = vmul.f32 %v1585_v10, %v1585_v10 }
 0x603   :  { %v1600_v41 = vsel %vm194_vm2, %v1592_v28, 0.0 }
 0x604   :  { %v6166_v54 = vsub.f32 %v1557_v38, %v1582_v45  ;;  %1601 = vadd.xlane.f32.xlu0 %v1600_v41  ;;  %v1597_v44 = vsel %vm194_vm2, %v1591_v19, 0.0 }
 0x605   :  { %1598 = vadd.xlane.f32.xlu1 %v1597_v44  ;;  %v1568_v21 = vpop.xlane.xlu0 %1567 }
 0x606   :  { %v1581_v8 = vmul.f32 0.03125, %v1568_v21  ;;  %v1594_v37 = vmul.f32 %v6166_v54, %v6166_v54 }
 0x608   :  { %v6171_v52 = vsub.f32 %v1556_v25, %v1581_v8  ;;  %v1606_v40 = vsel %vm194_vm2, %v1594_v37, 0.0 }
 0x609   :  { %1607 = vadd.xlane.f32.xlu0 %v1606_v40  ;;  %v1574_v60 = vpop.xlane.xlu0 %1573 }
 0x60a   :  { %v1583_v2 = vmul.f32 0.03125, %v1574_v60  ;;  %v1593_v42 = vmul.f32 %v6171_v52, %v6171_v52 }
 0x60c   :  { %v6176_v62 = vsub.f32 %v1558_v13, %v1583_v2  ;;  %v1603_v15 = vsel %vm194_vm2, %v1593_v42, 0.0 }
 0x60d   :  { %1604 = vadd.xlane.f32.xlu1 %v1603_v15  ;;  %v1577_v22 = vpop.xlane.xlu0 %1576 }
 0x60e   :  { %v1584_v3 = vmul.f32 0.03125, %v1577_v22  ;;  %v1595_v5 = vmul.f32 %v6176_v62, %v6176_v62 }
 0x610   :  { %v6181_v61 = vsub.f32 %v1559_v63, %v1584_v3  ;;  %v1609_v0 = vsel %vm194_vm2, %v1595_v5, 0.0  ;;  %v5158_v3 = vld [vmem:[%s6957_s6] sm:$0xff]   ;;  %v5159_v5 = vld [vmem:[%s6957_s6 + $0x8] sm:$0xff]  }
 0x611   :  { %1610 = vadd.xlane.f32.xlu1 %v1609_v0  ;;  %4542 = vmatpush3.bf16.msra.mxu0 %v5158_v3  ;;  %v5161_v0 = vld [vmem:[%s6957_s6 + $0x18] sm:$0xff]  }
 0x612   :  { %v1596_v17 = vmul.f32 %v6181_v61, %v6181_v61  ;;  %4543 = vmatprep.subr.bf16.mxu0 %v6966_v1 }
 0x614   :  { %v1612_v4 = vsel %vm194_vm2, %v1596_v17, 0.0  ;;  %v6964_v17 = vsub.s32 4, %v5674_v48 }
 0x615   :  { %1613 = vadd.xlane.f32.xlu0 %v1612_v4  ;;  %4544 = vmatpush3.bf16.msra.mxu0 %v5159_v5 }
 0x616   :  { %4545 = vmatprep.subr.bf16.mxu0 %v6966_v1  ;;  %v1669_v4 = vrot.slane %v6149_v53, %v6964_v17 }
 0x691   :  { %v1602_v36 = vpop.xlane.xlu0 %1601 }
 0x692   :  { %v1616_v6 = vmul.f32 0.03125, %v1602_v36  ;;  %v1599_v14 = vpop.xlane.xlu1 %1598 }
 0x693   :  { %v1615_v46 = vmul.f32 0.03125, %v1599_v14 }
 0x694   :  { %v1622_v16 = vadd.f32 1e-05, %v1616_v6 }
 0x695   :  { %v1621_v11 = vadd.f32 1e-05, %v1615_v46 }
 0x696   :  { %5272 = vrsqrt.f32 %v1622_v16  ;;  %v1608_v12 = vpop.xlane.xlu0 %1607 }
 0x697   :  { %5274 = vrsqrt.f32 %v1621_v11  ;;  %v1618_v26 = vmul.f32 0.03125, %v1608_v12 }
 0x699   :  { %v1624_v9 = vadd.f32 1e-05, %v1618_v26 }
 0x69a   :  { %v1605_v32 = vpop.xlane.xlu1 %1604 }
 0x69b   :  { %5276 = vrsqrt.f32 %v1624_v9  ;;  %v1617_v33 = vmul.f32 0.03125, %v1605_v32 }
 0x69d   :  { %v1623_v38 = vadd.f32 1e-05, %v1617_v33 }
 0x69e   :  { %v1611_v43 = vpop.xlane.xlu1 %1610 }
 0x69f   :  { %5278 = vrsqrt.f32 %v1623_v38  ;;  %v1619_v51 = vmul.f32 0.03125, %v1611_v43 }
 0x6a0   :  { %v5273_v56 = vpop.eup %5272 }
 0x6a1   :  { %v5275_v25 = vpop.eup %5274  ;;  %v1634_v29 = vmul.f32 %v5273_v56, %v1586_v34  ;;  %v1625_v13 = vadd.f32 1e-05, %v1619_v51 }
 0x6a2   :  { %v1633_v31 = vmul.f32 %v5275_v25, %v1585_v10  ;;  %v1614_v63 = vpop.xlane.xlu0 %1613 }
 0x6a3   :  { %v1644_v35 = vmul.f32 %v1642_v55, %v1634_v29  ;;  %5280 = vrsqrt.f32 %v1625_v13  ;;  %v1620_v50 = vmul.f32 0.03125, %v1614_v63 }
 0x6a4   :  { %v1643_v39 = vmul.f32 %v1642_v55, %v1633_v31 }
 0x6a5   :  { %v5277_v59 = vpop.eup %5276  ;;  %v6203_v23 = vadd.f32 %v1652_v24, %v1644_v35  ;;  %v1626_v7 = vadd.f32 1e-05, %v1620_v50 }
 0x6a6   :  { %v6205_v28 = vadd.f32 %v1652_v24, %v1643_v39  ;;  %v1636_v45 = vmul.f32 %v5277_v59, %v6166_v54 }
 0x6a7   :  { %5282 = vrsqrt.f32 %v1626_v7 }
 0x6a8   :  { %v1659_v19 = vpack.c.bf16 %v6203_v23, %v6205_v28  ;;  %v1646_v41 = vmul.f32 %v1642_v55, %v1636_v45 }
 0x6a9   :  { %v5279_v34 = vpop.eup %5278 }
 0x6aa   :  { %4530 = vmatmul.mubr.msk.bf16.vlgmr.msra.gmra.mrb[24].mxu1 %vm194_vm2, %v1659_v19  ;;  %v1635_v10 = vmul.f32 %v5279_v34, %v6171_v52  ;;  %v6216_v37 = vadd.f32 %v1652_v24, %v1646_v41 }
 0x6ab   :  { %4533 = vmatprep.mubr.msk.bf16.mxu1 %vm5467_vm0, %v6966_v1 }
 0x6ac   :  { %v1645_v44 = vmul.f32 %v1642_v55, %v1635_v10 }
 0x6ad   :  { %v5281_v21 = vpop.eup %5280 }
 0x6ae   :  { %v6214_v8 = vadd.f32 %v1652_v24, %v1645_v44  ;;  %v1637_v54 = vmul.f32 %v5281_v21, %v6176_v62 }
 0x6b0   :  { %v1660_v40 = vpack.c.bf16 %v6216_v37, %v6214_v8  ;;  %v1647_v2 = vmul.f32 %v1642_v55, %v1637_v54 }
 0x6b1   :  { %v5283_v60 = vpop.eup %5282 }
 0x6b2   :  { %4534 = vmatmul.mubr.msk.bf16.gmra.mrb[28].mxu1 %vm194_vm2, %v1660_v40  ;;  %v1638_v52 = vmul.f32 %v5283_v60, %v6181_v61  ;;  %v6225_v15 = vadd.f32 %v1652_v24, %v1647_v2  ;;  %v5160_v61 = vld [vmem:[%s6957_s6 + $0x10] sm:$0xff]  }
 0x6b3   :  { %4537 = vmatprep.mubr.msk.bf16.mxu1 %vm5467_vm0, %v6966_v1  ;;  %4546 = vmatpush3.bf16.msra.mxu0 %v5160_v61 }
 0x6b4   :  { %v1648_v42 = vmul.f32 %v1642_v55, %v1638_v52  ;;  %4547 = vmatprep.subr.bf16.mxu0 %v6966_v1 }
 0x6b6   :  { %v6227_v22 = vadd.f32 %v1652_v24, %v1648_v42 }
 0x6b7   :  { %4548 = vmatpush3.bf16.msra.mxu0 %v5161_v0 }
 0x6b8   :  { %v1661_v62 = vpack.c.bf16 %v6227_v22, %v6225_v15 }
 0x6ba   :  { %4538 = vmatmul.mubr.msk.bf16.gmra.mrb[32].mxu1 %vm194_vm2, %v1661_v62 }
 0x6bb   :  { %2088 = vmatprep.mubr.bf16.mxu1 %v5468_v18 }
 0x77d   :  { %v1725_v57 = vpop.f32.mrb[24].mxu1 }
 0x77e   :  { %v1726_v47 = vadd.f32 %v1725_v57, %v1669_v4  ;;  %v4531_v36 = vpop.f32.mrb[25].mxu1 }
 0x77f   :  { %v1728_v6 = vpop.f32.mrb[26].mxu1 }
 0x780   :  { %v1754_v14 = vmul.f32 0.044715, %v1726_v47  ;;  %v1729_v46 = vadd.f32 %v1728_v6, %v1669_v4  ;;  %v4532_v16 = vpop.f32.mrb[27].mxu1  ;;  %v1748_v36 = vmul.f32 0.5, %v1726_v47 }
 0x782   :  { %v1760_v11 = vmul.f32 %v1754_v14, %v1726_v47  ;;  %v1755_v12 = vmul.f32 0.044715, %v1729_v46  ;;  %v1749_v6 = vmul.f32 0.5, %v1729_v46 }
 0x784   :  { %v1766_v26 = vmul.f32 %v1760_v11, %v1726_v47  ;;  %v1761_v9 = vmul.f32 %v1755_v12, %v1729_v46 }
 0x785   :  { %v1733_v32 = vpop.f32.mrb[28].mxu1 }
 0x786   :  { %v1772_v33 = vadd.f32 %v1766_v26, %v1726_v47  ;;  %v1767_v38 = vmul.f32 %v1761_v9, %v1729_v46  ;;  %v1734_v43 = vadd.f32 %v1733_v32, %v1669_v4  ;;  %v4535_v55 = vpop.f32.mrb[29].mxu1 }
 0x787   :  { %v1736_v51 = vpop.f32.mrb[30].mxu1 }
 0x788   :  { %v1778_v56 = vmul.f32 0.7978846, %v1772_v33  ;;  %v1773_v25 = vadd.f32 %v1767_v38, %v1729_v46  ;;  %v1756_v24 = vmul.f32 0.044715, %v1734_v43  ;;  %v1737_v29 = vadd.f32 %v1736_v51, %v1669_v4  ;;  %v4536_v13 = vpop.f32.mrb[31].mxu1 }
 0x789   :  { %v1750_v55 = vmul.f32 0.5, %v1734_v43 }
 0x78a   :  { %5284 = vtanh.f32 %v1778_v56  ;;  %v1779_v31 = vmul.f32 0.7978846, %v1773_v25  ;;  %v1762_v63 = vmul.f32 %v1756_v24, %v1734_v43  ;;  %v1757_v35 = vmul.f32 0.044715, %v1737_v29 }
 0x78b   :  { %v1751_v47 = vmul.f32 0.5, %v1737_v29 }
 0x78c   :  { %5286 = vtanh.f32 %v1779_v31  ;;  %v1768_v50 = vmul.f32 %v1762_v63, %v1734_v43  ;;  %v1763_v39 = vmul.f32 %v1757_v35, %v1737_v29 }
 0x78d   :  { %v1741_v59 = vpop.f32.mrb[32].mxu1 }
 0x78e   :  { %v1774_v7 = vadd.f32 %v1768_v50, %v1734_v43  ;;  %v1769_v45 = vmul.f32 %v1763_v39, %v1737_v29  ;;  %v1742_v19 = vadd.f32 %v1741_v59, %v1669_v4  ;;  %v4539_v34 = vpop.f32.mrb[33].mxu1  ;;  %v6963_v43 = vsub.s32 5, %v5674_v48 }
 0x78f   :  { %v1744_v10 = vpop.f32.mrb[34].mxu1 }
 0x790   :  { %v1780_v41 = vmul.f32 0.7978846, %v1774_v7  ;;  %v1775_v44 = vadd.f32 %v1769_v45, %v1737_v29  ;;  %v1758_v21 = vmul.f32 0.044715, %v1742_v19  ;;  %v1745_v54 = vadd.f32 %v1744_v10, %v1669_v4  ;;  %v4540_v40 = vpop.f32.mrb[35].mxu1 }
 0x791   :  { %v1752_v63 = vmul.f32 0.5, %v1742_v19  ;;  %v1816_v29 = vrot.slane %v6149_v53, %v6963_v43 }
 0x792   :  { %5288 = vtanh.f32 %v1780_v41  ;;  %v1781_v60 = vmul.f32 0.7978846, %v1775_v44  ;;  %v1764_v52 = vmul.f32 %v1758_v21, %v1742_v19  ;;  %v1759_v2 = vmul.f32 0.044715, %v1745_v54 }
 0x793   :  { %v1753_v35 = vmul.f32 0.5, %v1745_v54 }
 0x794   :  { %v5285_v42 = vpop.eup %5284  ;;  %5290 = vtanh.f32 %v1781_v60  ;;  %v1770_v62 = vmul.f32 %v1764_v52, %v1742_v19  ;;  %v1765_v3 = vmul.f32 %v1759_v2, %v1745_v54 }
 0x795   :  { %v1790_v5 = vadd.f32 1.0, %v5285_v42 }
 0x796   :  { %v5287_v61 = vpop.eup %5286  ;;  %v1776_v0 = vadd.f32 %v1770_v62, %v1742_v19  ;;  %v1771_v57 = vmul.f32 %v1765_v3, %v1745_v54 }
 0x797   :  { %v1791_v14 = vadd.f32 1.0, %v5287_v61  ;;  %v1796_v12 = vmul.f32 %v1790_v5, %v1748_v36 }
 0x798   :  { %v1782_v16 = vmul.f32 0.7978846, %v1776_v0  ;;  %v1777_v11 = vadd.f32 %v1771_v57, %v1745_v54 }
 0x799   :  { %v1797_v4 = vmul.f32 %v1791_v14, %v1749_v6 }
 0x79a   :  { %5292 = vtanh.f32 %v1782_v16  ;;  %v1783_v26 = vmul.f32 0.7978846, %v1777_v11 }
 0x79b   :  { %v1802_v9 = vpack.c.bf16 %v1797_v4, %v1796_v12 }
 0x79c   :  { %v5289_v32 = vpop.eup %5288  ;;  %5294 = vtanh.f32 %v1783_v26 }
 0x79d   :  { %4550 = vmatmul.mubr.msk.bf16.vlgmr.msra.gmra.mrb[32].mxu0 %vm92_vm1, %v1802_v9  ;;  %v1792_v33 = vadd.f32 1.0, %v5289_v32 }
 0x79e   :  { %v5291_v38 = vpop.eup %5290  ;;  %4553 = vmatprep.mubr.msk.bf16.mxu0 %vm5467_vm0, %v6966_v1 }
 0x79f   :  { %v1793_v46 = vadd.f32 1.0, %v5291_v38  ;;  %v1798_v51 = vmul.f32 %v1792_v33, %v1750_v55 }
 0x7a1   :  { %v1799_v56 = vmul.f32 %v1793_v46, %v1751_v47 }
 0x7a3   :  { %v1803_v25 = vpack.c.bf16 %v1799_v56, %v1798_v51 }
 0x7a4   :  { %v5293_v24 = vpop.eup %5292 }
 0x7a5   :  { %4554 = vmatmul.mubr.msk.bf16.gmra.mrb[36].mxu0 %vm92_vm1, %v1803_v25  ;;  %v1794_v13 = vadd.f32 1.0, %v5293_v24 }
 0x7a6   :  { %v5295_v31 = vpop.eup %5294  ;;  %4557 = vmatprep.mubr.msk.bf16.mxu0 %vm5467_vm0, %v6966_v1 }
 0x7a7   :  { %v1795_v50 = vadd.f32 1.0, %v5295_v31  ;;  %v1800_v39 = vmul.f32 %v1794_v13, %v1752_v63 }
 0x7a9   :  { %v1801_v59 = vmul.f32 %v1795_v50, %v1753_v35 }
 0x7ab   :  { %v1804_v7 = vpack.c.bf16 %v1801_v59, %v1800_v39 }
 0x7ad   :  { %4558 = vmatmul.mubr.msk.bf16.gmra.mrb[40].mxu0 %vm92_vm1, %v1804_v7 }
 0x870   :  { %v1884_v45 = vpop.f32.mrb[32].mxu0 }
 0x871   :  { %v1885_v34 = vadd.f32 %v1884_v45, %v1816_v29  ;;  %v4551_v10 = vpop.f32.mrb[33].mxu0 }
 0x872   :  { %v1887_v41 = vpop.f32.mrb[34].mxu0 }
 0x873   :  { %v1888_v44 = vadd.f32 %v1887_v41, %v1816_v29  ;;  %v4552_v21 = vpop.f32.mrb[35].mxu0  ;;  %v1907_v19 = vadd.f32 %v1885_v34, %v6205_v28 }
 0x875   :  { %v1908_v54 = vadd.f32 %v1888_v44, %v6203_v23  ;;  %v1913_v40 = vsel %vm194_vm2, %v1907_v19, 0.0 }
 0x876   :  { %1914 = vadd.xlane.f32.xlu1 %v1913_v40  ;;  %v5162_v40 = vld [vmem:[%s6955_s4 + $0x20] ss:$8 sps:$4 sm:$0xff]  }
 0x877   :  { %v1916_v60 = vsel %vm194_vm2, %v1908_v54, 0.0 }
 0x878   :  { %1917 = vadd.xlane.f32.xlu0 %v1916_v60  ;;  %v1892_v52 = vpop.f32.mrb[36].mxu0  ;;  %v5167_v60 = vld [vmem:[%s6955_s4 + $0x34] ss:$8 sps:$4 sm:$0xff]  }
 0x879   :  { %v1893_v2 = vadd.f32 %v1892_v52, %v1816_v29  ;;  %v4555_v42 = vpop.f32.mrb[37].mxu0  ;;  %v5165_v52 = vld [vmem:[%s6955_s4 + $0x30] ss:$8 sps:$4 sm:$0xff]  }
 0x87a   :  { %v1895_v62 = vpop.f32.mrb[38].mxu0 }
 0x87b   :  { %v1896_v3 = vadd.f32 %v1895_v62, %v1816_v29  ;;  %v4556_v5 = vpop.f32.mrb[39].mxu0  ;;  %v1909_v61 = vadd.f32 %v1893_v2, %v6214_v8 }
 0x87d   :  { %v1910_v0 = vadd.f32 %v1896_v3, %v6216_v37  ;;  %v1919_v28 = vsel %vm194_vm2, %v1909_v61, 0.0 }
 0x87e   :  { %1920 = vadd.xlane.f32.xlu1 %v1919_v28 }
 0x87f   :  { %v1922_v23 = vsel %vm194_vm2, %v1910_v0, 0.0 }
 0x880   :  { %1923 = vadd.xlane.f32.xlu0 %v1922_v23  ;;  %v1900_v57 = vpop.f32.mrb[40].mxu0  ;;  %v6962_v23 = vsub.s32 6, %v5674_v48 }
 0x881   :  { %v1901_v36 = vadd.f32 %v1900_v57, %v1816_v29  ;;  %v4559_v6 = vpop.f32.mrb[41].mxu0 }
 0x882   :  { %v1903_v14 = vpop.f32.mrb[42].mxu0 }
 0x883   :  { %v1904_v16 = vadd.f32 %v1903_v14, %v1816_v29  ;;  %v4560_v11 = vpop.f32.mrb[43].mxu0  ;;  %v1911_v12 = vadd.f32 %v1901_v36, %v6225_v15 }
 0x884   :  { %v6961_v11 = vsub.s32 7, %v5674_v48 }
 0x885   :  { %v1912_v4 = vadd.f32 %v1904_v16, %v6227_v22  ;;  %v1925_v8 = vsel %vm194_vm2, %v1911_v12, 0.0  ;;  %v1994_v16 = vrot.slane %v6149_v53, %v6962_v23 }
 0x886   :  { %1926 = vadd.xlane.f32.xlu1 %v1925_v8 }
 0x887   :  { %v1928_v37 = vsel %vm194_vm2, %v1912_v4, 0.0 }
 0x888   :  { %1929 = vadd.xlane.f32.xlu0 %v1928_v37 }
 0x903   :  { %v1915_v26 = vpop.xlane.xlu1 %1914 }
 0x904   :  { %v1931_v9 = vmul.f32 0.03125, %v1915_v26 }
 0x905   :  { %v1918_v32 = vpop.xlane.xlu0 %1917 }
 0x906   :  { %v1937_v33 = vsub.f32 %v1907_v19, %v1931_v9  ;;  %v1932_v38 = vmul.f32 0.03125, %v1918_v32  ;;  %v2004_v9 = vrot.slane %v6149_v53, %v6961_v11 }
 0x908   :  { %v6275_v55 = vsub.f32 %v1908_v54, %v1932_v38  ;;  %v1943_v47 = vmul.f32 %v1937_v33, %v1937_v33  ;;  %v5164_v54 = vld [vmem:[%s6955_s4 + $0x24] ss:$8 sps:$4 sm:$0xff]  }
 0x909   :  { %2056 = vmatprep.subr.bf16.mxu1 %v5164_v54  ;;  %v37_v54 = vld [vmem:[%s6959_s8 + $0x18] sm:$0xff] }
 0x90a   :  { %v1949_v46 = vsel %vm194_vm2, %v1943_v47, 0.0  ;;  %v1944_v15 = vmul.f32 %v6275_v55, %v6275_v55  ;;  %2057 = vmatpush1.bf16.msra.mxu1 %v5162_v40 }
 0x90b   :  { %v1921_v22 = vpop.xlane.xlu1 %1920  ;;  %1950 = vadd.xlane.f32.xlu1 %v1949_v46  ;;  %2058 = vmatprep.subr.bf16.mxu1 %v5167_v60  ;;  %v2026_v60 = vrot.slane %v37_v54, %v5677_v49 }
 0x90c   :  { %v1933_v51 = vmul.f32 0.03125, %v1921_v22  ;;  %v1952_v56 = vsel %vm194_vm2, %v1944_v15, 0.0 }
 0x90d   :  { %1953 = vadd.xlane.f32.xlu0 %v1952_v56  ;;  %v1924_v25 = vpop.xlane.xlu0 %1923 }
 0x90e   :  { %v6281_v24 = vsub.f32 %v1909_v61, %v1933_v51  ;;  %v1934_v13 = vmul.f32 0.03125, %v1924_v25  ;;  %2059 = vmatpush1.bf16.msra.mxu1 %v5165_v52 }
 0x910   :  { %v6283_v31 = vsub.f32 %v1910_v0, %v1934_v13  ;;  %v1945_v63 = vmul.f32 %v6281_v24, %v6281_v24 }
 0x912   :  { %v1955_v35 = vsel %vm194_vm2, %v1945_v63, 0.0  ;;  %v1946_v50 = vmul.f32 %v6283_v31, %v6283_v31 }
 0x913   :  { %1956 = vadd.xlane.f32.xlu1 %v1955_v35  ;;  %v1927_v39 = vpop.xlane.xlu1 %1926 }
 0x914   :  { %v1935_v59 = vmul.f32 0.03125, %v1927_v39  ;;  %v1958_v7 = vsel %vm194_vm2, %v1946_v50, 0.0 }
 0x915   :  { %1959 = vadd.xlane.f32.xlu0 %v1958_v7  ;;  %v1930_v29 = vpop.xlane.xlu0 %1929 }
 0x916   :  { %v6291_v45 = vsub.f32 %v1911_v12, %v1935_v59  ;;  %v1936_v34 = vmul.f32 0.03125, %v1930_v29 }
 0x918   :  { %v6293_v10 = vsub.f32 %v1912_v4, %v1936_v34  ;;  %v1947_v41 = vmul.f32 %v6291_v45, %v6291_v45 }
 0x91a   :  { %v1961_v44 = vsel %vm194_vm2, %v1947_v41, 0.0  ;;  %v1948_v21 = vmul.f32 %v6293_v10, %v6293_v10 }
 0x91b   :  { %1962 = vadd.xlane.f32.xlu1 %v1961_v44 }
 0x91c   :  { %v1964_v19 = vsel %vm194_vm2, %v1948_v21, 0.0 }
 0x91d   :  { %1965 = vadd.xlane.f32.xlu0 %v1964_v19 }
 0x998   :  { %v1951_v2 = vpop.xlane.xlu1 %1950 }
 0x999   :  { %v1967_v42 = vmul.f32 0.03125, %v1951_v2 }
 0x99a   :  { %v1954_v62 = vpop.xlane.xlu0 %1953 }
 0x99b   :  { %v1973_v3 = vadd.f32 1e-05, %v1967_v42  ;;  %v1968_v5 = vmul.f32 0.03125, %v1954_v62 }
 0x99d   :  { %5296 = vrsqrt.f32 %v1973_v3  ;;  %v1974_v61 = vadd.f32 1e-05, %v1968_v5 }
 0x99f   :  { %5298 = vrsqrt.f32 %v1974_v61 }
 0x9a0   :  { %v1957_v0 = vpop.xlane.xlu1 %1956 }
 0x9a1   :  { %v1969_v28 = vmul.f32 0.03125, %v1957_v0 }
 0x9a2   :  { %v1960_v57 = vpop.xlane.xlu0 %1959 }
 0x9a3   :  { %v1975_v36 = vadd.f32 1e-05, %v1969_v28  ;;  %v1970_v6 = vmul.f32 0.03125, %v1960_v57 }
 0x9a5   :  { %5300 = vrsqrt.f32 %v1975_v36  ;;  %v1976_v14 = vadd.f32 1e-05, %v1970_v6 }
 0x9a7   :  { %v5297_v12 = vpop.eup %5296  ;;  %5302 = vrsqrt.f32 %v1976_v14 }
 0x9a8   :  { %v1985_v4 = vmul.f32 %v5297_v12, %v1937_v33  ;;  %v1963_v8 = vpop.xlane.xlu1 %1962 }
 0x9a9   :  { %v5299_v37 = vpop.eup %5298  ;;  %v1971_v26 = vmul.f32 0.03125, %v1963_v8 }
 0x9aa   :  { %v1995_v32 = vmul.f32 %v1994_v16, %v1985_v4  ;;  %v1986_v38 = vmul.f32 %v5299_v37, %v6275_v55  ;;  %v1966_v47 = vpop.xlane.xlu0 %1965 }
 0x9ab   :  { %v1977_v46 = vadd.f32 1e-05, %v1971_v26  ;;  %v1972_v15 = vmul.f32 0.03125, %v1966_v47 }
 0x9ac   :  { %v1996_v22 = vmul.f32 %v1994_v16, %v1986_v38  ;;  %v6322_v56 = vadd.f32 %v2004_v9, %v1995_v32 }
 0x9ad   :  { %5304 = vrsqrt.f32 %v1977_v46  ;;  %v1978_v51 = vadd.f32 1e-05, %v1972_v15 }
 0x9ae   :  { %v6324_v25 = vadd.f32 %v2004_v9, %v1996_v22 }
 0x9af   :  { %v5301_v33 = vpop.eup %5300  ;;  %5306 = vrsqrt.f32 %v1978_v51 }
 0x9b0   :  { %v6328_v13 = vpack.c.bf16 %v6324_v25, %v6322_v56  ;;  %v1987_v53 = vmul.f32 %v5301_v33, %v6281_v24 }
 0x9b1   :  { %v5303_v63 = vpop.eup %5302 }
 0x9b2   :  { %v1997_v55 = vmul.f32 %v1994_v16, %v1987_v53  ;;  %v1988_v35 = vmul.f32 %v5303_v63, %v6283_v31  ;;  %4009 = vmatmul.mubr.msk.bf16.vlgmr.msra.gmra.mrb[36].mxu1 %vm194_vm2, %v6328_v13  ;;  %4895 = vmatprep.subr.msk.bf16.mxu0 %vm5591_vm3, %v6328_v13 }
 0x9b3   :  { %4913 = vmatprep.subr.msk.bf16.mxu1 %vm5591_vm3, %v6328_v13  ;;  %4898 = vmatpush3.bf16.xpose.msk.msra.mxu0 %vm5591_vm3, %v6328_v13 }
 0x9b4   :  { %v1998_v24 = vmul.f32 %v1994_v16, %v1988_v35  ;;  %4916 = vmatpush3.bf16.xpose.msk.msra.mxu1 %vm5591_vm3, %v6328_v13  ;;  %2098 = vmatprep.mubr.bf16.mxu1 %v5468_v18  ;;  %v6347_v31 = vadd.f32 %v2004_v9, %v1997_v55 }
 0x9b6   :  { %v6349_v50 = vadd.f32 %v2004_v9, %v1998_v24 }
 0x9b7   :  { %v5305_v39 = vpop.eup %5304 }
 0x9b8   :  { %v6353_v59 = vpack.c.bf16 %v6349_v50, %v6347_v31  ;;  %v1989_v7 = vmul.f32 %v5305_v39, %v6291_v45 }
 0x9b9   :  { %v5307_v29 = vpop.eup %5306 }
 0x9ba   :  { %v1999_v34 = vmul.f32 %v1994_v16, %v1989_v7  ;;  %v1990_v41 = vmul.f32 %v5307_v29, %v6293_v10  ;;  %4010 = vmatmul.mubr.msk.bf16.gmra.mrb[40].mxu1 %vm194_vm2, %v6353_v59  ;;  %4901 = vmatprep.subr.msk.bf16.mxu0 %vm5591_vm3, %v6353_v59 }
 0x9bb   :  { %4919 = vmatprep.subr.msk.bf16.mxu1 %vm5591_vm3, %v6353_v59  ;;  %4904 = vmatpush3.bf16.xpose.msk.msra.mxu0 %vm5591_vm3, %v6353_v59 }
 0x9bc   :  { %v2000_v45 = vmul.f32 %v1994_v16, %v1990_v41  ;;  %4922 = vmatpush3.bf16.xpose.msk.msra.mxu1 %vm5591_vm3, %v6353_v59  ;;  %2108 = vmatprep.mubr.bf16.mxu1 %v5468_v18  ;;  %v6372_v10 = vadd.f32 %v2004_v9, %v1999_v34  ;;  %v36_v18 = vld [vmem:[%s6959_s8 + $0x10] sm:$0xff] }
 0x9bd   :  { %v2022_v19 = vrot.slane %v36_v18, %v5677_v49 }
 0x9be   :  { %v6374_v44 = vadd.f32 %v2004_v9, %v2000_v45 }
 0x9c0   :  { %v6378_v21 = vpack.c.bf16 %v6374_v44, %v6372_v10 }
 0x9c2   :  { %4011 = vmatmul.mubr.msk.bf16.gmra.mrb[44].mxu1 %vm194_vm2, %v6378_v21  ;;  %4907 = vmatprep.subr.msk.bf16.mxu0 %vm5591_vm3, %v6378_v21 }
 0x9c3   :  { %4925 = vmatprep.subr.msk.bf16.mxu1 %vm5591_vm3, %v6378_v21  ;;  %4910 = vmatpush3.bf16.xpose.msk.msra.mxu0 %vm5591_vm3, %v6378_v21 }
 0x9c4   :  { %4928 = vmatpush3.bf16.xpose.msk.msra.mxu1 %vm5591_vm3, %v6378_v21 }
 0x9c5   :  { %4955 = vmatprep.subr.msk.bf16.mxu1 %vm5591_vm3, %v6328_v13 }
 0xa85   :  { %v2090_v40 = vpop.f32.mrb[36].mxu1 }
 0xa86   :  { %v6405_v52 = vadd.f32 %v2090_v40, %v2022_v19  ;;  %v2092_v2 = vpop.f32.mrb[37].mxu1  ;;  %v6498_v40 = vld [vmem:[%s6953_s2 + $0x8] sm:$0xff] }
 0xa87   :  { %v2094_v42 = vpop.f32.mrb[38].mxu1  ;;  %v2093_v5 = vadd.f32 %v2092_v2, %v2026_v60 }
 0xa88   :  { %v6407_v62 = vadd.f32 %v2094_v42, %v2022_v19  ;;  %v2096_v3 = vpop.f32.mrb[39].mxu1  ;;  %2316 = vrot.lane.b32.xlu1 %v6405_v52, %s5469_s3  ;;  %4573 = vmatprep.mubr.msk.f32.mxu0 %vm194_vm2, %v6405_v52  ;;  %v6506_v42 = vld [vmem:[%s6953_s2] sm:$0xff] }
 0xa89   :  { %v2097_v61 = vadd.f32 %v2096_v3, %v2026_v60 }
 0xa8a   :  { %2318 = vrot.lane.b32.xlu0 %v6407_v62, %s5469_s3  ;;  %4574 = vmatmul.mubr.msk.f32.vlgmr.msra.gmra.mrb[30].mxu0 %vm194_vm2, %v6407_v62 }
 0xa8b   :  { %v6417_v0 = vpack.i.bf16 %v2097_v61, %v2093_v5  ;;  %v6419_v28 = vpack.c.bf16 %v2097_v61, %v2093_v5 }
 0xa8d   :  { %v2100_v57 = vpop.f32.mrb[40].mxu1 }
 0xa8e   :  { %v6421_v36 = vadd.f32 %v2100_v57, %v2022_v19  ;;  %v2102_v6 = vpop.f32.mrb[41].mxu1 }
 0xa8f   :  { %v2104_v14 = vpop.f32.mrb[42].mxu1  ;;  %v2103_v4 = vadd.f32 %v2102_v6, %v2026_v60  ;;  %v6518_v6 = vld [vmem:[%s6953_s2 + $0x18] sm:$0xff] }
 0xa90   :  { %v6423_v16 = vadd.f32 %v2104_v14, %v2022_v19  ;;  %v2106_v12 = vpop.f32.mrb[43].mxu1  ;;  %2320 = vrot.lane.b32.xlu1 %v6421_v36, %s5469_s3  ;;  %4576 = vmatprep.mubr.msk.f32.mxu0 %vm194_vm2, %v6421_v36 }
 0xa91   :  { %v2107_v8 = vadd.f32 %v2106_v12, %v2026_v60 }
 0xa92   :  { %4577 = vmatmul.mubr.msk.f32.gmra.mrb[44].mxu0 %vm194_vm2, %v6423_v16 }
 0xa93   :  { %v6431_v37 = vpack.i.bf16 %v2107_v8, %v2103_v4  ;;  %v6433_v26 = vpack.c.bf16 %v2107_v8, %v2103_v4  ;;  %v6526_v4 = vld [vmem:[%s6953_s2 + $0x10] sm:$0xff] }
 0xa94   :  { %2322 = vrot.lane.b32.xlu1 %v6423_v16, %s5469_s3 }
 0xa95   :  { %v2110_v9 = vpop.f32.mrb[44].mxu1 }
 0xa96   :  { %v6437_v32 = vadd.f32 %v2110_v9, %v2022_v19  ;;  %v2112_v38 = vpop.f32.mrb[45].mxu1 }
 0xa97   :  { %v2114_v47 = vpop.f32.mrb[46].mxu1  ;;  %v2113_v22 = vadd.f32 %v2112_v38, %v2026_v60 }
 0xa98   :  { %v6439_v46 = vadd.f32 %v2114_v47, %v2022_v19  ;;  %v2116_v15 = vpop.f32.mrb[47].mxu1  ;;  %2324 = vrot.lane.b32.xlu0 %v6437_v32, %s5469_s3  ;;  %4579 = vmatprep.mubr.msk.f32.mxu0 %vm194_vm2, %v6437_v32 }
 0xa99   :  { %v2117_v51 = vadd.f32 %v2116_v15, %v2026_v60  ;;  %v6538_v15 = vld [vmem:[%s6953_s2 + $0x28] sm:$0xff] }
 0xa9a   :  { %2326 = vrot.lane.b32.xlu1 %v6439_v46, %s5469_s3  ;;  %4580 = vmatmul.mubr.msk.f32.gmra.mrb[46].mxu0 %vm194_vm2, %v6439_v46 }
 0xa9b   :  { %v6449_v33 = vpack.i.bf16 %v2117_v51, %v2113_v22  ;;  %v6451_v53 = vpack.c.bf16 %v2117_v51, %v2113_v22 }
 0xa9c   :  { %2751 = vrot.lane.b32.xlu0 %v6405_v52, %s5470_s29 }
 0xa9e   :  { %2753 = vrot.lane.b32.xlu1 %v6407_v62, %s5470_s29 }
 0xaa0   :  { %2755 = vrot.lane.b32.xlu0 %v6421_v36, %s5470_s29 }
 0xaa2   :  { %2757 = vrot.lane.b32.xlu1 %v6423_v16, %s5470_s29 }
 0xaa4   :  { %2759 = vrot.lane.b32.xlu0 %v6437_v32, %s5470_s29 }
 0xaa6   :  { %2761 = vrot.lane.b32.xlu1 %v6439_v46, %s5470_s29 }
 0xafa   :  { %v2317_v63 = vpop.permute.xlu1 %2316 }
 0xafb   :  { %4594 = vmatprep.mubr.msk.f32.mxu1 %vm194_vm2, %v2317_v63  ;;  %v6544_v63 = vld [vmem:[%s6953_s2 + $0x20] sm:$0xff] }
 0xafc   :  { %v2319_v55 = vpop.permute.xlu0 %2318 }
 0xafd   :  { %4595 = vmatmul.mubr.msk.f32.vlgmr.msra.gmra.mrb[48].mxu1 %vm194_vm2, %v2319_v55 }
 0xafe   :  { %4958 = vmatpush3.bf16.xpose.msk.msra.mxu1 %vm5591_vm3, %v6328_v13 }
 0xaff   :  { %4961 = vmatprep.subr.msk.bf16.mxu1 %vm5591_vm3, %v6353_v59 }
 0xb02   :  { %v2321_v35 = vpop.permute.xlu1 %2320 }
 0xb03   :  { %4597 = vmatprep.mubr.msk.f32.mxu1 %vm194_vm2, %v2321_v35 }
 0xb06   :  { %4964 = vmatpush3.bf16.xpose.msk.msra.mxu1 %vm5591_vm3, %v6353_v59  ;;  %v2323_v24 = vpop.permute.xlu1 %2322 }
 0xb07   :  { %4967 = vmatprep.subr.msk.bf16.mxu1 %vm5591_vm3, %v6378_v21  ;;  %4598 = vmatmul.mubr.msk.f32.gmra.mrb[50].mxu1 %vm194_vm2, %v2323_v24 }
 0xb0a   :  { %v2325_v39 = vpop.permute.xlu0 %2324 }
 0xb0b   :  { %4600 = vmatprep.mubr.msk.f32.mxu1 %vm194_vm2, %v2325_v39 }
 0xb0c   :  { %v2327_v7 = vpop.permute.xlu1 %2326 }
 0xb0d   :  { %4601 = vmatmul.mubr.msk.f32.gmra.mrb[52].mxu1 %vm194_vm2, %v2327_v7 }
 0xb0e   :  { %4970 = vmatpush3.bf16.xpose.msk.msra.mxu1 %vm5591_vm3, %v6378_v21  ;;  %v2752_v29 = vpop.permute.xlu0 %2751 }
 0xb0f   :  { %4657 = vmatprep.mubr.msk.f32.mxu1 %vm194_vm2, %v2752_v29  ;;  %4729 = vmatprep.subr.bf16.mxu1 %v6966_v1 }
 0xb10   :  { %v2754_v34 = vpop.permute.xlu1 %2753 }
 0xb12   :  { %v2756_v41 = vpop.permute.xlu0 %2755 }
 0xb14   :  { %v2758_v45 = vpop.permute.xlu1 %2757 }
 0xb15   :  { %4658 = vmatmul.mubr.msk.f32.vlgmr.msra.gmra.mrb[54].mxu1 %vm194_vm2, %v2754_v34 }
 0xb16   :  { %4660 = vmatprep.mubr.msk.f32.mxu1 %vm194_vm2, %v2756_v41  ;;  %v2760_v18 = vpop.permute.xlu0 %2759 }
 0xb18   :  { %v2762_v19 = vpop.permute.xlu1 %2761 }
 0xb19   :  { %4661 = vmatmul.mubr.msk.f32.gmra.mrb[56].mxu1 %vm194_vm2, %v2758_v45 }
 0xb1a   :  { %4663 = vmatprep.mubr.msk.f32.mxu1 %vm194_vm2, %v2760_v18 }
 0xb1d   :  { %4664 = vmatmul.mubr.msk.f32.gmra.mrb[58].mxu1 %vm194_vm2, %v2762_v19 }
 0xb1e   :  { %4733 = vmatprep.mubr.msk.bf16.mxu1 %vm5467_vm0, %v6966_v1 }
 0xb5d   :  { %v4575_v54 = vpop.f32.mrb[30].mxu0 }
 0xb5e   :  { %v6501_v60 = vadd.f32 %v6498_v40, %v4575_v54  ;;  %v2221_v2 = vpop.f32.mrb[31].mxu0 }
 0xb5f   :  { %v6509_v3 = vadd.f32 %v6506_v42, %v2221_v2 }
 0xb60   :  { %v2253_v5 = vsel %vm398_vm4, %v6501_v60, -inf }
 0xb61   :  { %2254 = vmax.xlane.f32.xlu0 %v2253_v5  ;;  %v2250_v61 = vsel %vm398_vm4, %v6509_v3, -inf }
 0xb62   :  { %2251 = vmax.xlane.f32.xlu1 %v2250_v61 }
 0xb65   :  { %v4578_v57 = vpop.f32.mrb[44].mxu0 }
 0xb66   :  { %v6521_v14 = vadd.f32 %v6518_v6, %v4578_v57  ;;  %v2231_v12 = vpop.f32.mrb[45].mxu0 }
 0xb67   :  { %v6529_v8 = vadd.f32 %v6526_v4, %v2231_v12 }
 0xb68   :  { %v2259_v9 = vsel %vm398_vm4, %v6521_v14, -inf }
 0xb69   :  { %2260 = vmax.xlane.f32.xlu0 %v2259_v9  ;;  %v2256_v38 = vsel %vm398_vm4, %v6529_v8, -inf }
 0xb6a   :  { %2257 = vmax.xlane.f32.xlu1 %v2256_v38 }
 0xb6d   :  { %v4581_v47 = vpop.f32.mrb[46].mxu0 }
 0xb6e   :  { %v2247_v22 = vadd.f32 %v6538_v15, %v4581_v47  ;;  %v2241_v51 = vpop.f32.mrb[47].mxu0 }
 0xb6f   :  { %v6547_v55 = vadd.f32 %v6544_v63, %v2241_v51 }
 0xb70   :  { %v2265_v35 = vsel %vm398_vm4, %v2247_v22, -inf }
 0xb71   :  { %2266 = vmax.xlane.f32.xlu0 %v2265_v35  ;;  %v2262_v24 = vsel %vm398_vm4, %v6547_v55, -inf }
 0xb72   :  { %2263 = vmax.xlane.f32.xlu1 %v2262_v24 }
 0xbd0   :  { %v4596_v39 = vpop.f32.mrb[48].mxu1 }
 0xbd1   :  { %v6553_v7 = vadd.f32 %v6498_v40, %v4596_v39  ;;  %v2406_v29 = vpop.f32.mrb[49].mxu1 }
 0xbd2   :  { %v6556_v34 = vadd.f32 %v6506_v42, %v2406_v29 }
 0xbd3   :  { %v2438_v41 = vsel %vm398_vm4, %v6553_v7, -inf }
 0xbd4   :  { %2439 = vmax.xlane.f32.xlu1 %v2438_v41  ;;  %v2435_v45 = vsel %vm398_vm4, %v6556_v34, -inf }
 0xbd5   :  { %2436 = vmax.xlane.f32.xlu0 %v2435_v45 }
 0xbda   :  { %v4599_v18 = vpop.f32.mrb[50].mxu1 }
 0xbdb   :  { %v6563_v19 = vadd.f32 %v6518_v6, %v4599_v18  ;;  %v2416_v54 = vpop.f32.mrb[51].mxu1 }
 0xbdc   :  { %v6566_v2 = vadd.f32 %v6526_v4, %v2416_v54 }
 0xbdd   :  { %v2444_v5 = vsel %vm398_vm4, %v6563_v19, -inf }
 0xbde   :  { %2445 = vmax.xlane.f32.xlu0 %v2444_v5  ;;  %v2441_v9 = vsel %vm398_vm4, %v6566_v2, -inf }
 0xbe0   :  { %v4602_v61 = vpop.f32.mrb[52].mxu1 }
 0xbe1   :  { %v6571_v57 = vadd.f32 %v6538_v15, %v4602_v61  ;;  %v2426_v12 = vpop.f32.mrb[53].mxu1 }
 0xbe2   :  { %v6576_v38 = vadd.f32 %v6544_v63, %v2426_v12  ;;  %2442 = vmax.xlane.f32.xlu0 %v2441_v9 }
 0xbe3   :  { %v2450_v51 = vsel %vm398_vm4, %v6571_v57, -inf }
 0xbe4   :  { %v2447_v47 = vsel %vm398_vm4, %v6576_v38, -inf }
 0xbe5   :  { %2448 = vmax.xlane.f32.xlu1 %v2447_v47 }
 0xbe6   :  { %2451 = vmax.xlane.f32.xlu0 %v2450_v51 }
 0xbe8   :  { %v4659_v35 = vpop.f32.mrb[54].mxu1 }
 0xbe9   :  { %v6583_v24 = vadd.f32 %v6498_v40, %v4659_v35  ;;  %v2841_v39 = vpop.f32.mrb[55].mxu1 }
 0xbea   :  { %v6586_v29 = vadd.f32 %v6506_v42, %v2841_v39 }
 0xbeb   :  { %v2873_v41 = vsel %vm398_vm4, %v6583_v24, -inf }
 0xbec   :  { %2874 = vmax.xlane.f32.xlu0 %v2873_v41  ;;  %v4662_v45 = vpop.f32.mrb[56].mxu1  ;;  %v2870_v18 = vsel %vm398_vm4, %v6586_v29, -inf }
 0xbed   :  { %2871 = vmax.xlane.f32.xlu1 %v2870_v18  ;;  %v2851_v54 = vpop.f32.mrb[57].mxu1  ;;  %v6604_v30 = vadd.f32 %v6518_v6, %v4662_v45 }
 0xbee   :  { %v2255_v12 = vpop.xlane.xlu0 %2254  ;;  %v6601_v43 = vadd.f32 %v6526_v4, %v2851_v54 }
 0xbef   :  { %v2252_v9 = vpop.xlane.xlu1 %2251  ;;  %v2879_v45 = vsel %vm398_vm4, %v6604_v30, -inf }
 0xbf0   :  { %v4665_v5 = vpop.f32.mrb[58].mxu1  ;;  %v2268_v47 = vsub.f32 %v6509_v3, %v2252_v9 }
 0xbf1   :  { %v2861_v61 = vpop.f32.mrb[59].mxu1 }
 0xbf2   :  { %v2274_v39 = vmul.f32 1.442695, %v2268_v47  ;;  %v6608_v9 = vadd.f32 %v6544_v63, %v2861_v61 }
 0xbf4   :  { %5308 = vpow2.f32 %v2274_v39 }
 0xbf6   :  { %v2261_v51 = vpop.xlane.xlu0 %2260 }
 0xbf7   :  { %v2258_v35 = vpop.xlane.xlu1 %2257 }
 0xbf8   :  { %v2270_v41 = vsub.f32 %v6529_v8, %v2258_v35  ;;  %v2876_v8 = vsel %vm398_vm4, %v6601_v43, -inf }
 0xbfa   :  { %v2278_v11 = vmul.f32 1.442695, %v2270_v41  ;;  %v2269_v41 = vsub.f32 %v6501_v60, %v2255_v12 }
 0xbfc   :  { %5310 = vpow2.f32 %v2278_v11 }
 0xbfe   :  { %5102 = vrot.lane.b32.xlu1 %v6417_v0, %s5469_s3  ;;  %v2267_v18 = vpop.xlane.xlu0 %2266 }
 0xbff   :  { %v2273_v23 = vsub.f32 %v2247_v22, %v2267_v18  ;;  %v2264_v17 = vpop.xlane.xlu1 %2263  ;;  %v6613_v22 = vadd.f32 %v6538_v15, %v4665_v5  ;;  %v2276_v18 = vmul.f32 1.442695, %v2269_v41 }
 0xc00   :  { %v2272_v3 = vsub.f32 %v6547_v55, %v2264_v17  ;;  %v6619_v17 = vpop.eup %5308 }
 0xc01   :  { %v2284_v1 = vmul.f32 1.442695, %v2273_v23  ;;  %v2882_v23 = vsel %vm398_vm4, %v6608_v9, -inf  ;;  %v2885_v11 = vsel %vm398_vm4, %v6613_v22, -inf  ;;  %v2286_v55 = vsel %vm398_vm4, %v6619_v17, 0.0 }
 0xc02   :  { %5107 = vrot.lane.b32.xlu0 %v6431_v37, %s5469_s3  ;;  %v2282_v54 = vmul.f32 1.442695, %v2272_v3  ;;  %v2271_v3 = vsub.f32 %v6521_v14, %v2261_v51 }
 0xc03   :  { %5312 = vpow2.f32 %v2284_v1 }
 0xc04   :  { %5314 = vpow2.f32 %v2282_v54 }
 0xc05   :  { %5316 = vpow2.f32 %v2276_v18 }
 0xc06   :  { %5112 = vrot.lane.b32.xlu0 %v6449_v33, %s5469_s3  ;;  %v6625_v1 = vpop.eup %5310 }
 0xc07   :  { %v2292_v5 = vsel %vm398_vm4, %v6625_v1, 0.0 }
 0xc0d   :  { %v6629_v61 = vpop.eup %5312 }
 0xc0e   :  { %v2301_v47 = vsel %vm398_vm4, %v6629_v61, 0.0  ;;  %v6633_v35 = vpop.eup %5314 }
 0xc0f   :  { %v2298_v39 = vsel %vm398_vm4, %v6633_v35, 0.0  ;;  %v6641_v54 = vpop.eup %5316 }
 0xc22   :  { %2877 = vmax.xlane.f32.xlu1 %v2876_v8  ;;  %v2280_v8 = vmul.f32 1.442695, %v2271_v3 }
 0xc24   :  { %5318 = vpow2.f32 %v2280_v8 }
 0xc25   :  { %2880 = vmax.xlane.f32.xlu0 %v2879_v45  ;;  %v2289_v45 = vsel %vm398_vm4, %v6641_v54, 0.0 }
 0xc26   :  { %2883 = vmax.xlane.f32.xlu1 %v2882_v23 }
 0xc29   :  { %2886 = vmax.xlane.f32.xlu0 %v2885_v11 }
 0xc2a   :  { %2287 = vadd.xlane.f32.xlu1 %v2286_v55 }
 0xc2e   :  { %2293 = vadd.xlane.f32.xlu1 %v2292_v5  ;;  %v6645_v23 = vpop.eup %5318 }
 0xc2f   :  { %v2295_v55 = vsel %vm398_vm4, %v6645_v23, 0.0 }
 0xc32   :  { %2302 = vadd.xlane.f32.xlu1 %v2301_v47 }
 0xc36   :  { %2299 = vadd.xlane.f32.xlu1 %v2298_v39 }
 0xc3f   :  { %5117 = vrot.lane.b32.xlu0 %v6417_v0, %s5470_s29 }
 0xc5e   :  { %2290 = vadd.xlane.f32.xlu0 %v2289_v45 }
 0xc61   :  { %v2440_v11 = vpop.xlane.xlu1 %2439 }
 0xc62   :  { %v2454_v60 = vsub.f32 %v6553_v7, %v2440_v11  ;;  %2296 = vadd.xlane.f32.xlu0 %v2295_v55  ;;  %v2437_v12 = vpop.xlane.xlu0 %2436 }
 0xc63   :  { %v2453_v14 = vsub.f32 %v6556_v34, %v2437_v12 }
 0xc64   :  { %v2461_v51 = vmul.f32 1.442695, %v2454_v60 }
 0xc65   :  { %v2459_v5 = vmul.f32 1.442695, %v2453_v14 }
 0xc66   :  { %5320 = vpow2.f32 %v2461_v51 }
 0xc67   :  { %5322 = vpow2.f32 %v2459_v5 }
 0xc6b   :  { %v2446_v47 = vpop.xlane.xlu0 %2445 }
 0xc6c   :  { %v2456_v39 = vsub.f32 %v6563_v19, %v2446_v47 }
 0xc6e   :  { %v2465_v41 = vmul.f32 1.442695, %v2456_v39 }
 0xc6f   :  { %v2443_v18 = vpop.xlane.xlu0 %2442 }
 0xc70   :  { %v6652_v3 = vpop.eup %5320  ;;  %5324 = vpow2.f32 %v2465_v41  ;;  %v2455_v8 = vsub.f32 %v6566_v2, %v2443_v18 }
 0xc71   :  { %v6655_v45 = vpop.eup %5322  ;;  %v2474_v7 = vsel %vm398_vm4, %v6652_v3, 0.0 }
 0xc72   :  { %v2463_v34 = vmul.f32 1.442695, %v2455_v8  ;;  %v2449_v11 = vpop.xlane.xlu1 %2448  ;;  %2475 = vadd.xlane.f32.xlu0 %v2474_v7  ;;  %v2471_v55 = vsel %vm398_vm4, %v6655_v45, 0.0 }
 0xc73   :  { %v2457_v19 = vsub.f32 %v6576_v38, %v2449_v11  ;;  %2472 = vadd.xlane.f32.xlu1 %v2471_v55  ;;  %v2452_v60 = vpop.xlane.xlu0 %2451 }
 0xc74   :  { %5326 = vpow2.f32 %v2463_v34  ;;  %v2458_v12 = vsub.f32 %v6571_v57, %v2452_v60 }
 0xc75   :  { %v2467_v14 = vmul.f32 1.442695, %v2457_v19 }
 0xc76   :  { %v2469_v2 = vmul.f32 1.442695, %v2458_v12 }
 0xc77   :  { %5328 = vpow2.f32 %v2467_v14 }
 0xc78   :  { %5330 = vpow2.f32 %v2469_v2 }
 0xc79   :  { %v2875_v51 = vpop.xlane.xlu0 %2874 }
 0xc7a   :  { %v6663_v5 = vpop.eup %5324  ;;  %v2889_v47 = vsub.f32 %v6583_v24, %v2875_v51  ;;  %v2872_v39 = vpop.xlane.xlu1 %2871 }
 0xc7b   :  { %v2888_v41 = vsub.f32 %v6586_v29, %v2872_v39  ;;  %v2480_v38 = vsel %vm398_vm4, %v6663_v5, 0.0 }
 0xc7c   :  { %v2896_v18 = vmul.f32 1.442695, %v2889_v47  ;;  %2481 = vadd.xlane.f32.xlu0 %v2480_v38 }
 0xc7d   :  { %v2894_v8 = vmul.f32 1.442695, %v2888_v41  ;;  %v5108_v7 = vpop.permute.xlu0 %5107 }
 0xc7e   :  { %v6669_v57 = vpop.eup %5326  ;;  %5332 = vpow2.f32 %v2896_v18  ;;  %v5110_v34 = vunpack.i.h.bf16 %v5108_v7  ;;  %v5109_v11 = vunpack.i.l.bf16 %v5108_v7  ;;  %v5103_v55 = vpop.permute.xlu1 %5102 }
 0xc7f   :  { %5334 = vpow2.f32 %v2894_v8  ;;  %v5105_v19 = vunpack.i.h.bf16 %v5103_v55  ;;  %v5104_v60 = vunpack.i.l.bf16 %v5103_v55  ;;  %v2477_v24 = vsel %vm398_vm4, %v6669_v57, 0.0 }
 0xc80   :  { %2478 = vadd.xlane.f32.xlu1 %v2477_v24  ;;  %v4933_v47 = vpack.c.bf16 %v5110_v34, %v5109_v11 }
 0xc81   :  { %v6673_v29 = vpop.eup %5328  ;;  %v4929_v12 = vpack.c.bf16 %v5105_v19, %v5104_v60  ;;  %v5113_v14 = vpop.permute.xlu0 %5112 }
 0xc82   :  { %v6675_v2 = vpop.eup %5330  ;;  %v2483_v51 = vsel %vm398_vm4, %v6673_v29, 0.0  ;;  %v5115_v39 = vunpack.i.h.bf16 %v5113_v14  ;;  %v5114_v41 = vunpack.i.l.bf16 %v5113_v14 }
 0xc83   :  { %4930 = vmatprep.subr.bf16.mxu0 %v4929_v12  ;;  %v2486_v38 = vsel %vm398_vm4, %v6675_v2, 0.0 }
 0xc84   :  { %4932 = vmatpush3.bf16.msra.mxu0 %v4929_v12  ;;  %2484 = vadd.xlane.f32.xlu1 %v2483_v51  ;;  %v4937_v18 = vpack.c.bf16 %v5115_v39, %v5114_v41 }
 0xc85   :  { %2487 = vadd.xlane.f32.xlu0 %v2486_v38  ;;  %4934 = vmatprep.subr.bf16.mxu0 %v4933_v47 }
 0xc88   :  { %v6681_v8 = vpop.eup %5332  ;;  %4936 = vmatpush3.bf16.msra.mxu0 %v4933_v47 }
 0xc89   :  { %v6683_v7 = vpop.eup %5334  ;;  %4938 = vmatprep.subr.bf16.mxu0 %v4937_v18  ;;  %v2909_v34 = vsel %vm398_vm4, %v6681_v8, 0.0 }
 0xc8a   :  { %2910 = vadd.xlane.f32.xlu1 %v2909_v34  ;;  %v2906_v11 = vsel %vm398_vm4, %v6683_v7, 0.0 }
 0xc8b   :  { %2907 = vadd.xlane.f32.xlu0 %v2906_v11 }
 0xc8c   :  { %4940 = vmatpush3.bf16.msra.mxu0 %v4937_v18 }
 0xc8d   :  { %4942 = vmatprep.subr.bf16.mxu0 %v6419_v28 }
 0xc9b   :  { %5122 = vrot.lane.b32.xlu1 %v6431_v37, %s5470_s29 }
 0xcaf   :  { %v2878_v55 = vpop.xlane.xlu1 %2877 }
 0xcb0   :  { %v2890_v19 = vsub.f32 %v6601_v43, %v2878_v55 }
 0xcb2   :  { %v2898_v60 = vmul.f32 1.442695, %v2890_v19  ;;  %v2881_v24 = vpop.xlane.xlu0 %2880 }
 0xcb3   :  { %v2891_v12 = vsub.f32 %v6604_v30, %v2881_v24  ;;  %v2884_v14 = vpop.xlane.xlu1 %2883 }
 0xcb4   :  { %5336 = vpow2.f32 %v2898_v60  ;;  %v2892_v47 = vsub.f32 %v6608_v9, %v2884_v14 }
 0xcb5   :  { %v2900_v51 = vmul.f32 1.442695, %v2891_v12 }
 0xcb6   :  { %v2887_v39 = vpop.xlane.xlu0 %2886  ;;  %v2902_v38 = vmul.f32 1.442695, %v2892_v47 }
 0xcb7   :  { %5338 = vpow2.f32 %v2900_v51  ;;  %v2893_v41 = vsub.f32 %v6613_v22, %v2887_v39  ;;  %v2288_v60 = vpop.xlane.xlu1 %2287 }
 0xcb9   :  { %v2904_v18 = vmul.f32 1.442695, %v2893_v41 }
 0xcba   :  { %v5118_v12 = vpop.permute.xlu0 %5117 }
 0xcbb   :  { %5340 = vpow2.f32 %v2904_v18  ;;  %v2294_v24 = vpop.xlane.xlu1 %2293 }
 0xcbc   :  { %5342 = vpow2.f32 %v2902_v38 }
 0xcbe   :  { %v6696_v34 = vpop.eup %5336 }
 0xcbf   :  { %v2912_v43 = vsel %vm398_vm4, %v6696_v34, 0.0 }
 0xcc0   :  { %2913 = vadd.xlane.f32.xlu1 %v2912_v43 }
 0xcc1   :  { %v6700_v30 = vpop.eup %5338 }
 0xcc2   :  { %v2915_v11 = vsel %vm398_vm4, %v6700_v30, 0.0 }
 0xcc3   :  { %2916 = vadd.xlane.f32.xlu0 %v2915_v11  ;;  %v5120_v11 = vunpack.i.h.bf16 %v5118_v12 }
 0xcc5   :  { %v6704_v9 = vpop.eup %5340 }
 0xcc6   :  { %v2921_v22 = vsel %vm398_vm4, %v6704_v9, 0.0  ;;  %v6708_v55 = vpop.eup %5342 }
 0xcc7   :  { %2922 = vadd.xlane.f32.xlu1 %v2921_v22  ;;  %v2918_v19 = vsel %vm398_vm4, %v6708_v55, 0.0  ;;  %v5119_v22 = vunpack.i.l.bf16 %v5118_v12 }
 0xccb   :  { %2919 = vadd.xlane.f32.xlu1 %v2918_v19 }
 0xcd9   :  { %5127 = vrot.lane.b32.xlu0 %v6449_v33, %s5470_s29 }
 0xcdc   :  { %3073 = vrot.lane.b32.xlu1 %v6405_v52, %s5471_s30  ;;  %v2303_v52 = vpop.xlane.xlu1 %2302 }
 0xcdd   :  { %3075 = vrot.lane.b32.xlu0 %v6407_v62, %s5471_s30 }
 0xce0   :  { %3079 = vrot.lane.b32.xlu1 %v6423_v16, %s5471_s30  ;;  %v2300_v47 = vpop.xlane.xlu1 %2299 }
 0xce1   :  { %3077 = vrot.lane.b32.xlu0 %v6421_v36, %s5471_s30 }
 0xce4   :  { %3083 = vrot.lane.b32.xlu1 %v6439_v46, %s5471_s30 }
 0xce5   :  { %3081 = vrot.lane.b32.xlu0 %v6437_v32, %s5471_s30 }
 0xceb   :  { %v2291_v14 = vpop.xlane.xlu0 %2290 }
 0xcef   :  { %v2297_v51 = vpop.xlane.xlu0 %2296 }
 0xcff   :  { %v2476_v62 = vpop.xlane.xlu0 %2475 }
 0xd00   :  { %5344 = vrcp.f32 %v2476_v62  ;;  %v2473_v39 = vpop.xlane.xlu1 %2472 }
 0xd01   :  { %5346 = vrcp.f32 %v2473_v39 }
 0xd09   :  { %v2482_v41 = vpop.xlane.xlu0 %2481 }
 0xd0a   :  { %v5345_v16 = vpop.eup %5344  ;;  %5348 = vrcp.f32 %v2482_v41 }
 0xd0b   :  { %v5347_v36 = vpop.eup %5346  ;;  %v2496_v46 = vmul.f32 %v5345_v16, %v6652_v3 }
 0xd0c   :  { %v2495_v38 = vmul.f32 %v5347_v36, %v6655_v45  ;;  %v4971_v45 = vpack.c.bf16 %v5120_v11, %v5119_v22 }
 0xd0d   :  { %v2479_v32 = vpop.xlane.xlu1 %2478 }
 0xd0e   :  { %5350 = vrcp.f32 %v2479_v32  ;;  %4615 = vmatprep.mubr.msk.f32.mxu0 %vm398_vm4, %v2495_v38 }
 0xd0f   :  { %4616 = vmatmul.mubr.msk.f32.vlgmr.msra.gmra.mrb[48].mxu0 %vm398_vm4, %v2496_v46  ;;  %5352 = vrcp.f32 %v2288_v60 }
 0xd10   :  { %4944 = vmatpush3.bf16.msra.mxu0 %v6419_v28 }
 0xd11   :  { %4946 = vmatprep.subr.bf16.mxu0 %v6433_v26  ;;  %v2485_v18 = vpop.xlane.xlu1 %2484 }
 0xd12   :  { %5354 = vrcp.f32 %v2485_v18  ;;  %v2488_v43 = vpop.xlane.xlu0 %2487 }
 0xd13   :  { %5356 = vrcp.f32 %v2488_v43 }
 0xd14   :  { %4948 = vmatpush3.bf16.msra.mxu0 %v6433_v26  ;;  %5358 = vrcp.f32 %v2291_v14  ;;  %v5349_v3 = vpop.eup %5348 }
 0xd15   :  { %4950 = vmatprep.subr.bf16.mxu0 %v6451_v53  ;;  %5360 = vrcp.f32 %v2294_v24  ;;  %v2498_v60 = vmul.f32 %v5349_v3, %v6663_v5 }
 0xd16   :  { %5362 = vrcp.f32 %v2297_v51 }
 0xd17   :  { %v2911_v19 = vpop.xlane.xlu1 %2910  ;;  %5364 = vrcp.f32 %v2300_v47 }
 0xd18   :  { %v5351_v62 = vpop.eup %5350  ;;  %4952 = vmatpush3.bf16.msra.mxu0 %v6451_v53  ;;  %v2908_v39 = vpop.xlane.xlu0 %2907  ;;  %5366 = vrcp.f32 %v2303_v52 }
 0xd19   :  { %4972 = vmatprep.subr.bf16.mxu0 %v4971_v45  ;;  %v2497_v28 = vmul.f32 %v5351_v62, %v6669_v57  ;;  %v5353_v12 = vpop.eup %5352  ;;  %5368 = vrcp.f32 %v2908_v39 }
 0xd1a   :  { %v2310_v5 = vmul.f32 %v5353_v12, %v6619_v17  ;;  %5370 = vrcp.f32 %v2911_v19 }
 0xd1b   :  { %4618 = vmatprep.mubr.msk.f32.mxu0 %vm398_vm4, %v2497_v28  ;;  %v5123_v14 = vpop.permute.xlu1 %5122 }
 0xd1c   :  { %v5355_v26 = vpop.eup %5354  ;;  %4619 = vmatmul.mubr.msk.f32.gmra.mrb[50].mxu0 %vm398_vm4, %v2498_v60  ;;  %v5125_v47 = vunpack.i.h.bf16 %v5123_v14  ;;  %v5124_v41 = vunpack.i.l.bf16 %v5123_v14 }
 0xd1d   :  { %v5357_v24 = vpop.eup %5356  ;;  %v2499_v16 = vmul.f32 %v5355_v26, %v6673_v29 }
 0xd1e   :  { %v2500_v53 = vmul.f32 %v5357_v24, %v6675_v2  ;;  %v5359_v51 = vpop.eup %5358  ;;  %v4975_v46 = vpack.c.bf16 %v5125_v47, %v5124_v41 }
 0xd1f   :  { %4621 = vmatprep.mubr.msk.f32.mxu0 %vm398_vm4, %v2499_v16  ;;  %v5361_v57 = vpop.eup %5360  ;;  %v2311_v52 = vmul.f32 %v5359_v51, %v6641_v54 }
 0xd20   :  { %4622 = vmatmul.mubr.msk.f32.gmra.mrb[52].mxu0 %vm398_vm4, %v2500_v53  ;;  %v5363_v36 = vpop.eup %5362  ;;  %v2312_v29 = vmul.f32 %v5361_v57, %v6625_v1 }
 0xd21   :  { %4636 = vmatprep.mubr.msk.f32.mxu0 %vm398_vm4, %v2310_v5  ;;  %v5365_v38 = vpop.eup %5364  ;;  %v2313_v17 = vmul.f32 %v5363_v36, %v6645_v23 }
 0xd22   :  { %v5367_v2 = vpop.eup %5366  ;;  %v2314_v32 = vmul.f32 %v5365_v38, %v6633_v35 }
 0xd23   :  { %v5369_v18 = vpop.eup %5368  ;;  %v2315_v1 = vmul.f32 %v5367_v2, %v6629_v61 }
 0xd24   :  { %4637 = vmatmul.mubr.msk.f32.vlgmr.msra.gmra.mrb[48].mxu0 %vm398_vm4, %v2311_v52  ;;  %v2930_v54 = vmul.f32 %v5369_v18, %v6683_v7  ;;  %v5371_v62 = vpop.eup %5370 }
 0xd25   :  { %4974 = vmatpush3.bf16.msra.mxu0 %v4971_v45  ;;  %4639 = vmatprep.mubr.msk.f32.mxu0 %vm398_vm4, %v2312_v29  ;;  %v2931_v7 = vmul.f32 %v5371_v62, %v6681_v8 }
 0xd26   :  { %4976 = vmatprep.subr.bf16.mxu0 %v4975_v46 }
 0xd28   :  { %4640 = vmatmul.mubr.msk.f32.gmra.mrb[50].mxu0 %vm398_vm4, %v2313_v17 }
 0xd29   :  { %4978 = vmatpush3.bf16.msra.mxu0 %v4975_v46  ;;  %4642 = vmatprep.mubr.msk.f32.mxu0 %vm398_vm4, %v2314_v32 }
 0xd2c   :  { %4643 = vmatmul.mubr.msk.f32.gmra.mrb[52].mxu0 %vm398_vm4, %v2315_v1 }
 0xd2d   :  { %4678 = vmatprep.mubr.msk.f32.mxu0 %vm398_vm4, %v2930_v54 }
 0xd4d   :  { %v2914_v43 = vpop.xlane.xlu1 %2913 }
 0xd4e   :  { %5372 = vrcp.f32 %v2914_v43 }
 0xd50   :  { %v2917_v23 = vpop.xlane.xlu0 %2916 }
 0xd51   :  { %5374 = vrcp.f32 %v2917_v23 }
 0xd54   :  { %v2923_v35 = vpop.xlane.xlu1 %2922  ;;  %v5128_v11 = vpop.permute.xlu0 %5127 }
 0xd55   :  { %v5130_v22 = vunpack.i.h.bf16 %v5128_v11  ;;  %v5129_v3 = vunpack.i.l.bf16 %v5128_v11  ;;  %5376 = vrcp.f32 %v2923_v35 }
 0xd57   :  { %v4979_v45 = vpack.c.bf16 %v5130_v22, %v5129_v3 }
 0xd58   :  { %v2920_v28 = vpop.xlane.xlu1 %2919  ;;  %v5373_v61 = vpop.eup %5372 }
 0xd59   :  { %5378 = vrcp.f32 %v2920_v28  ;;  %4980 = vmatprep.subr.bf16.mxu0 %v4979_v45  ;;  %v2932_v60 = vmul.f32 %v5373_v61, %v6696_v34 }
 0xd5a   :  { %4982 = vmatpush3.bf16.msra.mxu0 %v4979_v45 }
 0xd5b   :  { %4985 = vmatprep.subr.msk.bf16.mxu0 %vm5591_vm3, %v6328_v13  ;;  %v5375_v19 = vpop.eup %5374 }
 0xd5c   :  { %v2933_v12 = vmul.f32 %v5375_v19, %v6700_v30  ;;  %v3074_v24 = vpop.permute.xlu1 %3073 }
 0xd5d   :  { %4679 = vmatmul.mubr.msk.f32.vlgmr.msra.gmra.mrb[48].mxu0 %vm398_vm4, %v2931_v7 }
 0xd5e   :  { %4681 = vmatprep.mubr.msk.f32.mxu0 %vm398_vm4, %v2932_v60 }
 0xd5f   :  { %v5377_v39 = vpop.eup %5376 }
 0xd60   :  { %v2935_v34 = vmul.f32 %v5377_v39, %v6704_v9  ;;  %v3080_v9 = vpop.permute.xlu1 %3079 }
 0xd61   :  { %4682 = vmatmul.mubr.msk.f32.gmra.mrb[50].mxu0 %vm398_vm4, %v2933_v12 }
 0xd63   :  { %v5379_v26 = vpop.eup %5378  ;;  %4988 = vmatpush3.bf16.xpose.msk.msra.mxu0 %vm5591_vm3, %v6328_v13  ;;  %v3076_v13 = vpop.permute.xlu0 %3075 }
 0xd64   :  { %4991 = vmatprep.subr.msk.bf16.mxu0 %vm5591_vm3, %v6353_v59  ;;  %v2934_v8 = vmul.f32 %v5379_v26, %v6708_v55 }
 0xd66   :  { %4684 = vmatprep.mubr.msk.f32.mxu0 %vm398_vm4, %v2934_v8 }
 0xd67   :  { %4685 = vmatmul.mubr.msk.f32.gmra.mrb[52].mxu0 %vm398_vm4, %v2935_v34  ;;  %v3078_v30 = vpop.permute.xlu0 %3077 }
 0xd68   :  { %4699 = vmatprep.mubr.msk.f32.mxu0 %vm194_vm2, %v3074_v24 }
 0xd6b   :  { %4994 = vmatpush3.bf16.xpose.msk.msra.mxu0 %vm5591_vm3, %v6353_v59  ;;  %v3082_v55 = vpop.permute.xlu0 %3081  ;;  %v3084_v59 = vpop.permute.xlu1 %3083 }
 0xd6c   :  { %4997 = vmatprep.subr.msk.bf16.mxu0 %vm5591_vm3, %v6378_v21 }
 0xd73   :  { %5000 = vmatpush3.bf16.xpose.msk.msra.mxu0 %vm5591_vm3, %v6378_v21 }
 0xd7a   :  { %4700 = vmatmul.mubr.msk.f32.vlgmr.msra.gmra.mrb[54].mxu0 %vm194_vm2, %v3076_v13 }
 0xd7b   :  { %4702 = vmatprep.mubr.msk.f32.mxu0 %vm194_vm2, %v3078_v30 }
 0xd7e   :  { %4703 = vmatmul.mubr.msk.f32.gmra.mrb[56].mxu0 %vm194_vm2, %v3080_v9 }
 0xd7f   :  { %4705 = vmatprep.mubr.msk.f32.mxu0 %vm194_vm2, %v3082_v55 }
 0xd82   :  { %4706 = vmatmul.mubr.msk.f32.gmra.mrb[58].mxu0 %vm194_vm2, %v3084_v59 }
 0xe4d   :  { %v4701_v14 = vpop.f32.mrb[54].mxu0 }
 0xe4e   :  { %v3169_v16 = vadd.f32 %v6498_v40, %v4701_v14  ;;  %v3163_v53 = vpop.f32.mrb[55].mxu0 }
 0xe4f   :  { %v3164_v27 = vadd.f32 %v6506_v42, %v3163_v53 }
 0xe50   :  { %v3195_v21 = vsel %vm398_vm4, %v3169_v16, -inf }
 0xe51   :  { %3196 = vmax.xlane.f32.xlu1 %v3195_v21  ;;  %v4704_v51 = vpop.f32.mrb[56].mxu0  ;;  %v3192_v5 = vsel %vm398_vm4, %v3164_v27, -inf }
 0xe52   :  { %v3173_v57 = vpop.f32.mrb[57].mxu0  ;;  %3193 = vmax.xlane.f32.xlu0 %v3192_v5  ;;  %v3179_v41 = vadd.f32 %v6518_v6, %v4704_v51  ;;  %v6970_v51 = vmov 0.0  }
 0xe53   :  { %v3174_v47 = vadd.f32 %v6526_v4, %v3173_v57 }
 0xe54   :  { %v3201_v40 = vsel %vm398_vm4, %v3179_v41, -inf }
 0xe55   :  { %v4707_v52 = vpop.f32.mrb[58].mxu0  ;;  %v3198_v36 = vsel %vm398_vm4, %v3174_v47, -inf }
 0xe56   :  { %v3183_v29 = vpop.f32.mrb[59].mxu0  ;;  %3199 = vmax.xlane.f32.xlu0 %v3198_v36  ;;  %v3189_v12 = vadd.f32 %v6538_v15, %v4707_v52 }
 0xe57   :  { %v3184_v60 = vadd.f32 %v6544_v63, %v3183_v29 }
 0xe58   :  { %v3207_v26 = vsel %vm398_vm4, %v3189_v12, -inf }
 0xe59   :  { %v3204_v39 = vsel %vm398_vm4, %v3184_v60, -inf }
 0xe5a   :  { %3202 = vmax.xlane.f32.xlu0 %v3201_v40 }
 0xe62   :  { %5132 = vrot.lane.b32.xlu1 %v6417_v0, %s5471_s30 }
 0xede   :  { %v3197_v42 = vpop.xlane.xlu1 %3196 }
 0xedf   :  { %v3211_v38 = vsub.f32 %v3169_v16, %v3197_v42  ;;  %v3194_v46 = vpop.xlane.xlu0 %3193 }
 0xee0   :  { %v3210_v17 = vsub.f32 %v3164_v27, %v3194_v46 }
 0xee1   :  { %v3218_v2 = vmul.f32 1.442695, %v3211_v38 }
 0xee2   :  { %v3216_v32 = vmul.f32 1.442695, %v3210_v17  ;;  %v5133_v4 = vpop.permute.xlu1 %5132 }
 0xee3   :  { %5380 = vpow2.f32 %v3218_v2  ;;  %v5135_v6 = vunpack.i.h.bf16 %v5133_v4  ;;  %v5134_v18 = vunpack.i.l.bf16 %v5133_v4  ;;  %v3200_v1 = vpop.xlane.xlu0 %3199 }
 0xee4   :  { %5382 = vpow2.f32 %v3216_v32  ;;  %v3212_v54 = vsub.f32 %v3174_v47, %v3200_v1 }
 0xee5   :  { %v5001_v43 = vpack.c.bf16 %v5135_v6, %v5134_v18 }
 0xee6   :  { %v3220_v23 = vmul.f32 1.442695, %v3212_v54 }
 0xee7   :  { %5002 = vmatprep.subr.bf16.mxu0 %v5001_v43  ;;  %v3203_v35 = vpop.xlane.xlu0 %3202 }
 0xee8   :  { %5384 = vpow2.f32 %v3220_v23  ;;  %v3213_v11 = vsub.f32 %v3179_v41, %v3203_v35  ;;  %5004 = vmatpush3.bf16.msra.mxu0 %v5001_v43  ;;  %v6825_v43 = vld [vmem:[%s6959_s8 + $0x10] sm:$0xff] }
 0xee9   :  { %v3398_v23 = vrot.slane %v6825_v43, %v6144_v58 }
 0xeea   :  { %v3222_v0 = vmul.f32 1.442695, %v3213_v11 }
 0xeec   :  { %5386 = vpow2.f32 %v3222_v0 }
 0xeed   :  { %v5381_v22 = vpop.eup %5380 }
 0xeee   :  { %v5383_v3 = vpop.eup %5382  ;;  %v3231_v45 = vsel %vm398_vm4, %v5381_v22, 0.0 }
 0xeef   :  { %3232 = vadd.xlane.f32.xlu0 %v3231_v45  ;;  %v3228_v62 = vsel %vm398_vm4, %v5383_v3, 0.0 }
 0xef0   :  { %3229 = vadd.xlane.f32.xlu1 %v3228_v62 }
 0xef2   :  { %v5385_v28 = vpop.eup %5384 }
 0xef3   :  { %v3234_v61 = vsel %vm398_vm4, %v5385_v28, 0.0 }
 0xef4   :  { %3235 = vadd.xlane.f32.xlu1 %v3234_v61 }
 0xef6   :  { %v5387_v7 = vpop.eup %5386 }
 0xef7   :  { %v3237_v19 = vsel %vm398_vm4, %v5387_v7, 0.0 }
 0xef8   :  { %3238 = vadd.xlane.f32.xlu0 %v3237_v19 }
 0xf05   :  { %5142 = vrot.lane.b32.xlu1 %v6449_v33, %s5471_s30 }
 0xf0e   :  { %5137 = vrot.lane.b32.xlu0 %v6431_v37, %s5471_s30 }
 0xf29   :  { %3205 = vmax.xlane.f32.xlu1 %v3204_v39 }
 0xf2d   :  { %3208 = vmax.xlane.f32.xlu0 %v3207_v26 }
 0xf7c   :  { %v3233_v34 = vpop.xlane.xlu0 %3232 }
 0xf7d   :  { %v3230_v8 = vpop.xlane.xlu1 %3229 }
 0xf7e   :  { %5388 = vrcp.f32 %v3230_v8 }
 0xf7f   :  { %5390 = vrcp.f32 %v3233_v34 }
 0xf81   :  { %v3236_v24 = vpop.xlane.xlu1 %3235 }
 0xf82   :  { %5392 = vrcp.f32 %v3236_v24 }
 0xf85   :  { %v3239_v13 = vpop.xlane.xlu0 %3238  ;;  %v5143_v33 = vpop.permute.xlu1 %5142 }
 0xf86   :  { %v5145_v63 = vunpack.i.h.bf16 %v5143_v33  ;;  %v5144_v55 = vunpack.i.l.bf16 %v5143_v33  ;;  %5394 = vrcp.f32 %v3239_v13 }
 0xf88   :  { %v5389_v30 = vpop.eup %5388  ;;  %v5009_v16 = vpack.c.bf16 %v5145_v63, %v5144_v55 }
 0xf89   :  { %v5138_v37 = vpop.permute.xlu0 %5137  ;;  %v3252_v9 = vmul.f32 %v5389_v30, %v5383_v3  ;;  %v5391_v53 = vpop.eup %5390 }
 0xf8a   :  { %v5140_v15 = vunpack.i.h.bf16 %v5138_v37  ;;  %v5139_v59 = vunpack.i.l.bf16 %v5138_v37  ;;  %v3253_v21 = vmul.f32 %v5391_v53, %v5381_v22 }
 0xf8b   :  { %4720 = vmatprep.mubr.msk.f32.mxu0 %vm398_vm4, %v3252_v9 }
 0xf8c   :  { %v5005_v14 = vpack.c.bf16 %v5140_v15, %v5139_v59  ;;  %v5393_v27 = vpop.eup %5392 }
 0xf8d   :  { %v3254_v57 = vmul.f32 %v5393_v27, %v5385_v28 }
 0xf8e   :  { %5006 = vmatprep.subr.bf16.mxu0 %v5005_v14 }
 0xf8f   :  { %5008 = vmatpush3.bf16.msra.mxu0 %v5005_v14 }
 0xf90   :  { %5010 = vmatprep.subr.bf16.mxu0 %v5009_v16  ;;  %v5395_v5 = vpop.eup %5394 }
 0xf91   :  { %v3255_v47 = vmul.f32 %v5395_v5, %v5387_v7  ;;  %v5168_v5 = vld [vmem:[%s6956_s5 + $0x10] sm:$0xff]  }
 0xf92   :  { %4730 = vmatpush3.bf16.msra.mxu1 %v5168_v5 }
 0xf93   :  { %5012 = vmatpush3.bf16.msra.mxu0 %v5009_v16  ;;  %4731 = vmatprep.subr.bf16.mxu1 %v6970_v51 }
 0xf94   :  { %4765 = vmatprep.subr.bf16.mxu0 %v6970_v51 }
 0xf96   :  { %4721 = vmatmul.mubr.msk.f32.vlgmr.msra.gmra.mrb[48].mxu0 %vm398_vm4, %v3253_v21 }
 0xf97   :  { %4723 = vmatprep.mubr.msk.f32.mxu0 %vm398_vm4, %v3254_v57  ;;  %v5169_v57 = vld [vmem:[%s6956_s5 + $0x18] sm:$0xff]  }
 0xf98   :  { %4732 = vmatpush3.bf16.msra.mxu1 %v5169_v57 }
 0xf99   :  { %4745 = vmatprep.subr.bf16.mxu1 %v6970_v51 }
 0xf9a   :  { %4724 = vmatmul.mubr.msk.f32.gmra.mrb[50].mxu0 %vm398_vm4, %v3255_v47 }
 0xfb6   :  { %v3206_v41 = vpop.xlane.xlu1 %3205 }
 0xfb7   :  { %v3214_v52 = vsub.f32 %v3184_v60, %v3206_v41 }
 0xfb9   :  { %v3224_v36 = vmul.f32 1.442695, %v3214_v52 }
 0xfba   :  { %v3209_v29 = vpop.xlane.xlu0 %3208 }
 0xfbb   :  { %5396 = vpow2.f32 %v3224_v36  ;;  %v3215_v40 = vsub.f32 %v3189_v12, %v3209_v29 }
 0xfbd   :  { %v3226_v42 = vmul.f32 1.442695, %v3215_v40 }
 0xfbf   :  { %5398 = vpow2.f32 %v3226_v42 }
 0xfc5   :  { %v5397_v38 = vpop.eup %5396 }
 0xfc6   :  { %v3240_v46 = vsel %vm398_vm4, %v5397_v38, 0.0 }
 0xfc7   :  { %3241 = vadd.xlane.f32.xlu0 %v3240_v46 }
 0xfc9   :  { %v5399_v17 = vpop.eup %5398 }
 0xfca   :  { %v3243_v2 = vsel %vm398_vm4, %v5399_v17, 0.0 }
 0xfcb   :  { %3244 = vadd.xlane.f32.xlu1 %v3243_v2 }
0x1054   :  { %v3242_v32 = vpop.xlane.xlu0 %3241 }
0x1055   :  { %5400 = vrcp.f32 %v3242_v32 }
0x1058   :  { %v3245_v4 = vpop.xlane.xlu1 %3244 }
0x1059   :  { %5402 = vrcp.f32 %v3245_v4 }
0x105f   :  { %v5401_v6 = vpop.eup %5400 }
0x1060   :  { %v3256_v18 = vmul.f32 %v5401_v6, %v5397_v38 }
0x1062   :  { %4726 = vmatprep.mubr.msk.f32.mxu0 %vm398_vm4, %v3256_v18 }
0x1063   :  { %v5403_v1 = vpop.eup %5402 }
0x1064   :  { %v3257_v54 = vmul.f32 %v5403_v1, %v5399_v17 }
0x1066   :  { %4727 = vmatmul.mubr.msk.f32.gmra.mrb[52].mxu0 %vm398_vm4, %v3257_v54 }
0x1067   :  { %4769 = vmatprep.mubr.msk.bf16.mxu0 %vm5467_vm0, %v6970_v51 }
0x1069   :  { %v4722_v35 = vpop.f32.mrb[48].mxu0 }
0x106a   :  { %v3400_v11 = vadd.f32 %v4722_v35, %v3398_v23  ;;  %v3360_v0 = vpop.f32.mrb[49].mxu0  ;;  %v3492_v35 = vrot.slane %v6825_v43, %v6195_v20 }
0x106b   :  { %v3399_v22 = vadd.f32 %v3398_v23, %v3360_v0 }
0x106c   :  { %v3406_v3 = vadd.f32 %v3400_v11, %v6324_v25 }
0x106d   :  { %v3405_v45 = vadd.f32 %v3399_v22, %v6322_v56  ;;  %v4725_v62 = vpop.f32.mrb[50].mxu0  ;;  %v6971_v22 = vsub.s32 3, %v5674_v48 }
0x106e   :  { %v3402_v28 = vadd.f32 %v4725_v62, %v3398_v23  ;;  %v3370_v61 = vpop.f32.mrb[51].mxu0  ;;  %v3414_v7 = vsel %vm194_vm2, %v3406_v3, 0.0 }
0x106f   :  { %v3401_v19 = vadd.f32 %v3398_v23, %v3370_v61  ;;  %3415 = vadd.xlane.f32.xlu1 %v3414_v7  ;;  %v3411_v60 = vsel %vm194_vm2, %v3405_v45, 0.0 }
0x1070   :  { %v3408_v12 = vadd.f32 %v3402_v28, %v6349_v50  ;;  %3412 = vadd.xlane.f32.xlu0 %v3411_v60 }
0x1071   :  { %v3407_v39 = vadd.f32 %v3401_v19, %v6347_v31 }
0x1072   :  { %v3420_v26 = vsel %vm194_vm2, %v3408_v12, 0.0 }
0x1073   :  { %3421 = vadd.xlane.f32.xlu1 %v3420_v26  ;;  %v3417_v25 = vsel %vm194_vm2, %v3407_v39, 0.0 }
0x1074   :  { %3418 = vadd.xlane.f32.xlu0 %v3417_v25 }
0x10fc   :  { %v3416_v56 = vpop.xlane.xlu1 %3415 }
0x10fd   :  { %v3430_v8 = vmul.f32 0.03125, %v3416_v56  ;;  %v3413_v34 = vpop.xlane.xlu0 %3412 }
0x10fe   :  { %v3429_v24 = vmul.f32 0.03125, %v3413_v34 }
0x10ff   :  { %v3436_v13 = vsub.f32 %v3406_v3, %v3430_v8  ;;  %v3502_v3 = vrot.slane %v6825_v43, %v6971_v22 }
0x1100   :  { %v3435_v33 = vsub.f32 %v3405_v45, %v3429_v24  ;;  %v3422_v30 = vpop.xlane.xlu1 %3421 }
0x1101   :  { %v3432_v37 = vmul.f32 0.03125, %v3422_v30  ;;  %v3419_v9 = vpop.xlane.xlu0 %3418  ;;  %v3442_v63 = vmul.f32 %v3436_v13, %v3436_v13 }
0x1102   :  { %v3431_v50 = vmul.f32 0.03125, %v3419_v9  ;;  %v3441_v55 = vmul.f32 %v3435_v33, %v3435_v33 }
0x1103   :  { %v3438_v15 = vsub.f32 %v3408_v12, %v3432_v37  ;;  %v3450_v31 = vsel %vm194_vm2, %v3442_v63, 0.0 }
0x1104   :  { %v3437_v59 = vsub.f32 %v3407_v39, %v3431_v50  ;;  %3451 = vadd.xlane.f32.xlu1 %v3450_v31  ;;  %v3447_v14 = vsel %vm194_vm2, %v3441_v55, 0.0 }
0x1105   :  { %3448 = vadd.xlane.f32.xlu0 %v3447_v14  ;;  %v3444_v16 = vmul.f32 %v3438_v15, %v3438_v15  ;;  %v5170_v14 = vld [vmem:[%s6957_s6 + $0x20] sm:$0xff]  }
0x1106   :  { %v3443_v53 = vmul.f32 %v3437_v59, %v3437_v59 }
0x1107   :  { %v3456_v27 = vsel %vm194_vm2, %v3444_v16, 0.0  ;;  %v5171_v16 = vld [vmem:[%s6957_s6 + $0x28] sm:$0xff]  }
0x1108   :  { %3457 = vadd.xlane.f32.xlu1 %v3456_v27  ;;  %v3453_v21 = vsel %vm194_vm2, %v3443_v53, 0.0  ;;  %v5172_v53 = vld [vmem:[%s6957_s6 + $0x30] sm:$0xff]   ;;  %v5173_v27 = vld [vmem:[%s6957_s6 + $0x38] sm:$0xff]  }
0x1109   :  { %3454 = vadd.xlane.f32.xlu0 %v3453_v21 }
0x1139   :  { %v4728_v47 = vpop.f32.mrb[52].mxu0 }
0x113a   :  { %v3404_v41 = vadd.f32 %v4728_v47, %v3398_v23  ;;  %v3380_v52 = vpop.f32.mrb[53].mxu0 }
0x113b   :  { %v3403_v36 = vadd.f32 %v3398_v23, %v3380_v52 }
0x113c   :  { %v3410_v29 = vadd.f32 %v3404_v41, %v6374_v44 }
0x113d   :  { %v3409_v40 = vadd.f32 %v3403_v36, %v6372_v10 }
0x113e   :  { %v3426_v42 = vsel %vm194_vm2, %v3410_v29, 0.0 }
0x113f   :  { %3427 = vadd.xlane.f32.xlu1 %v3426_v42  ;;  %v3423_v38 = vsel %vm194_vm2, %v3409_v40, 0.0 }
0x1140   :  { %3424 = vadd.xlane.f32.xlu0 %v3423_v38 }
0x1191   :  { %v3452_v46 = vpop.xlane.xlu1 %3451 }
0x1192   :  { %v3466_v17 = vmul.f32 0.03125, %v3452_v46  ;;  %v3449_v2 = vpop.xlane.xlu0 %3448 }
0x1193   :  { %v3465_v32 = vmul.f32 0.03125, %v3449_v2 }
0x1194   :  { %v3472_v4 = vadd.f32 1e-05, %v3466_v17 }
0x1195   :  { %v3471_v6 = vadd.f32 1e-05, %v3465_v32  ;;  %v3458_v18 = vpop.xlane.xlu1 %3457 }
0x1196   :  { %5404 = vrsqrt.f32 %v3472_v4  ;;  %v3468_v1 = vmul.f32 0.03125, %v3458_v18  ;;  %v3455_v54 = vpop.xlane.xlu0 %3454  ;;  %v6972_v4 = vsub.s32 4, %v5674_v48 }
0x1197   :  { %5406 = vrsqrt.f32 %v3471_v6  ;;  %v3467_v44 = vmul.f32 0.03125, %v3455_v54 }
0x1198   :  { %v3474_v23 = vadd.f32 1e-05, %v3468_v1  ;;  %v6893_v6 = vrot.slane %v6825_v43, %v6972_v4 }
0x1199   :  { %v3473_v10 = vadd.f32 1e-05, %v3467_v44 }
0x119a   :  { %5408 = vrsqrt.f32 %v3474_v23 }
0x119b   :  { %5410 = vrsqrt.f32 %v3473_v10 }
0x11a0   :  { %v5405_v11 = vpop.eup %5404 }
0x11a1   :  { %v5407_v0 = vpop.eup %5406  ;;  %v3484_v45 = vmul.f32 %v5405_v11, %v3436_v13 }
0x11a2   :  { %v3483_v62 = vmul.f32 %v5407_v0, %v3435_v33 }
0x11a3   :  { %v3494_v28 = vmul.f32 %v3492_v35, %v3484_v45 }
0x11a4   :  { %v5409_v61 = vpop.eup %5408  ;;  %v3493_v7 = vmul.f32 %v3492_v35, %v3483_v62 }
0x11a5   :  { %v5411_v19 = vpop.eup %5410  ;;  %v3504_v60 = vadd.f32 %v3502_v3, %v3494_v28  ;;  %v3486_v12 = vmul.f32 %v5409_v61, %v3438_v15 }
0x11a6   :  { %v6860_v39 = vadd.f32 %v3502_v3, %v3493_v7  ;;  %v3485_v26 = vmul.f32 %v5411_v19, %v3437_v59 }
0x11a7   :  { %v3496_v8 = vmul.f32 %v3492_v35, %v3486_v12 }
0x11a8   :  { %v3509_v25 = vpack.c.bf16 %v3504_v60, %v6860_v39  ;;  %v3495_v56 = vmul.f32 %v3492_v35, %v3485_v26 }
0x11a9   :  { %v6866_v24 = vadd.f32 %v3502_v3, %v3496_v8 }
0x11aa   :  { %4734 = vmatmul.mubr.msk.bf16.vlgmr.msra.gmra.mrb[60].mxu1 %vm194_vm2, %v3509_v25  ;;  %v3505_v34 = vadd.f32 %v3502_v3, %v3495_v56 }
0x11ab   :  { %4737 = vmatprep.mubr.msk.bf16.mxu1 %vm5467_vm0, %v6970_v51  ;;  %4746 = vmatpush3.bf16.msra.mxu1 %v5170_v14 }
0x11ac   :  { %v3510_v13 = vpack.c.bf16 %v6866_v24, %v3505_v34  ;;  %4747 = vmatprep.subr.bf16.mxu1 %v6970_v51 }
0x11af   :  { %4748 = vmatpush3.bf16.msra.mxu1 %v5171_v16 }
0x11b0   :  { %4749 = vmatprep.subr.bf16.mxu1 %v6970_v51 }
0x11b2   :  { %4738 = vmatmul.mubr.msk.bf16.gmra.mrb[64].mxu1 %vm194_vm2, %v3510_v13 }
0x11b3   :  { %4741 = vmatprep.mubr.msk.bf16.mxu1 %vm5467_vm0, %v6970_v51  ;;  %4750 = vmatpush3.bf16.msra.mxu1 %v5172_v53 }
0x11b4   :  { %4751 = vmatprep.subr.bf16.mxu1 %v6970_v51 }
0x11b7   :  { %4752 = vmatpush3.bf16.msra.mxu1 %v5173_v27 }
0x11cc   :  { %v3428_v33 = vpop.xlane.xlu1 %3427 }
0x11cd   :  { %v3434_v30 = vmul.f32 0.03125, %v3428_v33  ;;  %v3425_v37 = vpop.xlane.xlu0 %3424 }
0x11ce   :  { %v3433_v9 = vmul.f32 0.03125, %v3425_v37 }
0x11cf   :  { %v3440_v63 = vsub.f32 %v3410_v29, %v3434_v30 }
0x11d0   :  { %v3439_v50 = vsub.f32 %v3409_v40, %v3433_v9 }
0x11d1   :  { %v3446_v55 = vmul.f32 %v3440_v63, %v3440_v63 }
0x11d2   :  { %v3445_v15 = vmul.f32 %v3439_v50, %v3439_v50 }
0x11d3   :  { %v3462_v31 = vsel %vm194_vm2, %v3446_v55, 0.0 }
0x11d4   :  { %3463 = vadd.xlane.f32.xlu1 %v3462_v31  ;;  %v3459_v59 = vsel %vm194_vm2, %v3445_v15, 0.0 }
0x11d5   :  { %3460 = vadd.xlane.f32.xlu0 %v3459_v59 }
0x1261   :  { %v3464_v21 = vpop.xlane.xlu1 %3463 }
0x1262   :  { %v3470_v5 = vmul.f32 0.03125, %v3464_v21  ;;  %v3461_v57 = vpop.xlane.xlu0 %3460 }
0x1263   :  { %v3469_v47 = vmul.f32 0.03125, %v3461_v57 }
0x1264   :  { %v3476_v41 = vadd.f32 1e-05, %v3470_v5 }
0x1265   :  { %v3475_v52 = vadd.f32 1e-05, %v3469_v47 }
0x1266   :  { %5412 = vrsqrt.f32 %v3476_v41 }
0x1267   :  { %5414 = vrsqrt.f32 %v3475_v52 }
0x1270   :  { %v5413_v36 = vpop.eup %5412 }
0x1271   :  { %v5415_v29 = vpop.eup %5414  ;;  %v3488_v40 = vmul.f32 %v5413_v36, %v3440_v63 }
0x1272   :  { %v3487_v42 = vmul.f32 %v5415_v29, %v3439_v50 }
0x1273   :  { %v3498_v38 = vmul.f32 %v3492_v35, %v3488_v40 }
0x1274   :  { %v3497_v46 = vmul.f32 %v3492_v35, %v3487_v42 }
0x1275   :  { %v3508_v17 = vadd.f32 %v3502_v3, %v3498_v38 }
0x1276   :  { %v3507_v2 = vadd.f32 %v3502_v3, %v3497_v46 }
0x1278   :  { %v3511_v32 = vpack.c.bf16 %v3508_v17, %v3507_v2 }
0x127a   :  { %4742 = vmatmul.mubr.msk.bf16.gmra.mrb[68].mxu1 %vm194_vm2, %v3511_v32 }
0x127b   :  { %4753 = vmatprep.mubr.msk.bf16.mxu1 %vm5467_vm0, %v6970_v51 }
0x127d   :  { %v3576_v18 = vpop.f32.mrb[60].mxu1 }
0x127e   :  { %v3577_v1 = vadd.f32 %v3576_v18, %v6893_v6  ;;  %v4735_v54 = vpop.f32.mrb[61].mxu1 }
0x127f   :  { %v3579_v44 = vpop.f32.mrb[62].mxu1 }
0x1280   :  { %v3605_v23 = vmul.f32 0.044715, %v3577_v1  ;;  %v3580_v10 = vadd.f32 %v3579_v44, %v6893_v6  ;;  %v4736_v35 = vpop.f32.mrb[63].mxu1  ;;  %v3599_v14 = vmul.f32 0.5, %v3577_v1 }
0x1282   :  { %v3611_v11 = vmul.f32 %v3605_v23, %v3577_v1  ;;  %v3606_v0 = vmul.f32 0.044715, %v3580_v10  ;;  %v3600_v16 = vmul.f32 0.5, %v3580_v10 }
0x1284   :  { %v3617_v22 = vmul.f32 %v3611_v11, %v3577_v1  ;;  %v3612_v3 = vmul.f32 %v3606_v0, %v3580_v10 }
0x1285   :  { %v3584_v45 = vpop.f32.mrb[64].mxu1 }
0x1286   :  { %v3623_v62 = vadd.f32 %v3617_v22, %v3577_v1  ;;  %v3618_v28 = vmul.f32 %v3612_v3, %v3580_v10  ;;  %v3585_v61 = vadd.f32 %v3584_v45, %v6893_v6  ;;  %v4739_v7 = vpop.f32.mrb[65].mxu1 }
0x1287   :  { %v3587_v19 = vpop.f32.mrb[66].mxu1 }
0x1288   :  { %v3629_v60 = vmul.f32 0.7978846, %v3623_v62  ;;  %v3624_v12 = vadd.f32 %v3618_v28, %v3580_v10  ;;  %v3607_v26 = vmul.f32 0.044715, %v3585_v61  ;;  %v3588_v25 = vadd.f32 %v3587_v19, %v6893_v6  ;;  %v4740_v56 = vpop.f32.mrb[67].mxu1 }
0x1289   :  { %v3601_v52 = vmul.f32 0.5, %v3585_v61 }
0x128a   :  { %5416 = vtanh.f32 %v3629_v60  ;;  %v3630_v8 = vmul.f32 0.7978846, %v3624_v12  ;;  %v3613_v34 = vmul.f32 %v3607_v26, %v3585_v61  ;;  %v3608_v13 = vmul.f32 0.044715, %v3588_v25 }
0x128b   :  { %v3602_v36 = vmul.f32 0.5, %v3588_v25  ;;  %v6973_v26 = vsub.s32 5, %v5674_v48 }
0x128c   :  { %5418 = vtanh.f32 %v3630_v8  ;;  %v3619_v33 = vmul.f32 %v3613_v34, %v3585_v61  ;;  %v3614_v30 = vmul.f32 %v3608_v13, %v3588_v25 }
0x128e   :  { %v3625_v37 = vadd.f32 %v3619_v33, %v3585_v61  ;;  %v3620_v9 = vmul.f32 %v3614_v30, %v3588_v25 }
0x1290   :  { %v3631_v63 = vmul.f32 0.7978846, %v3625_v37  ;;  %v3626_v50 = vadd.f32 %v3620_v9, %v3588_v25  ;;  %v3668_v25 = vrot.slane %v6825_v43, %v6973_v26 }
0x1292   :  { %5420 = vtanh.f32 %v3631_v63  ;;  %v3632_v55 = vmul.f32 0.7978846, %v3626_v50 }
0x1294   :  { %v5417_v15 = vpop.eup %5416  ;;  %5422 = vtanh.f32 %v3632_v55 }
0x1295   :  { %v3641_v31 = vadd.f32 1.0, %v5417_v15 }
0x1296   :  { %v5419_v59 = vpop.eup %5418 }
0x1297   :  { %v3642_v53 = vadd.f32 1.0, %v5419_v59  ;;  %v3647_v27 = vmul.f32 %v3641_v31, %v3599_v14 }
0x1299   :  { %v3648_v21 = vmul.f32 %v3642_v53, %v3600_v16 }
0x129b   :  { %v3653_v5 = vpack.c.bf16 %v3648_v21, %v3647_v27 }
0x129c   :  { %v5421_v57 = vpop.eup %5420 }
0x129d   :  { %4754 = vmatmul.mubr.msk.bf16.vlgmr.msra.gmra.mrb[72].mxu1 %vm92_vm1, %v3653_v5  ;;  %v3643_v47 = vadd.f32 1.0, %v5421_v57 }
0x129e   :  { %v5423_v41 = vpop.eup %5422  ;;  %4757 = vmatprep.mubr.msk.bf16.mxu1 %vm5467_vm0, %v6970_v51 }
0x129f   :  { %v3644_v29 = vadd.f32 1.0, %v5423_v41  ;;  %v3649_v40 = vmul.f32 %v3643_v47, %v3601_v52 }
0x12a1   :  { %v3650_v42 = vmul.f32 %v3644_v29, %v3602_v36 }
0x12a3   :  { %v3654_v38 = vpack.c.bf16 %v3650_v42, %v3649_v40 }
0x12a5   :  { %4758 = vmatmul.mubr.msk.bf16.gmra.mrb[76].mxu1 %vm92_vm1, %v3654_v38 }
0x12a6   :  { %4761 = vmatprep.mubr.msk.bf16.mxu1 %vm5467_vm0, %v6970_v51 }
0x134d   :  { %v3592_v46 = vpop.f32.mrb[68].mxu1 }
0x134e   :  { %v3593_v17 = vadd.f32 %v3592_v46, %v6893_v6  ;;  %v4743_v2 = vpop.f32.mrb[69].mxu1 }
0x134f   :  { %v3595_v32 = vpop.f32.mrb[70].mxu1 }
0x1350   :  { %v3609_v4 = vmul.f32 0.044715, %v3593_v17  ;;  %v3596_v18 = vadd.f32 %v3595_v32, %v6893_v6  ;;  %v4744_v1 = vpop.f32.mrb[71].mxu1  ;;  %v3603_v61 = vmul.f32 0.5, %v3593_v17 }
0x1352   :  { %v3615_v54 = vmul.f32 %v3609_v4, %v3593_v17  ;;  %v3610_v44 = vmul.f32 0.044715, %v3596_v18  ;;  %v3604_v7 = vmul.f32 0.5, %v3596_v18 }
0x1354   :  { %v3621_v23 = vmul.f32 %v3615_v54, %v3593_v17  ;;  %v3616_v10 = vmul.f32 %v3610_v44, %v3596_v18 }
0x1356   :  { %v3627_v35 = vadd.f32 %v3621_v23, %v3593_v17  ;;  %v3622_v11 = vmul.f32 %v3616_v10, %v3596_v18 }
0x1358   :  { %v3633_v0 = vmul.f32 0.7978846, %v3627_v35  ;;  %v3628_v22 = vadd.f32 %v3622_v11, %v3596_v18  ;;  %v6974_v18 = vsub.s32 6, %v5674_v48  ;;  %v6975_v35 = vsub.s32 7, %v5674_v48  ;;  %v5174_v48 = vld [vmem:[%s6958_s7] sm:$0xff]  }
0x1359   :  { %4766 = vmatpush3.bf16.msra.mxu0 %v5174_v48 }
0x135a   :  { %5424 = vtanh.f32 %v3633_v0  ;;  %v3634_v3 = vmul.f32 0.7978846, %v3628_v22  ;;  %v3786_v1 = vrot.slane %v6825_v43, %v6974_v18  ;;  %v3792_v11 = vrot.slane %v6825_v43, %v6975_v35  ;;  %4767 = vmatprep.subr.bf16.mxu0 %v6970_v51  ;;  %v5175_v43 = vld [vmem:[%s6958_s7 + $0x8] sm:$0xff]   ;;  %s5472_s7 = smov [#allocation2]  }
0x135b   :  { %s3895_s28 = sshll.u32 %s5472_s7, 4  ;;  %s3896_s28 = int_to_ptr.vmem [resolvable:$true] %s3895_s28 }
0x135c   :  { %5426 = vtanh.f32 %v3634_v3  ;;  %p5447_p1 = scmp.lt.s32.totalorder %s3896_s28, %s3896_s28 }
0x135d   :  { %4768 = vmatpush3.bf16.msra.mxu0 %v5175_v43 }
0x1364   :  { %v5425_v45 = vpop.eup %5424 }
0x1365   :  { %v3645_v62 = vadd.f32 1.0, %v5425_v45 }
0x1366   :  { %v5427_v28 = vpop.eup %5426 }
0x1367   :  { %v3646_v19 = vadd.f32 1.0, %v5427_v28  ;;  %v3651_v60 = vmul.f32 %v3645_v62, %v3603_v61 }
0x1369   :  { %v3652_v6 = vmul.f32 %v3646_v19, %v3604_v7 }
0x136b   :  { %v3655_v12 = vpack.c.bf16 %v3652_v6, %v3651_v60 }
0x136d   :  { %4762 = vmatmul.mubr.msk.bf16.gmra.mrb[80].mxu1 %vm92_vm1, %v3655_v12 }
0x1370   :  { %v3736_v56 = vpop.f32.mrb[72].mxu1 }
0x1371   :  { %v3737_v8 = vadd.f32 %v3736_v56, %v3668_v25  ;;  %v4755_v34 = vpop.f32.mrb[73].mxu1 }
0x1372   :  { %v3739_v13 = vpop.f32.mrb[74].mxu1 }
0x1373   :  { %v3755_v33 = vadd.f32 %v3737_v8, %v6860_v39  ;;  %v4756_v30 = vpop.f32.mrb[75].mxu1 }
0x1375   :  { %v3757_v37 = vsel %vm194_vm2, %v3755_v33, 0.0 }
0x1376   :  { %3758 = vadd.xlane.f32.xlu1 %v3757_v37 }
0x1378   :  { %v3743_v9 = vpop.f32.mrb[76].mxu1 }
0x1379   :  { %v4759_v63 = vpop.f32.mrb[77].mxu1 }
0x137a   :  { %v3745_v50 = vpop.f32.mrb[78].mxu1 }
0x137b   :  { %v3746_v55 = vadd.f32 %v3745_v50, %v3668_v25  ;;  %v4760_v15 = vpop.f32.mrb[79].mxu1  ;;  %v38_v25 = vld [vmem:[%s6959_s8 + $0x20] sm:$0xff]  ;;  %s5442_s8 = scalar_lea.vmem %s3896_s28, 32 }
0x137c   :  { %v3817_v56 = vrot.slane %v38_v25, %v5677_v49  ;;  %v3822_v34 = vrot.slane %v38_v25, %v6144_v58  ;;  %v3832_v37 = vrot.slane %v38_v25, %v6195_v20  ;;  %p5443_p0 = scmp.ne.s32.totalorder %s3896_s28, %s5442_s8  ;;  %p5448_p2 = scmp.lt.s32.totalorder %s5442_s8, %s5442_s8 }
0x137d   :  { %v3756_v31 = vadd.f32 %v3746_v55, %v6866_v24 }
0x137e   :  { %p5449_p3 = por %p5448_p2, %p5447_p1 }
0x137f   :  { %v3760_v59 = vsel %vm194_vm2, %v3756_v31, 0.0 }
0x1380   :  { %3761 = vadd.xlane.f32.xlu0 %v3760_v59  ;;  %p5450_p4 = pnand %p5449_p3, %p5443_p0 }
0x1403   :  { %v3759_v14 = vpop.xlane.xlu1 %3758 }
0x1404   :  { %v3763_v16 = vmul.f32 0.03125, %v3759_v14 }
0x1406   :  { %v3765_v53 = vsub.f32 %v3755_v33, %v3763_v16 }
0x1408   :  { %v3767_v27 = vmul.f32 %v3765_v53, %v3765_v53 }
0x140a   :  { %v3769_v39 = vsel %vm194_vm2, %v3767_v27, 0.0 }
0x140b   :  { %3770 = vadd.xlane.f32.xlu1 %v3769_v39 }
0x140d   :  { %v3762_v21 = vpop.xlane.xlu0 %3761 }
0x140e   :  { %v3764_v5 = vmul.f32 0.03125, %v3762_v21 }
0x1410   :  { %v3766_v57 = vsub.f32 %v3756_v31, %v3764_v5 }
0x1412   :  { %v3768_v47 = vmul.f32 %v3766_v57, %v3766_v57 }
0x1414   :  { %v3772_v41 = vsel %vm194_vm2, %v3768_v47, 0.0 }
0x1415   :  { %3773 = vadd.xlane.f32.xlu0 %v3772_v41 }
0x1440   :  { %v3750_v52 = vpop.f32.mrb[80].mxu1 }
0x1441   :  { %v4763_v36 = vpop.f32.mrb[81].mxu1 }
0x1442   :  { %v3752_v24 = vpop.f32.mrb[82].mxu1 }
0x1443   :  { %v4764_v29 = vpop.f32.mrb[83].mxu1 }
0x1498   :  { %v3771_v40 = vpop.xlane.xlu1 %3770 }
0x1499   :  { %v3775_v42 = vmul.f32 0.03125, %v3771_v40 }
0x149b   :  { %v3777_v38 = vadd.f32 1e-05, %v3775_v42 }
0x149d   :  { %5428 = vrsqrt.f32 %v3777_v38 }
0x14a2   :  { %v3774_v46 = vpop.xlane.xlu0 %3773 }
0x14a3   :  { %v3776_v17 = vmul.f32 0.03125, %v3774_v46 }
0x14a5   :  { %v3778_v2 = vadd.f32 1e-05, %v3776_v17 }
0x14a7   :  { %5430 = vrsqrt.f32 %v3778_v2  ;;  %v5429_v32 = vpop.eup %5428 }
0x14a8   :  { %v3781_v4 = vmul.f32 %v5429_v32, %v3765_v53 }
0x14aa   :  { %v3787_v23 = vmul.f32 %v3786_v1, %v3781_v4 }
0x14ac   :  { %v3793_v22 = vadd.f32 %v3792_v11, %v3787_v23 }
0x14b1   :  { %v5431_v54 = vpop.eup %5430 }
0x14b2   :  { %v3782_v44 = vmul.f32 %v5431_v54, %v3766_v57 }
0x14b4   :  { %v3788_v10 = vmul.f32 %v3786_v1, %v3782_v44 }
0x14b6   :  { %v3794_v0 = vadd.f32 %v3792_v11, %v3788_v10 }
0x14b8   :  { %v3796_v3 = vrot.slane %v3794_v0, 7 }
0x14ba   :  { %v3799_v45 = vsel %vm3798_vm5, %v3793_v22, %v3796_v3 }
0x14bb   :  { %v3801_v62 = vsel %vm3800_vm6, %v3799_v45, 0.0 }
0x14bc   :  { %3802 = vadd.xlane.f32.xlu0 %v3801_v62 }
0x1549   :  { %v3803_v28 = vpop.xlane.xlu0 %3802 }
0x154a   :  { %v3804_v61 = vmul.f32 0.03125, %v3803_v28 }
0x154c   :  { %v3805_v7 = vsub.f32 %v3799_v45, %v3804_v61 }
0x154e   :  { %v3806_v19 = vmul.f32 %v3805_v7, %v3805_v7 }
0x1550   :  { %v3807_v60 = vsel %vm3800_vm6, %v3806_v19, 0.0 }
0x1551   :  { %3808 = vadd.xlane.f32.xlu1 %v3807_v60 }
0x15de   :  { %v3809_v6 = vpop.xlane.xlu1 %3808 }
0x15df   :  { %v3810_v12 = vmul.f32 0.03125, %v3809_v6 }
0x15e1   :  { %v3811_v26 = vadd.f32 1e-05, %v3810_v12 }
0x15e3   :  { %5432 = vrsqrt.f32 %v3811_v26 }
0x15ed   :  { %v5433_v8 = vpop.eup %5432 }
0x15ee   :  { %v3813_v13 = vmul.f32 %v5433_v8, %v3805_v7 }
0x15f0   :  { %v3818_v51 = vmul.f32 %v3817_v56, %v3813_v13 }
0x15f2   :  { %v3823_v33 = vadd.f32 %v3822_v34, %v3818_v51 }
0x15f4   :  { %v3824_v30 = vpack.c.bf16 %v3823_v33, %v3823_v33 }
0x15f6   :  { %4770 = vmatmul.mubr.msk.bf16.vlgmr.msra.gmra.mrb[60].mxu0 %vm194_vm2, %v3824_v30 }
0x16c9   :  { %v3882_v9 = vpop.f32.mrb[60].mxu0 }
0x16ca   :  { %v3883_v63 = vadd.f32 %v3882_v9, %v3832_v37  ;;  %v4771_v50 = vpop.f32.mrb[61].mxu0 }
0x16cb   :  { %v3885_v55 = vpop.f32.mrb[62].mxu0 }
0x16cc   :  { %3888 = vst [vmem:[#allocation2] sm:$0x3] %v3883_v63  ;;  %v4772_v49 = vpop.f32.mrb[63].mxu0 }
0x16cd   :  { %5453 = shalt.err (!%p5450_p4)
}
0x16ce   :  { %s5454_s12 = scalar_lea.hbm %s6960_s9, 32 }
0x16cf   :  { %p5455_p5 = scmp.ne.s32.totalorder %s6960_s9, %s5454_s12  ;;  %p5458_p6 = scmp.lt.u32.totalorder %s5454_s12, %s6960_s9 }
0x16d1   :  { %p5460_p7 = pnand %p5458_p6, %p5455_p5 }
0x16d3   :  { %5463 = shalt.err (!%p5460_p7)
}
0x16d4   :  { %3898 = dma.vmem_to_hbm [thread:$0]  %s3896_s28, 32, %s6960_s9, [#allocation3]  }
0x16d5   :  { %5464 = dma.done.wait [#allocation3], 32  }
0x16d6   :  { %5465 = vsyncadd [#allocation3], 4294967264 }
0x16d7   :  { %3902 = vsyncpa [#allocation3], 1 }

</bundles_post_ra>
